<compile_context>
chip_gen: v7x
topology: tpu7x:2x2x1
jax: 0.10.0
libtpu: 0.0.40
codegen_flags: <defaults>
</compile_context>

<pallas_src>
import functools

import jax
import jax.numpy as jnp
from jax.experimental import pallas as pl
from jax.experimental.pallas import tpu as pltpu

F32 = jnp.float32
BN_EPS = 1e-5
_WPAD = 8   # left margin in the halo scratch -> interior stores are sublane-aligned


def _replicated_spec(shape):
    # small parameter tensors: same whole-array block for every grid step
    return pl.BlockSpec(shape, lambda n: (0,) * len(shape))


# ------------------------- in-kernel building blocks ------------------------

def _store_halo(s_ref, val):
    """Write `val` (Hs, Ws, C) into the interior of the halo scratch.

    Layout: logical zero-padded pixel (r, c) lives at s_ref[r, c + _WPAD - 1, :].
    Data occupies rows 1..Hs and cols _WPAD.._WPAD+Ws-1 (sublane-aligned store);
    the 1-pixel zero border around it is provided by the scratch zeroing.
    """
    Hs, Ws, c = val.shape
    s_ref[1:Hs + 1, _WPAD:_WPAD + Ws, :c] = val


def _dw_pw_stage(s_ref, w_ref, b_ref, Hs, Ws, cin):
    """(dw3x3 stride-1 pad-1 + BN) -> (1x1 conv + BN + ReLU), fully on the MXU.

    The depthwise taps and both BNs are pre-folded into w_ref (9, cin, cout)
    and b_ref (1, cout); each tap is one accumulated matmul with K=cin.
    Reads the zero-padded stage input from the halo scratch.  Returns
    (Hs*Ws, cout) f32.
    """
    P = Hs * Ws
    cout = w_ref.shape[-1]
    w = w_ref[...]                                        # (9, cin, cout)
    acc = jnp.zeros((P, cout), F32)
    for dy in range(3):
        for dx in range(3):
            patch = s_ref[dy:dy + Hs, _WPAD - 1 + dx:_WPAD - 1 + dx + Ws, :cin]
            acc = acc + jnp.dot(patch.reshape(P, cin), w[dy * 3 + dx],
                                preferred_element_type=jnp.float32)
    return jnp.maximum(acc + b_ref[...], 0.0)


# ------------------------------- fused kernels ------------------------------

def _branch_main_s1_kernel(x_ref, w1_ref, b1_ref, w2_ref, b2_ref,
                           w3_ref, b3_ref, o_ref, s_ref):
    """stride==1 branch_main: three fused stages, one grid step = one image.

    The block input is padded in-kernel into the halo scratch; every
    intermediate stays in the same scratch (no HBM round trips, no XLA pads).
    """
    _, H, W, inp = x_ref.shape
    outputs = o_ref.shape[-1]
    mid = w1_ref.shape[-1]

    s_ref[...] = jnp.zeros_like(s_ref)          # zero border (cheap, per image)
    _store_halo(s_ref, x_ref[0])                # in-kernel padding of the input

    y = _dw_pw_stage(s_ref, w1_ref, b1_ref, H, W, inp)       # (H*W, mid)
    _store_halo(s_ref, y.reshape(H, W, mid))
    y = _dw_pw_stage(s_ref, w2_ref, b2_ref, H, W, mid)       # (H*W, mid)
    _store_halo(s_ref, y.reshape(H, W, mid))
    y = _dw_pw_stage(s_ref, w3_ref, b3_ref, H, W, mid)       # (H*W, outputs)
    o_ref[...] = y.reshape(1, H, W, outputs)


def _block_s2_kernel(p00_ref, p01_ref, p10_ref, p11_ref,
                     wp_ref, bp_ref, w1_ref, b1_ref, w2_ref, b2_ref,
                     w3_ref, b3_ref, oproj_ref, omain_ref, s_ref):
    """stride==2 block: branch_proj AND branch_main in one kernel.

    p{a}{b}: (1, Ho+1, Wo+1, Cin) = phase x_pad[a::2, b::2] of the padded input.
    Output (oy,ox) of a stride-2 dw tap (dy,dx) reads
    p[dy%2][dx%2][oy + dy//2, ox + dx//2], i.e. contiguous slices only.
    Both branches reuse the same phase loads; main stages 2/3 run from the
    halo scratch exactly like the stride-1 kernel.
    """
    _, Ho, Wo, outputs = omain_ref.shape
    inp = p00_ref.shape[-1]
    mid = w1_ref.shape[-1]
    P = Ho * Wo

    s_ref[...] = jnp.zeros_like(s_ref)

    phases = ((p00_ref, p01_ref), (p10_ref, p11_ref))
    w1 = w1_ref[...]
    wp = wp_ref[...]
    acc_m = jnp.zeros((P, mid), F32)
    acc_p = jnp.zeros((P, inp), F32)
    for dy in range(3):
        for dx in range(3):
            ph = phases[dy % 2][dx % 2]
            r, c = dy // 2, dx // 2
            patch = ph[:, r:r + Ho, c:c + Wo, :].reshape(P, inp)
            t = dy * 3 + dx
            acc_m = acc_m + jnp.dot(patch, w1[t], preferred_element_type=jnp.float32)
            acc_p = acc_p + jnp.dot(patch, wp[t], preferred_element_type=jnp.float32)

    oproj_ref[...] = jnp.maximum(acc_p + bp_ref[...], 0.0).reshape(1, Ho, Wo, inp)

    y = jnp.maximum(acc_m + b1_ref[...], 0.0)                 # main stage 1
    _store_halo(s_ref, y.reshape(Ho, Wo, mid))
    y = _dw_pw_stage(s_ref, w2_ref, b2_ref, Ho, Wo, mid)      # main stage 2
    _store_halo(s_ref, y.reshape(Ho, Wo, mid))
    y = _dw_pw_stage(s_ref, w3_ref, b3_ref, Ho, Wo, mid)      # main stage 3
    omain_ref[...] = y.reshape(1, Ho, Wo, outputs)


# ------------------------------- JAX wrappers --------------------------------

def _fold_stage(dw_w, dw_bn, pw_w, pw_bn):
    """Fold dw taps + both eval-mode BNs into (9, Cin, Cout) weight + (1, Cout) bias.

        relu(((sum_t patch_t * dw_t) * s1 + b1) @ W * s2 + b2)
      = relu(sum_t patch_t @ Wc_t + bias)
      Wc_t = diag(dw_t * s1) @ W @ diag(s2);  bias = b1 @ W @ diag(s2) + b2
    """
    s1, b1 = dw_bn
    s2, b2 = pw_bn
    pw_eff = pw_w * s2                                       # (Cin, Cout)
    w_comb = (dw_w * s1)[:, :, None] * pw_eff[None, :, :]    # (9, Cin, Cout)
    bias = jnp.dot(b1, pw_eff) + b2                          # (1, Cout)
    return w_comb, bias


def branch_main_stride1(xb, stage_params):
    """Fused stride==1 branch_main: one pallas_call for all three stages."""
    N, H, W, inp = xb.shape
    (w1, b1), (w2, b2), (w3, b3) = stage_params
    mid = w1.shape[-1]
    outputs = w3.shape[-1]
    cmax = max(inp, mid)
    wspecs = []
    for w, b in stage_params:
        wspecs += [_replicated_spec(w.shape), _replicated_spec(b.shape)]
    return pl.pallas_call(
        _branch_main_s1_kernel,
        out_shape=jax.ShapeDtypeStruct((N, H, W, outputs), F32),
        grid=(N,),
        in_specs=[pl.BlockSpec((1, H, W, inp), lambda n: (n, 0, 0, 0))] + wspecs,
        out_specs=pl.BlockSpec((1, H, W, outputs), lambda n: (n, 0, 0, 0)),
        scratch_shapes=[pltpu.VMEM((H + 2, W + _WPAD + 1, cmax), F32)],
        compiler_params=pltpu.CompilerParams(dimension_semantics=("parallel",)),
    )(xb, w1, b1, w2, b2, w3, b3)


def block_stride2(x, proj_params, stage_params):
    """Fused stride==2 block: branch_proj + branch_main in one pallas_call."""
    N, H, W, inp = x.shape
    assert H % 2 == 0 and W % 2 == 0
    Ho, Wo = H // 2, W // 2
    wp, bp = proj_params
    (w1, b1), (w2, b2), (w3, b3) = stage_params
    mid = w1.shape[-1]
    outputs = w3.shape[-1]

    # 4-phase (space-to-batch) decomposition of the zero-padded input; both
    # branches consume the same phase DMAs inside the kernel.
    xp = jnp.pad(x, ((0, 0), (1, 1), (1, 1), (0, 0)))
    phases = [xp[:, a::2, b::2, :] for a in (0, 1) for b in (0, 1)]
    Hh, Wh = Ho + 1, Wo + 1

    wspecs = [_replicated_spec(wp.shape), _replicated_spec(bp.shape)]
    for w, b in stage_params:
        wspecs += [_replicated_spec(w.shape), _replicated_spec(b.shape)]

    return pl.pallas_call(
        _block_s2_kernel,
        out_shape=(jax.ShapeDtypeStruct((N, Ho, Wo, inp), F32),
                   jax.ShapeDtypeStruct((N, Ho, Wo, outputs), F32)),
        grid=(N,),
        in_specs=[pl.BlockSpec((1, Hh, Wh, inp), lambda n: (n, 0, 0, 0))] * 4 + wspecs,
        out_specs=(pl.BlockSpec((1, Ho, Wo, inp), lambda n: (n, 0, 0, 0)),
                   pl.BlockSpec((1, Ho, Wo, outputs), lambda n: (n, 0, 0, 0))),
        scratch_shapes=[pltpu.VMEM((Ho + 2, Wo + _WPAD + 1, mid), F32)],
        compiler_params=pltpu.CompilerParams(dimension_semantics=("parallel",)),
    )(*phases, wp, bp, w1, b1, w2, b2, w3, b3)


def channel_shuffle_split(x_nhwc):
    # NHWC equivalent of the reference channel_shuffle(): (even, odd) channels.
    N, H, W, C = x_nhwc.shape
    xr = x_nhwc.reshape(N, H, W, C // 2, 2)
    return xr[..., 0], xr[..., 1]


def shuffle_xception_forward(params, x_nchw):
    """Shuffle_Xception forward (eval-mode BN), NCHW in / NCHW out."""
    stride = params['stride']
    x = jnp.transpose(x_nchw, (0, 2, 3, 1)).astype(F32)        # -> NHWC

    stage_params = [
        _fold_stage(params['dw1_w'], params['bn1'], params['pw1_w'], params['bn2']),
        _fold_stage(params['dw2_w'], params['bn3'], params['pw2_w'], params['bn4']),
        _fold_stage(params['dw3_w'], params['bn5'], params['pw3_w'], params['bn6']),
    ]

    if stride == 1:
        x_proj, xb = channel_shuffle_split(x)
        y = branch_main_stride1(xb, stage_params)
    else:
        proj_params = _fold_stage(params['proj_dw_w'], params['proj_bn1'],
                                  params['proj_pw_w'], params['proj_bn2'])
        x_proj, y = block_stride2(x, proj_params, stage_params)

    # TODO(synk): fusing this concat into the kernel (lane-dense (1,H,W*oup)
    # store) needs an in-kernel lane relayout / offset store; kept in XLA.
    out = jnp.concatenate([x_proj, y], axis=-1)
    return jnp.transpose(out, (0, 3, 1, 2))                    # -> NCHW


# ----------------------- pure-JAX reference (for checks) --------------------

def _ref_dw3x3(x, w9, stride):
    C = x.shape[-1]
    w = w9.reshape(3, 3, 1, C)
    return jax.lax.conv_general_dilated(
        x, w, window_strides=(stride, stride), padding=((1, 1), (1, 1)),
        dimension_numbers=('NHWC', 'HWIO', 'NHWC'), feature_group_count=C)


def _ref_bn(x, bn):
    s, b = bn
    return x * s.reshape(1, 1, 1, -1) + b.reshape(1, 1, 1, -1)


def _ref_stage(x, dw_w, dw_bn, pw_w, pw_bn, stride):
    y = _ref_bn(_ref_dw3x3(x, dw_w, stride), dw_bn)
    y = _ref_bn(jnp.einsum('nhwc,cd->nhwd', y, pw_w), pw_bn)
    return jnp.maximum(y, 0.0)


def shuffle_xception_reference(params, x_nchw):
    stride = params['stride']
    x = jnp.transpose(x_nchw, (0, 2, 3, 1)).astype(F32)
    if stride == 1:
        x_proj, xb = channel_shuffle_split(x)
    else:
        x_proj, xb = x, x
    y = _ref_stage(xb, params['dw1_w'], params['bn1'], params['pw1_w'], params['bn2'], stride)
    y = _ref_stage(y, params['dw2_w'], params['bn3'], params['pw2_w'], params['bn4'], 1)
    y = _ref_stage(y, params['dw3_w'], params['bn5'], params['pw3_w'], params['bn6'], 1)
    if stride == 2:
        x_proj = _ref_stage(x_proj, params['proj_dw_w'], params['proj_bn1'],
                            params['proj_pw_w'], params['proj_bn2'], stride)
    out = jnp.concatenate([x_proj, y], axis=-1)
    return jnp.transpose(out, (0, 3, 1, 2))


# ------------------------- parameter construction ---------------------------

def make_bn(key, c):
    # eval-mode BatchNorm2d with RANDOM stats (catches folding sign/order bugs)
    kg, kb, km, kv = jax.random.split(key, 4)
    gamma = 1.0 + 0.2 * jax.random.normal(kg, (c,), dtype=F32)
    beta = 0.2 * jax.random.normal(kb, (c,), dtype=F32)
    mean = 0.2 * jax.random.normal(km, (c,), dtype=F32)
    var = jax.random.uniform(kv, (c,), dtype=F32, minval=0.5, maxval=1.5)
    scale = gamma / jnp.sqrt(var + BN_EPS)
    bias = beta - mean * scale
    return scale.reshape(1, c), bias.reshape(1, c)


def init_params(key, inp, oup, mid, stride):
    assert stride in (1, 2)
    outputs = oup - inp
    keys = iter(jax.random.split(key, 20))

    def nrm(shape, std):
        return (std * jax.random.normal(next(keys), shape)).astype(F32)

    # depthwise weights stored as (9, C) [tap-major], pointwise as (Cin, Cout)
    p = {'stride': stride, 'inp': inp, 'oup': oup, 'mid': mid,
         'dw1_w': nrm((9, inp), 1.0), 'bn1': make_bn(next(keys), inp),
         'pw1_w': nrm((inp, mid), 1.0 / inp), 'bn2': make_bn(next(keys), mid),
         'dw2_w': nrm((9, mid), 1.0), 'bn3': make_bn(next(keys), mid),
         'pw2_w': nrm((mid, mid), 1.0 / mid), 'bn4': make_bn(next(keys), mid),
         'dw3_w': nrm((9, mid), 1.0), 'bn5': make_bn(next(keys), mid),
         'pw3_w': nrm((mid, outputs), 1.0 / mid), 'bn6': make_bn(next(keys), outputs)}
    if stride == 2:
        p['proj_dw_w'] = nrm((9, inp), 1.0)
        p['proj_bn1'] = make_bn(next(keys), inp)
        p['proj_pw_w'] = nrm((inp, inp), 1.0 / inp)
        p['proj_bn2'] = make_bn(next(keys), inp)
    return p


if __name__ == "__main__":
    key = jax.random.PRNGKey(0)
    kp1, kp2, kx1, kx2 = jax.random.split(key, 4)

    N, H, W = 2, 16, 16

    # stride=1 block: channel_shuffle splits the 2*inp input channels
    inp1, oup1, mid1 = 16, 32, 16
    params_s1 = init_params(kp1, inp1, oup1, mid1, stride=1)
    x1 = jax.random.normal(kx1, (N, 2 * inp1, H, W), dtype=F32)
    fwd1 = jax.jit(functools.partial(shuffle_xception_forward, params_s1))
    out1 = jax.block_until_ready(fwd1(x1))
    ref1 = shuffle_xception_reference(params_s1, x1)
    assert out1.shape == (N, oup1, H, W), out1.shape
    err1 = float(jnp.max(jnp.abs(out1 - ref1)))
    assert err1 < 2e-3, f"stride-1 max abs err {err1}"

    # stride=2 block: both branches consume the full input, spatial halved
    inp2, oup2, mid2 = 32, 64, 32
    params_s2 = init_params(kp2, inp2, oup2, mid2, stride=2)
    x2 = jax.random.normal(kx2, (N, inp2, H, W), dtype=F32)
    fwd2 = jax.jit(functools.partial(shuffle_xception_forward, params_s2))
    out2 = jax.block_until_ready(fwd2(x2))
    ref2 = shuffle_xception_reference(params_s2, x2)
    assert out2.shape == (N, oup2, H // 2, W // 2), out2.shape
    err2 = float(jnp.max(jnp.abs(out2 - ref2)))
    assert err2 < 2e-3, f"stride-2 max abs err {err2}"

    print("KERNEL_OK")
</pallas_src>

<mosaic_0001>
module attributes {stable_mosaic.version = 11 : i64} {
  func.func @_branch_main_s1_kernel(%arg0: i32, %arg1: memref<1x16x16x16xf32, #tpu.memory_space<vmem>>, %arg2: memref<9x16x16xf32, #tpu.memory_space<vmem>>, %arg3: memref<1x16xf32, #tpu.memory_space<vmem>>, %arg4: memref<9x16x16xf32, #tpu.memory_space<vmem>>, %arg5: memref<1x16xf32, #tpu.memory_space<vmem>>, %arg6: memref<9x16x16xf32, #tpu.memory_space<vmem>>, %arg7: memref<1x16xf32, #tpu.memory_space<vmem>>, %arg8: memref<1x16x16x16xf32, #tpu.memory_space<vmem>>, %arg9: memref<18x25x16xf32, #tpu.memory_space<vmem>>) attributes {dimension_semantics = [#tpu.dimension_semantics<parallel>], iteration_bounds = array<i64: 2>, scalar_prefetch = 0 : i64, scratch_operands = 1 : i64, tpu.core_type = #tpu.core_type<tc>, window_params = [{transform_indices = @transform_0, window_bounds = array<i64: 1, 16, 16, 16>}, {pipeline_mode = #tpu.pipeline_mode<synchronous>, transform_indices = @transform_1, window_bounds = array<i64: 9, 16, 16>}, {pipeline_mode = #tpu.pipeline_mode<synchronous>, transform_indices = @transform_2, window_bounds = array<i64: 1, 16>}, {pipeline_mode = #tpu.pipeline_mode<synchronous>, transform_indices = @transform_3, window_bounds = array<i64: 9, 16, 16>}, {pipeline_mode = #tpu.pipeline_mode<synchronous>, transform_indices = @transform_4, window_bounds = array<i64: 1, 16>}, {pipeline_mode = #tpu.pipeline_mode<synchronous>, transform_indices = @transform_5, window_bounds = array<i64: 9, 16, 16>}, {pipeline_mode = #tpu.pipeline_mode<synchronous>, transform_indices = @transform_6, window_bounds = array<i64: 1, 16>}, {transform_indices = @transform_7, window_bounds = array<i64: 1, 16, 16, 16>}]} {
    %cst = arith.constant 0.000000e+00 : f32
    %0 = vector.broadcast %cst : f32 to vector<18x25x16xf32>
    %c0 = arith.constant 0 : index
    %c0_0 = arith.constant 0 : index
    %c0_1 = arith.constant 0 : index
    %1 = vector.load %arg9[%c0, %c0_0, %c0_1] : memref<18x25x16xf32, #tpu.memory_space<vmem>>, vector<18x25x16xf32>
    tpu.vector_store %arg9[%c0, %c0_0, %c0_1], %0 {strides = array<i32>} : memref<18x25x16xf32, #tpu.memory_space<vmem>>, vector<18x25x16xf32>,
    %c0_2 = arith.constant 0 : index
    %c0_3 = arith.constant 0 : index
    %c0_4 = arith.constant 0 : index
    %c0_5 = arith.constant 0 : index
    %2 = vector.load %arg1[%c0_2, %c0_3, %c0_4, %c0_5] : memref<1x16x16x16xf32, #tpu.memory_space<vmem>>, vector<1x16x16x16xf32>
    %3 = vector.shape_cast %2 : vector<1x16x16x16xf32> to vector<16x16x16xf32>
    %c1 = arith.constant 1 : index
    %c8 = arith.constant 8 : index
    %c0_6 = arith.constant 0 : index
    %4 = vector.load %arg9[%c1, %c8, %c0_6] : memref<18x25x16xf32, #tpu.memory_space<vmem>>, vector<16x16x16xf32>
    tpu.vector_store %arg9[%c1, %c8, %c0_6], %3 {strides = array<i32>} : memref<18x25x16xf32, #tpu.memory_space<vmem>>, vector<16x16x16xf32>,
    %c0_7 = arith.constant 0 : index
    %c0_8 = arith.constant 0 : index
    %c0_9 = arith.constant 0 : index
    %5 = vector.load %arg2[%c0_7, %c0_8, %c0_9] : memref<9x16x16xf32, #tpu.memory_space<vmem>>, vector<9x16x16xf32>
    %cst_10 = arith.constant 0.000000e+00 : f32
    %6 = vector.broadcast %cst_10 : f32 to vector<256x16xf32>
    %c0_11 = arith.constant 0 : index
    %c7 = arith.constant 7 : index
    %c0_12 = arith.constant 0 : index
    %7 = vector.load %arg9[%c0_11, %c7, %c0_12] : memref<18x25x16xf32, #tpu.memory_space<vmem>>, vector<16x16x16xf32>
    %8 = vector.shape_cast %7 : vector<16x16x16xf32> to vector<256x16xf32>
    %9 = vector.extract_strided_slice %5 {offsets = [0, 0, 0], sizes = [1, 16, 16], strides = [1, 1, 1]} : vector<9x16x16xf32> to vector<1x16x16xf32>
    %10 = vector.shape_cast %9 : vector<1x16x16xf32> to vector<16x16xf32>
    %cst_13 = arith.constant dense<0.000000e+00> : vector<256x16xf32>
    %11 = tpu.matmul %8, %10, %cst_13 {dimension_numbers = #tpu.dot_dimension_numbers<[1], [0], [0], [1], [0, 0, 1, 1], [], []>} : vector<256x16xf32>, vector<16x16xf32>, vector<256x16xf32> -> vector<256x16xf32>
    %12 = arith.addf %6, %11 : vector<256x16xf32>
    %c0_14 = arith.constant 0 : index
    %c8_15 = arith.constant 8 : index
    %c0_16 = arith.constant 0 : index
    %13 = vector.load %arg9[%c0_14, %c8_15, %c0_16] : memref<18x25x16xf32, #tpu.memory_space<vmem>>, vector<16x16x16xf32>
    %14 = vector.shape_cast %13 : vector<16x16x16xf32> to vector<256x16xf32>
    %15 = vector.extract_strided_slice %5 {offsets = [1, 0, 0], sizes = [1, 16, 16], strides = [1, 1, 1]} : vector<9x16x16xf32> to vector<1x16x16xf32>
    %16 = vector.shape_cast %15 : vector<1x16x16xf32> to vector<16x16xf32>
    %cst_17 = arith.constant dense<0.000000e+00> : vector<256x16xf32>
    %17 = tpu.matmul %14, %16, %cst_17 {dimension_numbers = #tpu.dot_dimension_numbers<[1], [0], [0], [1], [0, 0, 1, 1], [], []>} : vector<256x16xf32>, vector<16x16xf32>, vector<256x16xf32> -> vector<256x16xf32>
    %18 = arith.addf %12, %17 : vector<256x16xf32>
    %c0_18 = arith.constant 0 : index
    %c9 = arith.constant 9 : index
    %c0_19 = arith.constant 0 : index
    %19 = vector.load %arg9[%c0_18, %c9, %c0_19] : memref<18x25x16xf32, #tpu.memory_space<vmem>>, vector<16x16x16xf32>
    %20 = vector.shape_cast %19 : vector<16x16x16xf32> to vector<256x16xf32>
    %21 = vector.extract_strided_slice %5 {offsets = [2, 0, 0], sizes = [1, 16, 16], strides = [1, 1, 1]} : vector<9x16x16xf32> to vector<1x16x16xf32>
    %22 = vector.shape_cast %21 : vector<1x16x16xf32> to vector<16x16xf32>
    %cst_20 = arith.constant dense<0.000000e+00> : vector<256x16xf32>
    %23 = tpu.matmul %20, %22, %cst_20 {dimension_numbers = #tpu.dot_dimension_numbers<[1], [0], [0], [1], [0, 0, 1, 1], [], []>} : vector<256x16xf32>, vector<16x16xf32>, vector<256x16xf32> -> vector<256x16xf32>
    %24 = arith.addf %18, %23 : vector<256x16xf32>
    %c1_21 = arith.constant 1 : index
    %c7_22 = arith.constant 7 : index
    %c0_23 = arith.constant 0 : index
    %25 = vector.load %arg9[%c1_21, %c7_22, %c0_23] : memref<18x25x16xf32, #tpu.memory_space<vmem>>, vector<16x16x16xf32>
    %26 = vector.shape_cast %25 : vector<16x16x16xf32> to vector<256x16xf32>
    %27 = vector.extract_strided_slice %5 {offsets = [3, 0, 0], sizes = [1, 16, 16], strides = [1, 1, 1]} : vector<9x16x16xf32> to vector<1x16x16xf32>
    %28 = vector.shape_cast %27 : vector<1x16x16xf32> to vector<16x16xf32>
    %cst_24 = arith.constant dense<0.000000e+00> : vector<256x16xf32>
    %29 = tpu.matmul %26, %28, %cst_24 {dimension_numbers = #tpu.dot_dimension_numbers<[1], [0], [0], [1], [0, 0, 1, 1], [], []>} : vector<256x16xf32>, vector<16x16xf32>, vector<256x16xf32> -> vector<256x16xf32>
    %30 = arith.addf %24, %29 : vector<256x16xf32>
    %c1_25 = arith.constant 1 : index
    %c8_26 = arith.constant 8 : index
    %c0_27 = arith.constant 0 : index
    %31 = vector.load %arg9[%c1_25, %c8_26, %c0_27] : memref<18x25x16xf32, #tpu.memory_space<vmem>>, vector<16x16x16xf32>
    %32 = vector.shape_cast %31 : vector<16x16x16xf32> to vector<256x16xf32>
    %33 = vector.extract_strided_slice %5 {offsets = [4, 0, 0], sizes = [1, 16, 16], strides = [1, 1, 1]} : vector<9x16x16xf32> to vector<1x16x16xf32>
    %34 = vector.shape_cast %33 : vector<1x16x16xf32> to vector<16x16xf32>
    %cst_28 = arith.constant dense<0.000000e+00> : vector<256x16xf32>
    %35 = tpu.matmul %32, %34, %cst_28 {dimension_numbers = #tpu.dot_dimension_numbers<[1], [0], [0], [1], [0, 0, 1, 1], [], []>} : vector<256x16xf32>, vector<16x16xf32>, vector<256x16xf32> -> vector<256x16xf32>
    %36 = arith.addf %30, %35 : vector<256x16xf32>
    %c1_29 = arith.constant 1 : index
    %c9_30 = arith.constant 9 : index
    %c0_31 = arith.constant 0 : index
    %37 = vector.load %arg9[%c1_29, %c9_30, %c0_31] : memref<18x25x16xf32, #tpu.memory_space<vmem>>, vector<16x16x16xf32>
    %38 = vector.shape_cast %37 : vector<16x16x16xf32> to vector<256x16xf32>
    %39 = vector.extract_strided_slice %5 {offsets = [5, 0, 0], sizes = [1, 16, 16], strides = [1, 1, 1]} : vector<9x16x16xf32> to vector<1x16x16xf32>
    %40 = vector.shape_cast %39 : vector<1x16x16xf32> to vector<16x16xf32>
    %cst_32 = arith.constant dense<0.000000e+00> : vector<256x16xf32>
    %41 = tpu.matmul %38, %40, %cst_32 {dimension_numbers = #tpu.dot_dimension_numbers<[1], [0], [0], [1], [0, 0, 1, 1], [], []>} : vector<256x16xf32>, vector<16x16xf32>, vector<256x16xf32> -> vector<256x16xf32>
    %42 = arith.addf %36, %41 : vector<256x16xf32>
    %c2 = arith.constant 2 : index
    %c7_33 = arith.constant 7 : index
    %c0_34 = arith.constant 0 : index
    %43 = vector.load %arg9[%c2, %c7_33, %c0_34] : memref<18x25x16xf32, #tpu.memory_space<vmem>>, vector<16x16x16xf32>
    %44 = vector.shape_cast %43 : vector<16x16x16xf32> to vector<256x16xf32>
    %45 = vector.extract_strided_slice %5 {offsets = [6, 0, 0], sizes = [1, 16, 16], strides = [1, 1, 1]} : vector<9x16x16xf32> to vector<1x16x16xf32>
    %46 = vector.shape_cast %45 : vector<1x16x16xf32> to vector<16x16xf32>
    %cst_35 = arith.constant dense<0.000000e+00> : vector<256x16xf32>
    %47 = tpu.matmul %44, %46, %cst_35 {dimension_numbers = #tpu.dot_dimension_numbers<[1], [0], [0], [1], [0, 0, 1, 1], [], []>} : vector<256x16xf32>, vector<16x16xf32>, vector<256x16xf32> -> vector<256x16xf32>
    %48 = arith.addf %42, %47 : vector<256x16xf32>
    %c2_36 = arith.constant 2 : index
    %c8_37 = arith.constant 8 : index
    %c0_38 = arith.constant 0 : index
    %49 = vector.load %arg9[%c2_36, %c8_37, %c0_38] : memref<18x25x16xf32, #tpu.memory_space<vmem>>, vector<16x16x16xf32>
    %50 = vector.shape_cast %49 : vector<16x16x16xf32> to vector<256x16xf32>
    %51 = vector.extract_strided_slice %5 {offsets = [7, 0, 0], sizes = [1, 16, 16], strides = [1, 1, 1]} : vector<9x16x16xf32> to vector<1x16x16xf32>
    %52 = vector.shape_cast %51 : vector<1x16x16xf32> to vector<16x16xf32>
    %cst_39 = arith.constant dense<0.000000e+00> : vector<256x16xf32>
    %53 = tpu.matmul %50, %52, %cst_39 {dimension_numbers = #tpu.dot_dimension_numbers<[1], [0], [0], [1], [0, 0, 1, 1], [], []>} : vector<256x16xf32>, vector<16x16xf32>, vector<256x16xf32> -> vector<256x16xf32>
    %54 = arith.addf %48, %53 : vector<256x16xf32>
    %c2_40 = arith.constant 2 : index
    %c9_41 = arith.constant 9 : index
    %c0_42 = arith.constant 0 : index
    %55 = vector.load %arg9[%c2_40, %c9_41, %c0_42] : memref<18x25x16xf32, #tpu.memory_space<vmem>>, vector<16x16x16xf32>
    %56 = vector.shape_cast %55 : vector<16x16x16xf32> to vector<256x16xf32>
    %57 = vector.extract_strided_slice %5 {offsets = [8, 0, 0], sizes = [1, 16, 16], strides = [1, 1, 1]} : vector<9x16x16xf32> to vector<1x16x16xf32>
    %58 = vector.shape_cast %57 : vector<1x16x16xf32> to vector<16x16xf32>
    %cst_43 = arith.constant dense<0.000000e+00> : vector<256x16xf32>
    %59 = tpu.matmul %56, %58, %cst_43 {dimension_numbers = #tpu.dot_dimension_numbers<[1], [0], [0], [1], [0, 0, 1, 1], [], []>} : vector<256x16xf32>, vector<16x16xf32>, vector<256x16xf32> -> vector<256x16xf32>
    %60 = arith.addf %54, %59 : vector<256x16xf32>
    %c0_44 = arith.constant 0 : index
    %c0_45 = arith.constant 0 : index
    %61 = vector.load %arg3[%c0_44, %c0_45] : memref<1x16xf32, #tpu.memory_space<vmem>>, vector<1x16xf32>
    %62 = vector.broadcast %61 : vector<1x16xf32> to vector<256x16xf32>
    %63 = arith.addf %60, %62 : vector<256x16xf32>
    %cst_46 = arith.constant 0.000000e+00 : f32
    %64 = vector.broadcast %cst_46 : f32 to vector<256x16xf32>
    %65 = arith.maximumf %63, %64 : vector<256x16xf32>
    %66 = vector.shape_cast %65 : vector<256x16xf32> to vector<16x16x16xf32>
    %c1_47 = arith.constant 1 : index
    %c8_48 = arith.constant 8 : index
    %c0_49 = arith.constant 0 : index
    %67 = vector.load %arg9[%c1_47, %c8_48, %c0_49] : memref<18x25x16xf32, #tpu.memory_space<vmem>>, vector<16x16x16xf32>
    tpu.vector_store %arg9[%c1_47, %c8_48, %c0_49], %66 {strides = array<i32>} : memref<18x25x16xf32, #tpu.memory_space<vmem>>, vector<16x16x16xf32>,
    %c0_50 = arith.constant 0 : index
    %c0_51 = arith.constant 0 : index
    %c0_52 = arith.constant 0 : index
    %68 = vector.load %arg4[%c0_50, %c0_51, %c0_52] : memref<9x16x16xf32, #tpu.memory_space<vmem>>, vector<9x16x16xf32>
    %cst_53 = arith.constant 0.000000e+00 : f32
    %69 = vector.broadcast %cst_53 : f32 to vector<256x16xf32>
    %c0_54 = arith.constant 0 : index
    %c7_55 = arith.constant 7 : index
    %c0_56 = arith.constant 0 : index
    %70 = vector.load %arg9[%c0_54, %c7_55, %c0_56] : memref<18x25x16xf32, #tpu.memory_space<vmem>>, vector<16x16x16xf32>
    %71 = vector.shape_cast %70 : vector<16x16x16xf32> to vector<256x16xf32>
    %72 = vector.extract_strided_slice %68 {offsets = [0, 0, 0], sizes = [1, 16, 16], strides = [1, 1, 1]} : vector<9x16x16xf32> to vector<1x16x16xf32>
    %73 = vector.shape_cast %72 : vector<1x16x16xf32> to vector<16x16xf32>
    %cst_57 = arith.constant dense<0.000000e+00> : vector<256x16xf32>
    %74 = tpu.matmul %71, %73, %cst_57 {dimension_numbers = #tpu.dot_dimension_numbers<[1], [0], [0], [1], [0, 0, 1, 1], [], []>} : vector<256x16xf32>, vector<16x16xf32>, vector<256x16xf32> -> vector<256x16xf32>
    %75 = arith.addf %69, %74 : vector<256x16xf32>
    %c0_58 = arith.constant 0 : index
    %c8_59 = arith.constant 8 : index
    %c0_60 = arith.constant 0 : index
    %76 = vector.load %arg9[%c0_58, %c8_59, %c0_60] : memref<18x25x16xf32, #tpu.memory_space<vmem>>, vector<16x16x16xf32>
    %77 = vector.shape_cast %76 : vector<16x16x16xf32> to vector<256x16xf32>
    %78 = vector.extract_strided_slice %68 {offsets = [1, 0, 0], sizes = [1, 16, 16], strides = [1, 1, 1]} : vector<9x16x16xf32> to vector<1x16x16xf32>
    %79 = vector.shape_cast %78 : vector<1x16x16xf32> to vector<16x16xf32>
    %cst_61 = arith.constant dense<0.000000e+00> : vector<256x16xf32>
    %80 = tpu.matmul %77, %79, %cst_61 {dimension_numbers = #tpu.dot_dimension_numbers<[1], [0], [0], [1], [0, 0, 1, 1], [], []>} : vector<256x16xf32>, vector<16x16xf32>, vector<256x16xf32> -> vector<256x16xf32>
    %81 = arith.addf %75, %80 : vector<256x16xf32>
    %c0_62 = arith.constant 0 : index
    %c9_63 = arith.constant 9 : index
    %c0_64 = arith.constant 0 : index
    %82 = vector.load %arg9[%c0_62, %c9_63, %c0_64] : memref<18x25x16xf32, #tpu.memory_space<vmem>>, vector<16x16x16xf32>
    %83 = vector.shape_cast %82 : vector<16x16x16xf32> to vector<256x16xf32>
    %84 = vector.extract_strided_slice %68 {offsets = [2, 0, 0], sizes = [1, 16, 16], strides = [1, 1, 1]} : vector<9x16x16xf32> to vector<1x16x16xf32>
    %85 = vector.shape_cast %84 : vector<1x16x16xf32> to vector<16x16xf32>
    %cst_65 = arith.constant dense<0.000000e+00> : vector<256x16xf32>
    %86 = tpu.matmul %83, %85, %cst_65 {dimension_numbers = #tpu.dot_dimension_numbers<[1], [0], [0], [1], [0, 0, 1, 1], [], []>} : vector<256x16xf32>, vector<16x16xf32>, vector<256x16xf32> -> vector<256x16xf32>
    %87 = arith.addf %81, %86 : vector<256x16xf32>
    %c1_66 = arith.constant 1 : index
    %c7_67 = arith.constant 7 : index
    %c0_68 = arith.constant 0 : index
    %88 = vector.load %arg9[%c1_66, %c7_67, %c0_68] : memref<18x25x16xf32, #tpu.memory_space<vmem>>, vector<16x16x16xf32>
    %89 = vector.shape_cast %88 : vector<16x16x16xf32> to vector<256x16xf32>
    %90 = vector.extract_strided_slice %68 {offsets = [3, 0, 0], sizes = [1, 16, 16], strides = [1, 1, 1]} : vector<9x16x16xf32> to vector<1x16x16xf32>
    %91 = vector.shape_cast %90 : vector<1x16x16xf32> to vector<16x16xf32>
    %cst_69 = arith.constant dense<0.000000e+00> : vector<256x16xf32>
    %92 = tpu.matmul %89, %91, %cst_69 {dimension_numbers = #tpu.dot_dimension_numbers<[1], [0], [0], [1], [0, 0, 1, 1], [], []>} : vector<256x16xf32>, vector<16x16xf32>, vector<256x16xf32> -> vector<256x16xf32>
    %93 = arith.addf %87, %92 : vector<256x16xf32>
    %c1_70 = arith.constant 1 : index
    %c8_71 = arith.constant 8 : index
    %c0_72 = arith.constant 0 : index
    %94 = vector.load %arg9[%c1_70, %c8_71, %c0_72] : memref<18x25x16xf32, #tpu.memory_space<vmem>>, vector<16x16x16xf32>
    %95 = vector.shape_cast %94 : vector<16x16x16xf32> to vector<256x16xf32>
    %96 = vector.extract_strided_slice %68 {offsets = [4, 0, 0], sizes = [1, 16, 16], strides = [1, 1, 1]} : vector<9x16x16xf32> to vector<1x16x16xf32>
    %97 = vector.shape_cast %96 : vector<1x16x16xf32> to vector<16x16xf32>
    %cst_73 = arith.constant dense<0.000000e+00> : vector<256x16xf32>
    %98 = tpu.matmul %95, %97, %cst_73 {dimension_numbers = #tpu.dot_dimension_numbers<[1], [0], [0], [1], [0, 0, 1, 1], [], []>} : vector<256x16xf32>, vector<16x16xf32>, vector<256x16xf32> -> vector<256x16xf32>
    %99 = arith.addf %93, %98 : vector<256x16xf32>
    %c1_74 = arith.constant 1 : index
    %c9_75 = arith.constant 9 : index
    %c0_76 = arith.constant 0 : index
    %100 = vector.load %arg9[%c1_74, %c9_75, %c0_76] : memref<18x25x16xf32, #tpu.memory_space<vmem>>, vector<16x16x16xf32>
    %101 = vector.shape_cast %100 : vector<16x16x16xf32> to vector<256x16xf32>
    %102 = vector.extract_strided_slice %68 {offsets = [5, 0, 0], sizes = [1, 16, 16], strides = [1, 1, 1]} : vector<9x16x16xf32> to vector<1x16x16xf32>
    %103 = vector.shape_cast %102 : vector<1x16x16xf32> to vector<16x16xf32>
    %cst_77 = arith.constant dense<0.000000e+00> : vector<256x16xf32>
    %104 = tpu.matmul %101, %103, %cst_77 {dimension_numbers = #tpu.dot_dimension_numbers<[1], [0], [0], [1], [0, 0, 1, 1], [], []>} : vector<256x16xf32>, vector<16x16xf32>, vector<256x16xf32> -> vector<256x16xf32>
    %105 = arith.addf %99, %104 : vector<256x16xf32>
    %c2_78 = arith.constant 2 : index
    %c7_79 = arith.constant 7 : index
    %c0_80 = arith.constant 0 : index
    %106 = vector.load %arg9[%c2_78, %c7_79, %c0_80] : memref<18x25x16xf32, #tpu.memory_space<vmem>>, vector<16x16x16xf32>
    %107 = vector.shape_cast %106 : vector<16x16x16xf32> to vector<256x16xf32>
    %108 = vector.extract_strided_slice %68 {offsets = [6, 0, 0], sizes = [1, 16, 16], strides = [1, 1, 1]} : vector<9x16x16xf32> to vector<1x16x16xf32>
    %109 = vector.shape_cast %108 : vector<1x16x16xf32> to vector<16x16xf32>
    %cst_81 = arith.constant dense<0.000000e+00> : vector<256x16xf32>
    %110 = tpu.matmul %107, %109, %cst_81 {dimension_numbers = #tpu.dot_dimension_numbers<[1], [0], [0], [1], [0, 0, 1, 1], [], []>} : vector<256x16xf32>, vector<16x16xf32>, vector<256x16xf32> -> vector<256x16xf32>
    %111 = arith.addf %105, %110 : vector<256x16xf32>
    %c2_82 = arith.constant 2 : index
    %c8_83 = arith.constant 8 : index
    %c0_84 = arith.constant 0 : index
    %112 = vector.load %arg9[%c2_82, %c8_83, %c0_84] : memref<18x25x16xf32, #tpu.memory_space<vmem>>, vector<16x16x16xf32>
    %113 = vector.shape_cast %112 : vector<16x16x16xf32> to vector<256x16xf32>
    %114 = vector.extract_strided_slice %68 {offsets = [7, 0, 0], sizes = [1, 16, 16], strides = [1, 1, 1]} : vector<9x16x16xf32> to vector<1x16x16xf32>
    %115 = vector.shape_cast %114 : vector<1x16x16xf32> to vector<16x16xf32>
    %cst_85 = arith.constant dense<0.000000e+00> : vector<256x16xf32>
    %116 = tpu.matmul %113, %115, %cst_85 {dimension_numbers = #tpu.dot_dimension_numbers<[1], [0], [0], [1], [0, 0, 1, 1], [], []>} : vector<256x16xf32>, vector<16x16xf32>, vector<256x16xf32> -> vector<256x16xf32>
    %117 = arith.addf %111, %116 : vector<256x16xf32>
    %c2_86 = arith.constant 2 : index
    %c9_87 = arith.constant 9 : index
    %c0_88 = arith.constant 0 : index
    %118 = vector.load %arg9[%c2_86, %c9_87, %c0_88] : memref<18x25x16xf32, #tpu.memory_space<vmem>>, vector<16x16x16xf32>
    %119 = vector.shape_cast %118 : vector<16x16x16xf32> to vector<256x16xf32>
    %120 = vector.extract_strided_slice %68 {offsets = [8, 0, 0], sizes = [1, 16, 16], strides = [1, 1, 1]} : vector<9x16x16xf32> to vector<1x16x16xf32>
    %121 = vector.shape_cast %120 : vector<1x16x16xf32> to vector<16x16xf32>
    %cst_89 = arith.constant dense<0.000000e+00> : vector<256x16xf32>
    %122 = tpu.matmul %119, %121, %cst_89 {dimension_numbers = #tpu.dot_dimension_numbers<[1], [0], [0], [1], [0, 0, 1, 1], [], []>} : vector<256x16xf32>, vector<16x16xf32>, vector<256x16xf32> -> vector<256x16xf32>
    %123 = arith.addf %117, %122 : vector<256x16xf32>
    %c0_90 = arith.constant 0 : index
    %c0_91 = arith.constant 0 : index
    %124 = vector.load %arg5[%c0_90, %c0_91] : memref<1x16xf32, #tpu.memory_space<vmem>>, vector<1x16xf32>
    %125 = vector.broadcast %124 : vector<1x16xf32> to vector<256x16xf32>
    %126 = arith.addf %123, %125 : vector<256x16xf32>
    %cst_92 = arith.constant 0.000000e+00 : f32
    %127 = vector.broadcast %cst_92 : f32 to vector<256x16xf32>
    %128 = arith.maximumf %126, %127 : vector<256x16xf32>
    %129 = vector.shape_cast %128 : vector<256x16xf32> to vector<16x16x16xf32>
    %c1_93 = arith.constant 1 : index
    %c8_94 = arith.constant 8 : index
    %c0_95 = arith.constant 0 : index
    %130 = vector.load %arg9[%c1_93, %c8_94, %c0_95] : memref<18x25x16xf32, #tpu.memory_space<vmem>>, vector<16x16x16xf32>
    tpu.vector_store %arg9[%c1_93, %c8_94, %c0_95], %129 {strides = array<i32>} : memref<18x25x16xf32, #tpu.memory_space<vmem>>, vector<16x16x16xf32>,
    %c0_96 = arith.constant 0 : index
    %c0_97 = arith.constant 0 : index
    %c0_98 = arith.constant 0 : index
    %131 = vector.load %arg6[%c0_96, %c0_97, %c0_98] : memref<9x16x16xf32, #tpu.memory_space<vmem>>, vector<9x16x16xf32>
    %cst_99 = arith.constant 0.000000e+00 : f32
    %132 = vector.broadcast %cst_99 : f32 to vector<256x16xf32>
    %c0_100 = arith.constant 0 : index
    %c7_101 = arith.constant 7 : index
    %c0_102 = arith.constant 0 : index
    %133 = vector.load %arg9[%c0_100, %c7_101, %c0_102] : memref<18x25x16xf32, #tpu.memory_space<vmem>>, vector<16x16x16xf32>
    %134 = vector.shape_cast %133 : vector<16x16x16xf32> to vector<256x16xf32>
    %135 = vector.extract_strided_slice %131 {offsets = [0, 0, 0], sizes = [1, 16, 16], strides = [1, 1, 1]} : vector<9x16x16xf32> to vector<1x16x16xf32>
    %136 = vector.shape_cast %135 : vector<1x16x16xf32> to vector<16x16xf32>
    %cst_103 = arith.constant dense<0.000000e+00> : vector<256x16xf32>
    %137 = tpu.matmul %134, %136, %cst_103 {dimension_numbers = #tpu.dot_dimension_numbers<[1], [0], [0], [1], [0, 0, 1, 1], [], []>} : vector<256x16xf32>, vector<16x16xf32>, vector<256x16xf32> -> vector<256x16xf32>
    %138 = arith.addf %132, %137 : vector<256x16xf32>
    %c0_104 = arith.constant 0 : index
    %c8_105 = arith.constant 8 : index
    %c0_106 = arith.constant 0 : index
    %139 = vector.load %arg9[%c0_104, %c8_105, %c0_106] : memref<18x25x16xf32, #tpu.memory_space<vmem>>, vector<16x16x16xf32>
    %140 = vector.shape_cast %139 : vector<16x16x16xf32> to vector<256x16xf32>
    %141 = vector.extract_strided_slice %131 {offsets = [1, 0, 0], sizes = [1, 16, 16], strides = [1, 1, 1]} : vector<9x16x16xf32> to vector<1x16x16xf32>
    %142 = vector.shape_cast %141 : vector<1x16x16xf32> to vector<16x16xf32>
    %cst_107 = arith.constant dense<0.000000e+00> : vector<256x16xf32>
    %143 = tpu.matmul %140, %142, %cst_107 {dimension_numbers = #tpu.dot_dimension_numbers<[1], [0], [0], [1], [0, 0, 1, 1], [], []>} : vector<256x16xf32>, vector<16x16xf32>, vector<256x16xf32> -> vector<256x16xf32>
    %144 = arith.addf %138, %143 : vector<256x16xf32>
    %c0_108 = arith.constant 0 : index
    %c9_109 = arith.constant 9 : index
    %c0_110 = arith.constant 0 : index
    %145 = vector.load %arg9[%c0_108, %c9_109, %c0_110] : memref<18x25x16xf32, #tpu.memory_space<vmem>>, vector<16x16x16xf32>
    %146 = vector.shape_cast %145 : vector<16x16x16xf32> to vector<256x16xf32>
    %147 = vector.extract_strided_slice %131 {offsets = [2, 0, 0], sizes = [1, 16, 16], strides = [1, 1, 1]} : vector<9x16x16xf32> to vector<1x16x16xf32>
    %148 = vector.shape_cast %147 : vector<1x16x16xf32> to vector<16x16xf32>
    %cst_111 = arith.constant dense<0.000000e+00> : vector<256x16xf32>
    %149 = tpu.matmul %146, %148, %cst_111 {dimension_numbers = #tpu.dot_dimension_numbers<[1], [0], [0], [1], [0, 0, 1, 1], [], []>} : vector<256x16xf32>, vector<16x16xf32>, vector<256x16xf32> -> vector<256x16xf32>
    %150 = arith.addf %144, %149 : vector<256x16xf32>
    %c1_112 = arith.constant 1 : index
    %c7_113 = arith.constant 7 : index
    %c0_114 = arith.constant 0 : index
    %151 = vector.load %arg9[%c1_112, %c7_113, %c0_114] : memref<18x25x16xf32, #tpu.memory_space<vmem>>, vector<16x16x16xf32>
    %152 = vector.shape_cast %151 : vector<16x16x16xf32> to vector<256x16xf32>
    %153 = vector.extract_strided_slice %131 {offsets = [3, 0, 0], sizes = [1, 16, 16], strides = [1, 1, 1]} : vector<9x16x16xf32> to vector<1x16x16xf32>
    %154 = vector.shape_cast %153 : vector<1x16x16xf32> to vector<16x16xf32>
    %cst_115 = arith.constant dense<0.000000e+00> : vector<256x16xf32>
    %155 = tpu.matmul %152, %154, %cst_115 {dimension_numbers = #tpu.dot_dimension_numbers<[1], [0], [0], [1], [0, 0, 1, 1], [], []>} : vector<256x16xf32>, vector<16x16xf32>, vector<256x16xf32> -> vector<256x16xf32>
    %156 = arith.addf %150, %155 : vector<256x16xf32>
    %c1_116 = arith.constant 1 : index
    %c8_117 = arith.constant 8 : index
    %c0_118 = arith.constant 0 : index
    %157 = vector.load %arg9[%c1_116, %c8_117, %c0_118] : memref<18x25x16xf32, #tpu.memory_space<vmem>>, vector<16x16x16xf32>
    %158 = vector.shape_cast %157 : vector<16x16x16xf32> to vector<256x16xf32>
    %159 = vector.extract_strided_slice %131 {offsets = [4, 0, 0], sizes = [1, 16, 16], strides = [1, 1, 1]} : vector<9x16x16xf32> to vector<1x16x16xf32>
    %160 = vector.shape_cast %159 : vector<1x16x16xf32> to vector<16x16xf32>
    %cst_119 = arith.constant dense<0.000000e+00> : vector<256x16xf32>
    %161 = tpu.matmul %158, %160, %cst_119 {dimension_numbers = #tpu.dot_dimension_numbers<[1], [0], [0], [1], [0, 0, 1, 1], [], []>} : vector<256x16xf32>, vector<16x16xf32>, vector<256x16xf32> -> vector<256x16xf32>
    %162 = arith.addf %156, %161 : vector<256x16xf32>
    %c1_120 = arith.constant 1 : index
    %c9_121 = arith.constant 9 : index
    %c0_122 = arith.constant 0 : index
    %163 = vector.load %arg9[%c1_120, %c9_121, %c0_122] : memref<18x25x16xf32, #tpu.memory_space<vmem>>, vector<16x16x16xf32>
    %164 = vector.shape_cast %163 : vector<16x16x16xf32> to vector<256x16xf32>
    %165 = vector.extract_strided_slice %131 {offsets = [5, 0, 0], sizes = [1, 16, 16], strides = [1, 1, 1]} : vector<9x16x16xf32> to vector<1x16x16xf32>
    %166 = vector.shape_cast %165 : vector<1x16x16xf32> to vector<16x16xf32>
    %cst_123 = arith.constant dense<0.000000e+00> : vector<256x16xf32>
    %167 = tpu.matmul %164, %166, %cst_123 {dimension_numbers = #tpu.dot_dimension_numbers<[1], [0], [0], [1], [0, 0, 1, 1], [], []>} : vector<256x16xf32>, vector<16x16xf32>, vector<256x16xf32> -> vector<256x16xf32>
    %168 = arith.addf %162, %167 : vector<256x16xf32>
    %c2_124 = arith.constant 2 : index
    %c7_125 = arith.constant 7 : index
    %c0_126 = arith.constant 0 : index
    %169 = vector.load %arg9[%c2_124, %c7_125, %c0_126] : memref<18x25x16xf32, #tpu.memory_space<vmem>>, vector<16x16x16xf32>
    %170 = vector.shape_cast %169 : vector<16x16x16xf32> to vector<256x16xf32>
    %171 = vector.extract_strided_slice %131 {offsets = [6, 0, 0], sizes = [1, 16, 16], strides = [1, 1, 1]} : vector<9x16x16xf32> to vector<1x16x16xf32>
    %172 = vector.shape_cast %171 : vector<1x16x16xf32> to vector<16x16xf32>
    %cst_127 = arith.constant dense<0.000000e+00> : vector<256x16xf32>
    %173 = tpu.matmul %170, %172, %cst_127 {dimension_numbers = #tpu.dot_dimension_numbers<[1], [0], [0], [1], [0, 0, 1, 1], [], []>} : vector<256x16xf32>, vector<16x16xf32>, vector<256x16xf32> -> vector<256x16xf32>
    %174 = arith.addf %168, %173 : vector<256x16xf32>
    %c2_128 = arith.constant 2 : index
    %c8_129 = arith.constant 8 : index
    %c0_130 = arith.constant 0 : index
    %175 = vector.load %arg9[%c2_128, %c8_129, %c0_130] : memref<18x25x16xf32, #tpu.memory_space<vmem>>, vector<16x16x16xf32>
    %176 = vector.shape_cast %175 : vector<16x16x16xf32> to vector<256x16xf32>
    %177 = vector.extract_strided_slice %131 {offsets = [7, 0, 0], sizes = [1, 16, 16], strides = [1, 1, 1]} : vector<9x16x16xf32> to vector<1x16x16xf32>
    %178 = vector.shape_cast %177 : vector<1x16x16xf32> to vector<16x16xf32>
    %cst_131 = arith.constant dense<0.000000e+00> : vector<256x16xf32>
    %179 = tpu.matmul %176, %178, %cst_131 {dimension_numbers = #tpu.dot_dimension_numbers<[1], [0], [0], [1], [0, 0, 1, 1], [], []>} : vector<256x16xf32>, vector<16x16xf32>, vector<256x16xf32> -> vector<256x16xf32>
    %180 = arith.addf %174, %179 : vector<256x16xf32>
    %c2_132 = arith.constant 2 : index
    %c9_133 = arith.constant 9 : index
    %c0_134 = arith.constant 0 : index
    %181 = vector.load %arg9[%c2_132, %c9_133, %c0_134] : memref<18x25x16xf32, #tpu.memory_space<vmem>>, vector<16x16x16xf32>
    %182 = vector.shape_cast %181 : vector<16x16x16xf32> to vector<256x16xf32>
    %183 = vector.extract_strided_slice %131 {offsets = [8, 0, 0], sizes = [1, 16, 16], strides = [1, 1, 1]} : vector<9x16x16xf32> to vector<1x16x16xf32>
    %184 = vector.shape_cast %183 : vector<1x16x16xf32> to vector<16x16xf32>
    %cst_135 = arith.constant dense<0.000000e+00> : vector<256x16xf32>
    %185 = tpu.matmul %182, %184, %cst_135 {dimension_numbers = #tpu.dot_dimension_numbers<[1], [0], [0], [1], [0, 0, 1, 1], [], []>} : vector<256x16xf32>, vector<16x16xf32>, vector<256x16xf32> -> vector<256x16xf32>
    %186 = arith.addf %180, %185 : vector<256x16xf32>
    %c0_136 = arith.constant 0 : index
    %c0_137 = arith.constant 0 : index
    %187 = vector.load %arg7[%c0_136, %c0_137] : memref<1x16xf32, #tpu.memory_space<vmem>>, vector<1x16xf32>
    %188 = vector.broadcast %187 : vector<1x16xf32> to vector<256x16xf32>
    %189 = arith.addf %186, %188 : vector<256x16xf32>
    %cst_138 = arith.constant 0.000000e+00 : f32
    %190 = vector.broadcast %cst_138 : f32 to vector<256x16xf32>
    %191 = arith.maximumf %189, %190 : vector<256x16xf32>
    %192 = vector.shape_cast %191 : vector<256x16xf32> to vector<1x16x16x16xf32>
    %c0_139 = arith.constant 0 : index
    %c0_140 = arith.constant 0 : index
    %c0_141 = arith.constant 0 : index
    %c0_142 = arith.constant 0 : index
    %193 = vector.load %arg8[%c0_139, %c0_140, %c0_141, %c0_142] : memref<1x16x16x16xf32, #tpu.memory_space<vmem>>, vector<1x16x16x16xf32>
    tpu.vector_store %arg8[%c0_139, %c0_140, %c0_141, %c0_142], %192 {strides = array<i32>} : memref<1x16x16x16xf32, #tpu.memory_space<vmem>>, vector<1x16x16x16xf32>,
    return
  }
  func.func @transform_0(%arg0: i32) -> (i32, i32, i32, i32) {
    %c0_i32 = arith.constant 0 : i32
    %c0_i32_0 = arith.constant 0 : i32
    %c0_i32_1 = arith.constant 0 : i32
    %c0_i32_2 = arith.constant 0 : i32
    return %arg0, %c0_i32, %c0_i32_0, %c0_i32_1 : i32, i32, i32, i32
  }
  func.func @transform_1(%arg0: i32) -> (i32, i32, i32) {
    %c0_i32 = arith.constant 0 : i32
    %c0_i32_0 = arith.constant 0 : i32
    %c0_i32_1 = arith.constant 0 : i32
    %c0_i32_2 = arith.constant 0 : i32
    return %c0_i32, %c0_i32_0, %c0_i32_1 : i32, i32, i32
  }
  func.func @transform_2(%arg0: i32) -> (i32, i32) {
    %c0_i32 = arith.constant 0 : i32
    %c0_i32_0 = arith.constant 0 : i32
    %c0_i32_1 = arith.constant 0 : i32
    return %c0_i32, %c0_i32_0 : i32, i32
  }
  func.func @transform_3(%arg0: i32) -> (i32, i32, i32) {
    %c0_i32 = arith.constant 0 : i32
    %c0_i32_0 = arith.constant 0 : i32
    %c0_i32_1 = arith.constant 0 : i32
    %c0_i32_2 = arith.constant 0 : i32
    return %c0_i32, %c0_i32_0, %c0_i32_1 : i32, i32, i32
  }
  func.func @transform_4(%arg0: i32) -> (i32, i32) {
    %c0_i32 = arith.constant 0 : i32
    %c0_i32_0 = arith.constant 0 : i32
    %c0_i32_1 = arith.constant 0 : i32
    return %c0_i32, %c0_i32_0 : i32, i32
  }
  func.func @transform_5(%arg0: i32) -> (i32, i32, i32) {
    %c0_i32 = arith.constant 0 : i32
    %c0_i32_0 = arith.constant 0 : i32
    %c0_i32_1 = arith.constant 0 : i32
    %c0_i32_2 = arith.constant 0 : i32
    return %c0_i32, %c0_i32_0, %c0_i32_1 : i32, i32, i32
  }
  func.func @transform_6(%arg0: i32) -> (i32, i32) {
    %c0_i32 = arith.constant 0 : i32
    %c0_i32_0 = arith.constant 0 : i32
    %c0_i32_1 = arith.constant 0 : i32
    return %c0_i32, %c0_i32_0 : i32, i32
  }
  func.func @transform_7(%arg0: i32) -> (i32, i32, i32, i32) {
    %c0_i32 = arith.constant 0 : i32
    %c0_i32_0 = arith.constant 0 : i32
    %c0_i32_1 = arith.constant 0 : i32
    %c0_i32_2 = arith.constant 0 : i32
    return %arg0, %c0_i32, %c0_i32_0, %c0_i32_1 : i32, i32, i32, i32
  }
}

</mosaic_0001>

<bundles_post_ra>
// kernel: shuffle_xception_forward.1
= control target key start
LH: loop header
LB: loop body
LE: loop exit
PB: predicated region body
PF: predicated region fallthrough
CT: control target
= control target key end

     0   :  { %s15178_s24 = smov 0   ;;  %s18128_s0 = inlined_call_operand.vmem [shape: f32[2,16,16,16], index: 0, kind: input, shape index: {}]   ;;  %s18129_s1 = inlined_call_operand.vmem [shape: f32[9,16,16], index: 1, kind: input, shape index: {}]   ;;  %s18130_s2 = inlined_call_operand.vmem [shape: f32[1,16], index: 2, kind: input, shape index: {}]   ;;  %s18131_s3 = inlined_call_operand.vmem [shape: f32[9,16,16], index: 3, kind: input, shape index: {}]   ;;  %s18132_s4 = inlined_call_operand.vmem [shape: f32[1,16], index: 4, kind: input, shape index: {}]   ;;  %s18133_s5 = inlined_call_operand.vmem [shape: f32[9,16,16], index: 5, kind: input, shape index: {}]   ;;  %s18134_s6 = inlined_call_operand.vmem [shape: f32[1,16], index: 6, kind: input, shape index: {}]   ;;  %s18135_s7 = inlined_call_operand.vmem [shape: f32[2,16,16,16], index: 7, kind: output, shape index: {}]  }
   0x1 LB: > { %s11040_s25 = sadd.s32 4294967295, %s15135_s24   ;;  %p11044_p0 = scmp.ge.s32.totalorder %s15135_s24, 1  ;;  %s15135_s24 = sphi %s15178_s24, %s17_s24  }
   0x2   : > { %p237_p1 = scmp.lt.s32.totalorder %s15135_s24, 3 }
   0x4   : > { %p238_p2 = pnand %p11044_p0, %p237_p1 }
   0x6   : > { %241 = sbr.rel (%p238_p2) target bundleno = 2031 (0x7ef), region = 48 }
   0xd   : > { %v420_v0 = vld [vmem:[%s18129_s1 + $0x10] sm:$0xff]  ;;  %v421_v1 = vld [vmem:[%s18129_s1 + $0x18] sm:$0xff]  ;;  %vm279_vm0 = vcmask 130048   ;;  %v426_v2 = vld [vmem:[%s18129_s1 + $0x40] sm:$0xff]  ;;  %p15197_p3 = scmp.lt.s32.totalorder %s11040_s25, 1  ;;  %v15137_v4 = vmov 0.0  }
   0xe   : > { %v15201_v3 = vpack.c.bf16 %v421_v1, %v420_v0  ;;  %281 = vst.msk [vmem:[#allocation2 + $0x8] sm:$0xff] %vm279_vm0, %v15137_v4  ;;  %280 = vst.msk [vmem:[#allocation2] sm:$0xff] %vm279_vm0, %v15137_v4  ;;  %v427_v5 = vld [vmem:[%s18129_s1 + $0x48] sm:$0xff]  ;;  %v418_v6 = vld [vmem:[%s18129_s1] sm:$0xff]  ;;  %vm283_vm1 = vcmask 122880  }
   0xf   : > { %282 = vst.msk [vmem:[#allocation2 + $0x10] sm:$0xff] %vm279_vm0, %v15137_v4  ;;  %285 = vst.msk [vmem:[#allocation2 + $0x20] sm:$0xff] %vm279_vm0, %v15137_v4  ;;  %v419_v7 = vld [vmem:[%s18129_s1 + $0x8] sm:$0xff]  ;;  %v15320_v8 = vpack.c.bf16 %v427_v5, %v426_v2  ;;  %s18521_s25 = smov (!%p15197_p3, %s11040_s25), 1  ;;  %v428_v10 = vld [vmem:[%s18129_s1 + $0x50] sm:$0xff] }
  0x10   : > { %286 = vst.msk [vmem:[#allocation2 + $0x28] sm:$0xff] %vm279_vm0, %v15137_v4  ;;  %287 = vst.msk [vmem:[#allocation2 + $0x30] sm:$0xff] %vm279_vm0, %v15137_v4  ;;  %v14246_v9 = vpack.c.bf16 %v419_v7, %v418_v6  ;;  %v429_v11 = vld [vmem:[%s18129_s1 + $0x58] sm:$0xff]  ;;  %14243 = vmatprep.subr.bf16.mxu1 %v15201_v3  ;;  %s11918_s20 = sshll.u32 %s18521_s25, 8  ;;  %v422_v13 = vld [vmem:[%s18129_s1 + $0x20] sm:$0xff] }
  0x11   : > { %289 = vst.msk [vmem:[#allocation2 + $0x40] sm:$0xff] %vm279_vm0, %v15137_v4  ;;  %290 = vst.msk [vmem:[#allocation2 + $0x48] sm:$0xff] %vm279_vm0, %v15137_v4  ;;  %v15371_v12 = vpack.c.bf16 %v429_v11, %v428_v10  ;;  %14245 = vmatpush3.bf16.msra.mxu1 %v15201_v3  ;;  %14259 = vmatprep.subr.bf16.mxu0 %v15320_v8  ;;  %s15382_s23 = scalar_lea.vmem %s18128_s0, %s11918_s20  ;;  %v423_v14 = vld [vmem:[%s18129_s1 + $0x28] sm:$0xff]  ;;  %v430_v28 = vld [vmem:[%s18129_s1 + $0x60] sm:$0xff]  ;;  %s18028_s26 = scalar_lea.vmem %s18135_s7, %s11918_s20 }
  0x12   : > { %291 = vst.msk [vmem:[#allocation2 + $0x50] sm:$0xff] %vm279_vm0, %v15137_v4  ;;  %293 = vst.msk [vmem:[#allocation2 + $0x60] sm:$0xff] %vm279_vm0, %v15137_v4  ;;  %14261 = vmatpush3.bf16.msra.mxu0 %v15320_v8  ;;  %14247 = vmatprep.subr.bf16.mxu1 %v14246_v9  ;;  %v353_v15 = vld [vmem:[%s15382_s23] sm:$0xff]  ;;  %v354_v16 = vld [vmem:[%s15382_s23 + $0x8] sm:$0xff]  ;;  %v15404_v24 = vpack.c.bf16 %v423_v14, %v422_v13 }
  0x13   : > { %294 = vst.msk [vmem:[#allocation2 + $0x68] sm:$0xff] %vm279_vm0, %v15137_v4  ;;  %295 = vst.msk [vmem:[#allocation2 + $0x70] sm:$0xff] %vm279_vm0, %v15137_v4  ;;  %14263 = vmatprep.subr.bf16.mxu0 %v15371_v12  ;;  %v355_v17 = vld [vmem:[%s15382_s23 + $0x10] sm:$0xff]  ;;  %v356_v18 = vld [vmem:[%s15382_s23 + $0x18] sm:$0xff] }
  0x14   : > { %297 = vst.msk [vmem:[#allocation2 + $0x80] sm:$0xff] %vm279_vm0, %v15137_v4  ;;  %298 = vst.msk [vmem:[#allocation2 + $0x88] sm:$0xff] %vm279_vm0, %v15137_v4  ;;  %v357_v19 = vld [vmem:[%s15382_s23 + $0x20] sm:$0xff]  ;;  %v358_v20 = vld [vmem:[%s15382_s23 + $0x28] sm:$0xff] }
  0x15   : > { %299 = vst.msk [vmem:[#allocation2 + $0x90] sm:$0xff] %vm279_vm0, %v15137_v4  ;;  %301 = vst.msk [vmem:[#allocation2 + $0xa0] sm:$0xff] %vm279_vm0, %v15137_v4  ;;  %v468_v21 = vld [vmem:[#allocation2 + $0x8] sm:$0xff]  ;;  %v359_v23 = vld [vmem:[%s15382_s23 + $0x30] sm:$0xff] }
  0x16   : > { %302 = vst.msk [vmem:[#allocation2 + $0xa8] sm:$0xff] %vm279_vm0, %v15137_v4  ;;  %303 = vst.msk [vmem:[#allocation2 + $0xb0] sm:$0xff] %vm279_vm0, %v15137_v4  ;;  %v469_v22 = vld [vmem:[#allocation2 + $0x10] sm:$0xff]  ;;  %12842 = vmatprep.mubr.msk.f32.mxu1 %vm279_vm0, %v468_v21  ;;  %v360_v25 = vld [vmem:[%s15382_s23 + $0x38] sm:$0xff] }
  0x17   : > { %305 = vst.msk [vmem:[#allocation2 + $0xc0] sm:$0xff] %vm279_vm0, %v15137_v4  ;;  %306 = vst.msk [vmem:[#allocation2 + $0xc8] sm:$0xff] %vm279_vm0, %v15137_v4  ;;  %v361_v26 = vld [vmem:[%s15382_s23 + $0x40] sm:$0xff]  ;;  %v362_v27 = vld [vmem:[%s15382_s23 + $0x48] sm:$0xff]  ;;  %12843 = vmatmul.mubr.msk.f32.vlgmr.msra.gmra.mrb[0].mxu1 %vm279_vm0, %v469_v22 }
  0x18   : > { %307 = vst.msk [vmem:[#allocation2 + $0xd0] sm:$0xff] %vm279_vm0, %v15137_v4  ;;  %309 = vst.msk [vmem:[#allocation2 + $0xe0] sm:$0xff] %vm279_vm0, %v15137_v4  ;;  %v431_v29 = vld [vmem:[%s18129_s1 + $0x68] sm:$0xff]  ;;  %v363_v30 = vld [vmem:[%s15382_s23 + $0x50] sm:$0xff]  ;;  %14249 = vmatpush3.bf16.msra.mxu1 %v14246_v9 }
  0x19   : > { %310 = vst.msk [vmem:[#allocation2 + $0xe8] sm:$0xff] %vm279_vm0, %v15137_v4  ;;  %311 = vst.msk [vmem:[#allocation2 + $0xf0] sm:$0xff] %vm279_vm0, %v15137_v4  ;;  %v364_v31 = vld [vmem:[%s15382_s23 + $0x58] sm:$0xff]  ;;  %v365_v32 = vld [vmem:[%s15382_s23 + $0x60] sm:$0xff]  ;;  %14251 = vmatprep.subr.bf16.mxu1 %v15404_v24  ;;  %v15445_v45 = vpack.c.bf16 %v431_v29, %v430_v28 }
  0x1a   : > { %313 = vst.msk [vmem:[#allocation2 + $0x100] sm:$0xff] %vm279_vm0, %v15137_v4  ;;  %314 = vst.msk [vmem:[#allocation2 + $0x108] sm:$0xff] %vm279_vm0, %v15137_v4  ;;  %v366_v33 = vld [vmem:[%s15382_s23 + $0x68] sm:$0xff]  ;;  %v367_v34 = vld [vmem:[%s15382_s23 + $0x70] sm:$0xff] }
  0x1b   : > { %315 = vst.msk [vmem:[#allocation2 + $0x110] sm:$0xff] %vm279_vm0, %v15137_v4  ;;  %317 = vst.msk [vmem:[#allocation2 + $0x120] sm:$0xff] %vm279_vm0, %v15137_v4  ;;  %v368_v35 = vld [vmem:[%s15382_s23 + $0x78] sm:$0xff]  ;;  %v369_v36 = vld [vmem:[%s15382_s23 + $0x80] sm:$0xff] }
  0x1c   : > { %318 = vst.msk [vmem:[#allocation2 + $0x128] sm:$0xff] %vm279_vm0, %v15137_v4  ;;  %319 = vst.msk [vmem:[#allocation2 + $0x130] sm:$0xff] %vm279_vm0, %v15137_v4  ;;  %v370_v37 = vld [vmem:[%s15382_s23 + $0x88] sm:$0xff]  ;;  %v371_v38 = vld [vmem:[%s15382_s23 + $0x90] sm:$0xff] }
  0x1d   : > { %321 = vst.msk [vmem:[#allocation2 + $0x140] sm:$0xff] %vm279_vm0, %v15137_v4  ;;  %322 = vst.msk [vmem:[#allocation2 + $0x148] sm:$0xff] %vm279_vm0, %v15137_v4  ;;  %v372_v39 = vld [vmem:[%s15382_s23 + $0x98] sm:$0xff]  ;;  %v373_v40 = vld [vmem:[%s15382_s23 + $0xa0] sm:$0xff] }
  0x1e   : > { %323 = vst.msk [vmem:[#allocation2 + $0x150] sm:$0xff] %vm279_vm0, %v15137_v4  ;;  %325 = vst.msk [vmem:[#allocation2 + $0x160] sm:$0xff] %vm279_vm0, %v15137_v4  ;;  %v374_v41 = vld [vmem:[%s15382_s23 + $0xa8] sm:$0xff]  ;;  %v375_v50 = vld [vmem:[%s15382_s23 + $0xb0] sm:$0xff] }
  0x1f   : > { %326 = vst.msk [vmem:[#allocation2 + $0x168] sm:$0xff] %vm279_vm0, %v15137_v4  ;;  %327 = vst.msk [vmem:[#allocation2 + $0x170] sm:$0xff] %vm279_vm0, %v15137_v4  ;;  %v376_v51 = vld [vmem:[%s15382_s23 + $0xb8] sm:$0xff]  ;;  %v377_v52 = vld [vmem:[%s15382_s23 + $0xc0] sm:$0xff] }
  0x20   : > { %329 = vst.msk [vmem:[#allocation2 + $0x180] sm:$0xff] %vm279_vm0, %v15137_v4  ;;  %330 = vst.msk [vmem:[#allocation2 + $0x188] sm:$0xff] %vm279_vm0, %v15137_v4  ;;  %v378_v54 = vld [vmem:[%s15382_s23 + $0xc8] sm:$0xff]  ;;  %v379_v56 = vld [vmem:[%s15382_s23 + $0xd0] sm:$0xff] }
  0x21   : > { %331 = vst.msk [vmem:[#allocation2 + $0x190] sm:$0xff] %vm279_vm0, %v15137_v4  ;;  %333 = vst.msk [vmem:[#allocation2 + $0x1a0] sm:$0xff] %vm279_vm0, %v15137_v4  ;;  %v380_v57 = vld [vmem:[%s15382_s23 + $0xd8] sm:$0xff]  ;;  %v381_v58 = vld [vmem:[%s15382_s23 + $0xe0] sm:$0xff] }
  0x22   : > { %334 = vst.msk [vmem:[#allocation2 + $0x1a8] sm:$0xff] %vm279_vm0, %v15137_v4  ;;  %335 = vst.msk [vmem:[#allocation2 + $0x1b0] sm:$0xff] %vm279_vm0, %v15137_v4  ;;  %v382_v59 = vld [vmem:[%s15382_s23 + $0xe8] sm:$0xff]  ;;  %v383_v5 = vld [vmem:[%s15382_s23 + $0xf0] sm:$0xff] }
  0x23   : > { %337 = vst.msk [vmem:[#allocation2 + $0x1c0] sm:$0xff] %vm279_vm0, %v15137_v4  ;;  %338 = vst.msk [vmem:[#allocation2 + $0x1c8] sm:$0xff] %vm279_vm0, %v15137_v4  ;;  %v384_v6 = vld [vmem:[%s15382_s23 + $0xf8] sm:$0xff]  ;;  %v432_v7 = vld [vmem:[%s18129_s1 + $0x70] sm:$0xff] }
  0x24   : > { %339 = vst.msk [vmem:[#allocation2 + $0x1d0] sm:$0xff] %vm279_vm0, %v15137_v4  ;;  %341 = vst.msk [vmem:[#allocation2 + $0x1e0] sm:$0xff] %vm279_vm0, %v15137_v4  ;;  %v433_v9 = vld [vmem:[%s18129_s1 + $0x78] sm:$0xff] }
  0x25   : > { %342 = vst.msk [vmem:[#allocation2 + $0x1e8] sm:$0xff] %vm279_vm0, %v15137_v4  ;;  %343 = vst.msk [vmem:[#allocation2 + $0x1f0] sm:$0xff] %vm279_vm0, %v15137_v4  ;;  %v15578_v13 = vpack.c.bf16 %v433_v9, %v432_v7 }
  0x26   : > { %345 = vst.msk [vmem:[#allocation2 + $0x200] sm:$0xff] %vm279_vm0, %v15137_v4  ;;  %346 = vst.msk [vmem:[#allocation2 + $0x208] sm:$0xff] %vm279_vm0, %v15137_v4 }
  0x27   : > { %347 = vst.msk [vmem:[#allocation2 + $0x210] sm:$0xff] %vm279_vm0, %v15137_v4  ;;  %349 = vst.msk [vmem:[#allocation2 + $0x220] sm:$0xff] %vm279_vm0, %v15137_v4 }
  0x28   : > { %350 = vst.msk [vmem:[#allocation2 + $0x228] sm:$0xff] %vm279_vm0, %v15137_v4  ;;  %351 = vst.msk [vmem:[#allocation2 + $0x230] sm:$0xff] %vm279_vm0, %v15137_v4 }
  0x29   : > { %288 = vst.msk [vmem:[#allocation2 + $0x38] sm:$0x1] %vm283_vm1, %v15137_v4  ;;  %284 = vst.msk [vmem:[#allocation2 + $0x18] sm:$0x1] %vm283_vm1, %v15137_v4 }
  0x2a   : > { %292 = vst.msk [vmem:[#allocation2 + $0x58] sm:$0x1] %vm283_vm1, %v15137_v4  ;;  %296 = vst.msk [vmem:[#allocation2 + $0x78] sm:$0x1] %vm283_vm1, %v15137_v4 }
  0x2b   : > { %300 = vst.msk [vmem:[#allocation2 + $0x98] sm:$0x1] %vm283_vm1, %v15137_v4  ;;  %304 = vst.msk [vmem:[#allocation2 + $0xb8] sm:$0x1] %vm283_vm1, %v15137_v4 }
  0x2c   : > { %308 = vst.msk [vmem:[#allocation2 + $0xd8] sm:$0x1] %vm283_vm1, %v15137_v4  ;;  %312 = vst.msk [vmem:[#allocation2 + $0xf8] sm:$0x1] %vm283_vm1, %v15137_v4 }
  0x2d   : > { %316 = vst.msk [vmem:[#allocation2 + $0x118] sm:$0x1] %vm283_vm1, %v15137_v4  ;;  %320 = vst.msk [vmem:[#allocation2 + $0x138] sm:$0x1] %vm283_vm1, %v15137_v4 }
  0x2e   : > { %324 = vst.msk [vmem:[#allocation2 + $0x158] sm:$0x1] %vm283_vm1, %v15137_v4  ;;  %328 = vst.msk [vmem:[#allocation2 + $0x178] sm:$0x1] %vm283_vm1, %v15137_v4 }
  0x2f   : > { %332 = vst.msk [vmem:[#allocation2 + $0x198] sm:$0x1] %vm283_vm1, %v15137_v4  ;;  %336 = vst.msk [vmem:[#allocation2 + $0x1b8] sm:$0x1] %vm283_vm1, %v15137_v4 }
  0x30   : > { %340 = vst.msk [vmem:[#allocation2 + $0x1d8] sm:$0x1] %vm283_vm1, %v15137_v4  ;;  %344 = vst.msk [vmem:[#allocation2 + $0x1f8] sm:$0x1] %vm283_vm1, %v15137_v4 }
  0x31   : > { %348 = vst.msk [vmem:[#allocation2 + $0x218] sm:$0x1] %vm283_vm1, %v15137_v4  ;;  %352 = vst.msk [vmem:[#allocation2 + $0x238] sm:$0x1] %vm283_vm1, %v15137_v4 }
  0x32   : > { %386 = vst.msk [vmem:[#allocation2 + $0x28] sm:$0xff] %vm279_vm0, %v353_v15  ;;  %387 = vst.msk [vmem:[#allocation2 + $0x30] sm:$0xff] %vm279_vm0, %v354_v16 }
  0x33   : > { %388 = vst.msk [vmem:[#allocation2 + $0x48] sm:$0xff] %vm279_vm0, %v355_v17  ;;  %389 = vst.msk [vmem:[#allocation2 + $0x50] sm:$0xff] %vm279_vm0, %v356_v18 }
  0x34   : > { %390 = vst.msk [vmem:[#allocation2 + $0x68] sm:$0xff] %vm279_vm0, %v357_v19  ;;  %391 = vst.msk [vmem:[#allocation2 + $0x70] sm:$0xff] %vm279_vm0, %v358_v20 }
  0x35   : > { %392 = vst.msk [vmem:[#allocation2 + $0x88] sm:$0xff] %vm279_vm0, %v359_v23  ;;  %393 = vst.msk [vmem:[#allocation2 + $0x90] sm:$0xff] %vm279_vm0, %v360_v25 }
  0x36   : > { %394 = vst.msk [vmem:[#allocation2 + $0xa8] sm:$0xff] %vm279_vm0, %v361_v26  ;;  %395 = vst.msk [vmem:[#allocation2 + $0xb0] sm:$0xff] %vm279_vm0, %v362_v27 }
  0x37   : > { %396 = vst.msk [vmem:[#allocation2 + $0xc8] sm:$0xff] %vm279_vm0, %v363_v30  ;;  %397 = vst.msk [vmem:[#allocation2 + $0xd0] sm:$0xff] %vm279_vm0, %v364_v31 }
  0x38   : > { %398 = vst.msk [vmem:[#allocation2 + $0xe8] sm:$0xff] %vm279_vm0, %v365_v32  ;;  %399 = vst.msk [vmem:[#allocation2 + $0xf0] sm:$0xff] %vm279_vm0, %v366_v33 }
  0x39   : > { %400 = vst.msk [vmem:[#allocation2 + $0x108] sm:$0xff] %vm279_vm0, %v367_v34  ;;  %401 = vst.msk [vmem:[#allocation2 + $0x110] sm:$0xff] %vm279_vm0, %v368_v35  ;;  %v470_v42 = vld [vmem:[#allocation2 + $0x28] sm:$0xff]  ;;  %v471_v43 = vld [vmem:[#allocation2 + $0x30] sm:$0xff] }
  0x3a   : > { %402 = vst.msk [vmem:[#allocation2 + $0x128] sm:$0xff] %vm279_vm0, %v369_v36  ;;  %403 = vst.msk [vmem:[#allocation2 + $0x130] sm:$0xff] %vm279_vm0, %v370_v37  ;;  %v15443_v44 = vld [vmem:[#allocation2 + $0x48] sm:$0xff]  ;;  %12845 = vmatprep.mubr.msk.f32.mxu1 %vm279_vm0, %v470_v42  ;;  %13050 = vmatprep.mubr.msk.f32.mxu0 %vm279_vm0, %v470_v42  ;;  %v15457_v46 = vld [vmem:[#allocation2 + $0x50] sm:$0xff] }
  0x3b   : > { %404 = vst.msk [vmem:[#allocation2 + $0x148] sm:$0xff] %vm279_vm0, %v371_v38  ;;  %405 = vst.msk [vmem:[#allocation2 + $0x150] sm:$0xff] %vm279_vm0, %v372_v39  ;;  %12846 = vmatmul.mubr.msk.f32.gmra.mrb[2].mxu1 %vm279_vm0, %v471_v43  ;;  %13051 = vmatmul.mubr.msk.f32.vlgmr.msra.gmra.mrb[0].mxu0 %vm279_vm0, %v471_v43  ;;  %v15461_v47 = vld [vmem:[#allocation2 + $0x68] sm:$0xff]  ;;  %v15472_v48 = vld [vmem:[#allocation2 + $0x70] sm:$0xff] }
  0x3c   : > { %406 = vst.msk [vmem:[#allocation2 + $0x168] sm:$0xff] %vm279_vm0, %v373_v40  ;;  %407 = vst.msk [vmem:[#allocation2 + $0x170] sm:$0xff] %vm279_vm0, %v374_v41  ;;  %14265 = vmatpush3.bf16.msra.mxu0 %v15371_v12  ;;  %12848 = vmatprep.mubr.msk.f32.mxu1 %vm279_vm0, %v15443_v44  ;;  %v15474_v49 = vld [vmem:[#allocation2 + $0x88] sm:$0xff]  ;;  %v15488_v53 = vld [vmem:[#allocation2 + $0x90] sm:$0xff] }
  0x3d   : > { %13053 = vmatprep.mubr.msk.f32.mxu0 %vm279_vm0, %v15443_v44  ;;  %14267 = vmatprep.subr.bf16.mxu0 %v15445_v45  ;;  %408 = vst.msk [vmem:[#allocation2 + $0x188] sm:$0xff] %vm279_vm0, %v375_v50  ;;  %409 = vst.msk [vmem:[#allocation2 + $0x190] sm:$0xff] %vm279_vm0, %v376_v51  ;;  %v15493_v55 = vld [vmem:[#allocation2 + $0xa8] sm:$0xff]  ;;  %v15511_v60 = vld [vmem:[#allocation2 + $0xb0] sm:$0xff] }
  0x3e   : > { %410 = vst.msk [vmem:[#allocation2 + $0x1a8] sm:$0xff] %vm279_vm0, %v377_v52  ;;  %411 = vst.msk [vmem:[#allocation2 + $0x1b0] sm:$0xff] %vm279_vm0, %v378_v54  ;;  %v15514_v61 = vld [vmem:[#allocation2 + $0xc8] sm:$0xff]  ;;  %v15524_v62 = vld [vmem:[#allocation2 + $0xd0] sm:$0xff] }
  0x3f   : > { %12849 = vmatmul.mubr.msk.f32.gmra.mrb[4].mxu1 %vm279_vm0, %v15457_v46  ;;  %13054 = vmatmul.mubr.msk.f32.gmra.mrb[2].mxu0 %vm279_vm0, %v15457_v46  ;;  %412 = vst.msk [vmem:[#allocation2 + $0x1c8] sm:$0xff] %vm279_vm0, %v379_v56  ;;  %413 = vst.msk [vmem:[#allocation2 + $0x1d0] sm:$0xff] %vm279_vm0, %v380_v57  ;;  %v15526_v63 = vld [vmem:[#allocation2 + $0xe8] sm:$0xff]  ;;  %v15536_v0 = vld [vmem:[#allocation2 + $0xf0] sm:$0xff] }
  0x40   : > { %12851 = vmatprep.mubr.msk.f32.mxu1 %vm279_vm0, %v15461_v47  ;;  %13056 = vmatprep.mubr.msk.f32.mxu0 %vm279_vm0, %v15461_v47  ;;  %414 = vst.msk [vmem:[#allocation2 + $0x1e8] sm:$0xff] %vm279_vm0, %v381_v58  ;;  %415 = vst.msk [vmem:[#allocation2 + $0x1f0] sm:$0xff] %vm279_vm0, %v382_v59  ;;  %v15538_v1 = vld [vmem:[#allocation2 + $0x108] sm:$0xff]  ;;  %v15548_v2 = vld [vmem:[#allocation2 + $0x110] sm:$0xff] }
  0x41   : > { %18305 = vst [vmem:[#allocation3_spill] sm:$0xff] %v15538_v1  ;;  %18306 = vst [vmem:[#allocation4_spill] sm:$0xff] %v15548_v2  ;;  %v15550_v3 = vld [vmem:[#allocation2 + $0x29] sm:$0xff]  ;;  %v15574_v11 = vld [vmem:[#allocation2 + $0x31] sm:$0xff] }
  0x42   : > { %v15552_v4 = vld [vmem:[#allocation2 + $0x128] sm:$0xff]  ;;  %416 = vst.msk [vmem:[#allocation2 + $0x208] sm:$0xff] %vm279_vm0, %v383_v5  ;;  %417 = vst.msk [vmem:[#allocation2 + $0x210] sm:$0xff] %vm279_vm0, %v384_v6  ;;  %v15572_v10 = vld [vmem:[#allocation2 + $0x130] sm:$0xff] }
  0x43   : > { %12852 = vmatmul.mubr.msk.f32.gmra.mrb[6].mxu1 %vm279_vm0, %v15472_v48  ;;  %13057 = vmatmul.mubr.msk.f32.gmra.mrb[4].mxu0 %vm279_vm0, %v15472_v48  ;;  %18307 = vst [vmem:[#allocation5_spill] sm:$0xff] %v15552_v4  ;;  %18308 = vst [vmem:[#allocation6_spill] sm:$0xff] %v15572_v10  ;;  %v15576_v12 = vld [vmem:[#allocation2 + $0x148] sm:$0xff]  ;;  %v15589_v15 = vld [vmem:[#allocation2 + $0x150] sm:$0xff] }
  0x44   : > { %12854 = vmatprep.mubr.msk.f32.mxu1 %vm279_vm0, %v15474_v49  ;;  %13059 = vmatprep.mubr.msk.f32.mxu0 %vm279_vm0, %v15474_v49  ;;  %18309 = vst [vmem:[#allocation7_spill] sm:$0xff] %v15576_v12  ;;  %v15580_v14 = vld [vmem:[#allocation2 + $0x49] sm:$0xff]  ;;  %18310 = vst [vmem:[#allocation8_spill] sm:$0xff] %v15589_v15  ;;  %v15591_v16 = vld [vmem:[#allocation2 + $0x51] sm:$0xff] }
  0x45   : > { %v15595_v17 = vld [vmem:[#allocation2 + $0x168] sm:$0xff]  ;;  %v15608_v19 = vld [vmem:[#allocation2 + $0x170] sm:$0xff]  ;;  %v425_v41 = vld [vmem:[%s18129_s1 + $0x38] sm:$0xff] }
  0x46   : > { %18311 = vst [vmem:[#allocation9_spill] sm:$0xff] %v15595_v17  ;;  %v15597_v18 = vld [vmem:[#allocation2 + $0x69] sm:$0xff]  ;;  %18312 = vst [vmem:[#allocation10_spill] sm:$0xff] %v15608_v19  ;;  %v15610_v20 = vld [vmem:[#allocation2 + $0x71] sm:$0xff] }
  0x47   : > { %12855 = vmatmul.mubr.msk.f32.gmra.mrb[8].mxu1 %vm279_vm0, %v15488_v53  ;;  %13060 = vmatmul.mubr.msk.f32.gmra.mrb[6].mxu0 %vm279_vm0, %v15488_v53  ;;  %v15612_v21 = vld [vmem:[#allocation2 + $0x188] sm:$0xff]  ;;  %v15624_v23 = vld [vmem:[#allocation2 + $0x190] sm:$0xff] }
  0x48   : > { %12857 = vmatprep.mubr.msk.f32.mxu1 %vm279_vm0, %v15493_v55  ;;  %13062 = vmatprep.mubr.msk.f32.mxu0 %vm279_vm0, %v15493_v55  ;;  %18313 = vst [vmem:[#allocation11_spill] sm:$0xff] %v15612_v21  ;;  %v15614_v22 = vld [vmem:[#allocation2 + $0x89] sm:$0xff]  ;;  %18314 = vst [vmem:[#allocation12_spill] sm:$0xff] %v15624_v23  ;;  %v15626_v25 = vld [vmem:[#allocation2 + $0x91] sm:$0xff] }
  0x49   : > { %v15628_v26 = vld [vmem:[#allocation2 + $0x1a8] sm:$0xff]  ;;  %v15640_v28 = vld [vmem:[#allocation2 + $0x1b0] sm:$0xff] }
  0x4a   : > { %18315 = vst [vmem:[#allocation13_spill] sm:$0xff] %v15628_v26  ;;  %v15630_v27 = vld [vmem:[#allocation2 + $0xa9] sm:$0xff]  ;;  %18316 = vst [vmem:[#allocation14_spill] sm:$0xff] %v15640_v28  ;;  %v15642_v29 = vld [vmem:[#allocation2 + $0xb1] sm:$0xff] }
  0x4b   : > { %12858 = vmatmul.mubr.msk.f32.gmra.mrb[10].mxu1 %vm279_vm0, %v15511_v60  ;;  %13063 = vmatmul.mubr.msk.f32.gmra.mrb[8].mxu0 %vm279_vm0, %v15511_v60  ;;  %v15644_v30 = vld [vmem:[#allocation2 + $0x1c8] sm:$0xff]  ;;  %v15656_v32 = vld [vmem:[#allocation2 + $0x1d0] sm:$0xff] }
  0x4c   : > { %12860 = vmatprep.mubr.msk.f32.mxu1 %vm279_vm0, %v15514_v61  ;;  %13065 = vmatprep.mubr.msk.f32.mxu0 %vm279_vm0, %v15514_v61  ;;  %18317 = vst [vmem:[#allocation15_spill] sm:$0xff] %v15644_v30  ;;  %v15646_v31 = vld [vmem:[#allocation2 + $0xc9] sm:$0xff]  ;;  %18318 = vst [vmem:[#allocation16_spill] sm:$0xff] %v15656_v32  ;;  %v15658_v33 = vld [vmem:[#allocation2 + $0xd1] sm:$0xff] }
  0x4d   : > { %v15660_v34 = vld [vmem:[#allocation2 + $0x1e8] sm:$0xff]  ;;  %v15672_v36 = vld [vmem:[#allocation2 + $0x1f0] sm:$0xff] }
  0x4e   : > { %18319 = vst [vmem:[#allocation17_spill] sm:$0xff] %v15660_v34  ;;  %v15662_v35 = vld [vmem:[#allocation2 + $0xe9] sm:$0xff]  ;;  %18320 = vst [vmem:[#allocation18_spill] sm:$0xff] %v15672_v36  ;;  %v15674_v37 = vld [vmem:[#allocation2 + $0xf1] sm:$0xff] }
  0x4f   : > { %12861 = vmatmul.mubr.msk.f32.gmra.mrb[12].mxu1 %vm279_vm0, %v15524_v62  ;;  %13066 = vmatmul.mubr.msk.f32.gmra.mrb[10].mxu0 %vm279_vm0, %v15524_v62  ;;  %v436_v38 = vld [vmem:[#allocation2 + $0x7] sm:$0xff]  ;;  %v424_v40 = vld [vmem:[%s18129_s1 + $0x30] sm:$0xff] }
  0x50   : > { %12863 = vmatprep.mubr.msk.f32.mxu1 %vm279_vm0, %v15526_v63  ;;  %13068 = vmatprep.mubr.msk.f32.mxu0 %vm279_vm0, %v15526_v63  ;;  %v15676_v39 = vld [vmem:[#allocation2 + $0x109] sm:$0xff]  ;;  %v15691_v43 = vld [vmem:[#allocation2 + $0x111] sm:$0xff]  ;;  %v15697_v51 = vpack.c.bf16 %v425_v41, %v424_v40 }
  0x51   : > { %v437_v42 = vld [vmem:[#allocation2 + $0xf] sm:$0xff]  ;;  %v15711_v56 = vld [vmem:[#allocation2 + $0x47] sm:$0xff] }
  0x52   : > { %v15695_v50 = vld [vmem:[#allocation2 + $0x129] sm:$0xff]  ;;  %v15708_v54 = vld [vmem:[#allocation2 + $0x131] sm:$0xff]  ;;  %18323 = vst [vmem:[#allocation21_spill] sm:$0xff] %v15711_v56 }
  0x53   : > { %12864 = vmatmul.mubr.msk.f32.gmra.mrb[14].mxu1 %vm279_vm0, %v15536_v0  ;;  %13069 = vmatmul.mubr.msk.f32.gmra.mrb[12].mxu0 %vm279_vm0, %v15536_v0  ;;  %v15706_v52 = vld [vmem:[#allocation2 + $0x2f] sm:$0xff]  ;;  %v15728_v59 = vld [vmem:[#allocation2 + $0x67] sm:$0xff] }
  0x54   : > { %12866 = vmatprep.mubr.msk.f32.mxu1 %vm279_vm0, %v15538_v1  ;;  %13071 = vmatprep.mubr.msk.f32.mxu0 %vm279_vm0, %v15538_v1  ;;  %18322 = vst [vmem:[#allocation20_spill] sm:$0xff] %v15706_v52  ;;  %v15713_v57 = vld [vmem:[#allocation2 + $0x149] sm:$0xff]  ;;  %v15742_v7 = vld [vmem:[#allocation2 + $0x171] sm:$0xff] }
  0x55   : > { %v15724_v58 = vld [vmem:[#allocation2 + $0x4f] sm:$0xff]  ;;  %v15744_v9 = vld [vmem:[#allocation2 + $0x87] sm:$0xff] }
  0x56   : > { %v15730_v5 = vld [vmem:[#allocation2 + $0x169] sm:$0xff]  ;;  %18325 = vst [vmem:[#allocation23_spill] sm:$0xff] %v15744_v9  ;;  %v15758_v41 = vld [vmem:[#allocation2 + $0x191] sm:$0xff] }
  0x57   : > { %12867 = vmatmul.mubr.msk.f32.gmra.mrb[16].mxu1 %vm279_vm0, %v15548_v2  ;;  %13072 = vmatmul.mubr.msk.f32.gmra.mrb[14].mxu0 %vm279_vm0, %v15548_v2  ;;  %v15740_v6 = vld [vmem:[#allocation2 + $0x6f] sm:$0xff]  ;;  %v434_v2 = vld [vmem:[%s18129_s1 + $0x80] sm:$0xff] }
  0x58   : > { %12869 = vmatprep.mubr.msk.f32.mxu1 %vm279_vm0, %v15552_v4  ;;  %13102 = vmatprep.mubr.msk.f32.mxu0 %vm279_vm0, %v15550_v3  ;;  %18324 = vst [vmem:[#allocation22_spill] sm:$0xff] %v15740_v6  ;;  %v15756_v40 = vld [vmem:[#allocation2 + $0x8f] sm:$0xff]  ;;  %v15842_v1 = vld [vmem:[#allocation2 + $0x147] sm:$0xff] }
  0x59   : > { %18326 = vst [vmem:[#allocation24_spill] sm:$0xff] %v15756_v40  ;;  %v15822_v4 = vld [vmem:[#allocation2 + $0x211] sm:$0xff] }
  0x5a   : > { %18335 = vst [vmem:[#allocation33_spill] sm:$0xff] %v15822_v4 }
  0x5b   : > { %12870 = vmatmul.mubr.msk.f32.gmra.mrb[18].mxu1 %vm279_vm0, %v15572_v10  ;;  %13103 = vmatmul.mubr.msk.f32.vlgmr.msra.gmra.mrb[0].mxu0 %vm279_vm0, %v15574_v11  ;;  %v15810_v10 = vld [vmem:[#allocation2 + $0x209] sm:$0xff] }
  0x5c   : > { %14269 = vmatpush3.bf16.msra.mxu0 %v15445_v45  ;;  %12872 = vmatprep.mubr.msk.f32.mxu1 %vm279_vm0, %v15576_v12  ;;  %v15693_v45 = vld [vmem:[#allocation2 + $0x27] sm:$0xff]  ;;  %18334 = vst [vmem:[#allocation32_spill] sm:$0xff] %v15810_v10 }
  0x5d   : > { %13105 = vmatprep.mubr.msk.f32.mxu0 %vm279_vm0, %v15580_v14  ;;  %14271 = vmatprep.subr.bf16.mxu0 %v15578_v13  ;;  %18321 = vst [vmem:[#allocation19_spill] sm:$0xff] %v15693_v45  ;;  %v15808_v12 = vld [vmem:[#allocation2 + $0x107] sm:$0xff] }
  0x5f   : > { %12873 = vmatmul.mubr.msk.f32.gmra.mrb[20].mxu1 %vm279_vm0, %v15589_v15  ;;  %13106 = vmatmul.mubr.msk.f32.gmra.mrb[2].mxu0 %vm279_vm0, %v15591_v16  ;;  %v15806_v15 = vld [vmem:[#allocation2 + $0x1f1] sm:$0xff] }
  0x60   : > { %12875 = vmatprep.mubr.msk.f32.mxu1 %vm279_vm0, %v15595_v17  ;;  %13108 = vmatprep.mubr.msk.f32.mxu0 %vm279_vm0, %v15597_v18  ;;  %v15804_v17 = vld [vmem:[#allocation2 + $0xef] sm:$0xff]  ;;  %18333 = vst [vmem:[#allocation31_spill] sm:$0xff] %v15806_v15 }
  0x61   : > { %18332 = vst [vmem:[#allocation30_spill] sm:$0xff] %v15804_v17 }
  0x63   : > { %12876 = vmatmul.mubr.msk.f32.gmra.mrb[22].mxu1 %vm279_vm0, %v15608_v19  ;;  %13109 = vmatmul.mubr.msk.f32.gmra.mrb[4].mxu0 %vm279_vm0, %v15610_v20  ;;  %v15794_v19 = vld [vmem:[#allocation2 + $0x1e9] sm:$0xff] }
  0x64   : > { %12878 = vmatprep.mubr.msk.f32.mxu1 %vm279_vm0, %v15612_v21  ;;  %13111 = vmatprep.mubr.msk.f32.mxu0 %vm279_vm0, %v15614_v22  ;;  %v15792_v21 = vld [vmem:[#allocation2 + $0xe7] sm:$0xff]  ;;  %18331 = vst [vmem:[#allocation29_spill] sm:$0xff] %v15794_v19 }
  0x67   : > { %12879 = vmatmul.mubr.msk.f32.gmra.mrb[24].mxu1 %vm279_vm0, %v15624_v23  ;;  %13112 = vmatmul.mubr.msk.f32.gmra.mrb[6].mxu0 %vm279_vm0, %v15626_v25  ;;  %v15790_v23 = vld [vmem:[#allocation2 + $0x1d1] sm:$0xff] }
  0x68   : > { %12881 = vmatprep.mubr.msk.f32.mxu1 %vm279_vm0, %v15628_v26  ;;  %13114 = vmatprep.mubr.msk.f32.mxu0 %vm279_vm0, %v15630_v27  ;;  %v15788_v26 = vld [vmem:[#allocation2 + $0xcf] sm:$0xff] }
  0x69   : > { %18330 = vst [vmem:[#allocation28_spill] sm:$0xff] %v15788_v26 }
  0x6b   : > { %12882 = vmatmul.mubr.msk.f32.gmra.mrb[26].mxu1 %vm279_vm0, %v15640_v28  ;;  %13115 = vmatmul.mubr.msk.f32.gmra.mrb[8].mxu0 %vm279_vm0, %v15642_v29  ;;  %v15778_v28 = vld [vmem:[#allocation2 + $0x1c9] sm:$0xff] }
  0x6c   : > { %12884 = vmatprep.mubr.msk.f32.mxu1 %vm279_vm0, %v15644_v30  ;;  %13117 = vmatprep.mubr.msk.f32.mxu0 %vm279_vm0, %v15646_v31  ;;  %v15776_v30 = vld [vmem:[#allocation2 + $0xc7] sm:$0xff] }
  0x6d   : > { %18329 = vst [vmem:[#allocation27_spill] sm:$0xff] %v15776_v30 }
  0x6f   : > { %12885 = vmatmul.mubr.msk.f32.gmra.mrb[28].mxu1 %vm279_vm0, %v15656_v32  ;;  %13118 = vmatmul.mubr.msk.f32.gmra.mrb[10].mxu0 %vm279_vm0, %v15658_v33  ;;  %v15774_v32 = vld [vmem:[#allocation2 + $0x1b1] sm:$0xff] }
  0x70   : > { %12887 = vmatprep.mubr.msk.f32.mxu1 %vm279_vm0, %v15660_v34  ;;  %13120 = vmatprep.mubr.msk.f32.mxu0 %vm279_vm0, %v15662_v35  ;;  %v15772_v34 = vld [vmem:[#allocation2 + $0xaf] sm:$0xff] }
  0x71   : > { %18328 = vst [vmem:[#allocation26_spill] sm:$0xff] %v15772_v34 }
  0x73   : > { %12888 = vmatmul.mubr.msk.f32.gmra.mrb[30].mxu1 %vm279_vm0, %v15672_v36  ;;  %13121 = vmatmul.mubr.msk.f32.gmra.mrb[12].mxu0 %vm279_vm0, %v15674_v37  ;;  %v15762_v36 = vld [vmem:[#allocation2 + $0x1a9] sm:$0xff] }
  0x74   : > { %12894 = vmatprep.mubr.msk.f32.mxu1 %vm279_vm0, %v436_v38  ;;  %13123 = vmatprep.mubr.msk.f32.mxu0 %vm279_vm0, %v15676_v39  ;;  %v15746_v38 = vld [vmem:[#allocation2 + $0x189] sm:$0xff] }
  0x77   : > { %12895 = vmatmul.mubr.msk.f32.vlgmr.msra.gmra.mrb[0].mxu1 %vm279_vm0, %v437_v42  ;;  %13124 = vmatmul.mubr.msk.f32.gmra.mrb[14].mxu0 %vm279_vm0, %v15691_v43  ;;  %v15760_v42 = vld [vmem:[#allocation2 + $0xa7] sm:$0xff] }
  0x78   : > { %12897 = vmatprep.mubr.msk.f32.mxu1 %vm279_vm0, %v15693_v45  ;;  %13126 = vmatprep.mubr.msk.f32.mxu0 %vm279_vm0, %v15695_v50  ;;  %18327 = vst [vmem:[#allocation25_spill] sm:$0xff] %v15760_v42  ;;  %v15824_v45 = vld [vmem:[#allocation2 + $0x127] sm:$0xff] }
  0x79   : > { %14253 = vmatpush3.bf16.msra.mxu1 %v15404_v24  ;;  %v15726_v24 = vld [vmem:[#allocation2 + $0x151] sm:$0xff] }
  0x7a   : > { %14255 = vmatprep.subr.bf16.mxu1 %v15697_v51 }
  0x7b   : > { %12898 = vmatmul.mubr.msk.f32.gmra.mrb[2].mxu1 %vm279_vm0, %v15706_v52  ;;  %13127 = vmatmul.mubr.msk.f32.gmra.mrb[16].mxu0 %vm279_vm0, %v15708_v54  ;;  %v15820_v52 = vld [vmem:[#allocation2 + $0x10f] sm:$0xff] }
  0x7c   : > { %12900 = vmatprep.mubr.msk.f32.mxu1 %vm279_vm0, %v15711_v56  ;;  %13129 = vmatprep.mubr.msk.f32.mxu0 %vm279_vm0, %v15713_v57 }
  0x7f   : > { %12901 = vmatmul.mubr.msk.f32.gmra.mrb[4].mxu1 %vm279_vm0, %v15724_v58  ;;  %13130 = vmatmul.mubr.msk.f32.gmra.mrb[18].mxu0 %vm279_vm0, %v15726_v24 }
  0x80   : > { %12903 = vmatprep.mubr.msk.f32.mxu1 %vm279_vm0, %v15728_v59  ;;  %13132 = vmatprep.mubr.msk.f32.mxu0 %vm279_vm0, %v15730_v5 }
  0x83   : > { %12904 = vmatmul.mubr.msk.f32.gmra.mrb[6].mxu1 %vm279_vm0, %v15740_v6  ;;  %13133 = vmatmul.mubr.msk.f32.gmra.mrb[20].mxu0 %vm279_vm0, %v15742_v7 }
  0x84   : > { %12906 = vmatprep.mubr.msk.f32.mxu1 %vm279_vm0, %v15744_v9  ;;  %13135 = vmatprep.mubr.msk.f32.mxu0 %vm279_vm0, %v15746_v38 }
  0x87   : > { %12907 = vmatmul.mubr.msk.f32.gmra.mrb[8].mxu1 %vm279_vm0, %v15756_v40  ;;  %13136 = vmatmul.mubr.msk.f32.gmra.mrb[22].mxu0 %vm279_vm0, %v15758_v41 }
  0x88   : > { %12909 = vmatprep.mubr.msk.f32.mxu1 %vm279_vm0, %v15760_v42  ;;  %13138 = vmatprep.mubr.msk.f32.mxu0 %vm279_vm0, %v15762_v36 }
  0x8b   : > { %12910 = vmatmul.mubr.msk.f32.gmra.mrb[10].mxu1 %vm279_vm0, %v15772_v34  ;;  %13139 = vmatmul.mubr.msk.f32.gmra.mrb[24].mxu0 %vm279_vm0, %v15774_v32 }
  0x8c   : > { %12912 = vmatprep.mubr.msk.f32.mxu1 %vm279_vm0, %v15776_v30  ;;  %13141 = vmatprep.mubr.msk.f32.mxu0 %vm279_vm0, %v15778_v28 }
  0x8f   : > { %12913 = vmatmul.mubr.msk.f32.gmra.mrb[12].mxu1 %vm279_vm0, %v15788_v26  ;;  %13142 = vmatmul.mubr.msk.f32.gmra.mrb[26].mxu0 %vm279_vm0, %v15790_v23 }
  0x90   : > { %12915 = vmatprep.mubr.msk.f32.mxu1 %vm279_vm0, %v15792_v21  ;;  %13144 = vmatprep.mubr.msk.f32.mxu0 %vm279_vm0, %v15794_v19 }
  0x93   : > { %12916 = vmatmul.mubr.msk.f32.gmra.mrb[14].mxu1 %vm279_vm0, %v15804_v17  ;;  %13145 = vmatmul.mubr.msk.f32.gmra.mrb[28].mxu0 %vm279_vm0, %v15806_v15  ;;  %v435_v15 = vld [vmem:[%s18129_s1 + $0x88] sm:$0xff] }
  0x94   : > { %12918 = vmatprep.mubr.msk.f32.mxu1 %vm279_vm0, %v15808_v12  ;;  %13147 = vmatprep.mubr.msk.f32.mxu0 %vm279_vm0, %v15810_v10  ;;  %v15840_v10 = vld [vmem:[#allocation2 + $0x12f] sm:$0xff]  ;;  %v15844_v19 = vpack.c.bf16 %v435_v15, %v434_v2 }
  0x95   : > { %v15868_v2 = vld [vmem:[#allocation2 + $0x16f] sm:$0xff] }
  0x96   : > { %v15880_v15 = vld [vmem:[#allocation2 + $0x18f] sm:$0xff] }
  0x97   : > { %12919 = vmatmul.mubr.msk.f32.gmra.mrb[16].mxu1 %vm279_vm0, %v15820_v52  ;;  %13148 = vmatmul.mubr.msk.f32.gmra.mrb[30].mxu0 %vm279_vm0, %v15822_v4  ;;  %v15853_v4 = vld [vmem:[#allocation2 + $0x14f] sm:$0xff] }
  0x98   : > { %12921 = vmatprep.mubr.msk.f32.mxu1 %vm279_vm0, %v15824_v45  ;;  %13154 = vmatprep.mubr.msk.f32.mxu0 %vm279_vm0, %v15711_v56  ;;  %v15857_v56 = vld [vmem:[#allocation2 + $0x167] sm:$0xff] }
  0x9b   : > { %12922 = vmatmul.mubr.msk.f32.gmra.mrb[18].mxu1 %vm279_vm0, %v15840_v10  ;;  %13155 = vmatmul.mubr.msk.f32.vlgmr.msra.gmra.mrb[0].mxu0 %vm279_vm0, %v15724_v58 }
  0x9c   : > { %14273 = vmatpush3.bf16.msra.mxu0 %v15578_v13  ;;  %12924 = vmatprep.mubr.msk.f32.mxu1 %vm279_vm0, %v15842_v1  ;;  %v15870_v13 = vld [vmem:[#allocation2 + $0x187] sm:$0xff] }
  0x9d   : > { %13157 = vmatprep.mubr.msk.f32.mxu0 %vm279_vm0, %v15728_v59  ;;  %14275 = vmatprep.subr.bf16.mxu0 %v15844_v19 }
  0x9f   : > { %12925 = vmatmul.mubr.msk.f32.gmra.mrb[20].mxu1 %vm279_vm0, %v15853_v4  ;;  %13158 = vmatmul.mubr.msk.f32.gmra.mrb[2].mxu0 %vm279_vm0, %v15740_v6  ;;  %v15882_v6 = vld [vmem:[#allocation2 + $0x1a7] sm:$0xff] }
  0xa0   : > { %12927 = vmatprep.mubr.msk.f32.mxu1 %vm279_vm0, %v15857_v56  ;;  %13160 = vmatprep.mubr.msk.f32.mxu0 %vm279_vm0, %v15744_v9  ;;  %v15894_v9 = vld [vmem:[#allocation2 + $0x1c7] sm:$0xff] }
  0xa3   : > { %12928 = vmatmul.mubr.msk.f32.gmra.mrb[22].mxu1 %vm279_vm0, %v15868_v2  ;;  %13161 = vmatmul.mubr.msk.f32.gmra.mrb[4].mxu0 %vm279_vm0, %v15756_v40  ;;  %v15892_v40 = vld [vmem:[#allocation2 + $0x1af] sm:$0xff] }
  0xa4   : > { %12930 = vmatprep.mubr.msk.f32.mxu1 %vm279_vm0, %v15870_v13  ;;  %13163 = vmatprep.mubr.msk.f32.mxu0 %vm279_vm0, %v15760_v42  ;;  %v15906_v42 = vld [vmem:[#allocation2 + $0x1e7] sm:$0xff] }
  0xa7   : > { %12931 = vmatmul.mubr.msk.f32.gmra.mrb[24].mxu1 %vm279_vm0, %v15880_v15  ;;  %13164 = vmatmul.mubr.msk.f32.gmra.mrb[6].mxu0 %vm279_vm0, %v15772_v34  ;;  %v15904_v34 = vld [vmem:[#allocation2 + $0x1cf] sm:$0xff] }
  0xa8   : > { %12933 = vmatprep.mubr.msk.f32.mxu1 %vm279_vm0, %v15882_v6  ;;  %13166 = vmatprep.mubr.msk.f32.mxu0 %vm279_vm0, %v15776_v30  ;;  %v1142_v30 = vld [vmem:[#allocation2 + $0x9] sm:$0xff] }
  0xab   : > { %12934 = vmatmul.mubr.msk.f32.gmra.mrb[26].mxu1 %vm279_vm0, %v15892_v40  ;;  %13167 = vmatmul.mubr.msk.f32.gmra.mrb[8].mxu0 %vm279_vm0, %v15788_v26  ;;  %v15916_v26 = vld [vmem:[#allocation2 + $0x1ef] sm:$0xff] }
  0xac   : > { %12936 = vmatprep.mubr.msk.f32.mxu1 %vm279_vm0, %v15894_v9  ;;  %13169 = vmatprep.mubr.msk.f32.mxu0 %vm279_vm0, %v15792_v21 }
  0xaf   : > { %12937 = vmatmul.mubr.msk.f32.gmra.mrb[28].mxu1 %vm279_vm0, %v15904_v34  ;;  %13170 = vmatmul.mubr.msk.f32.gmra.mrb[10].mxu0 %vm279_vm0, %v15804_v17  ;;  %v1143_v17 = vld [vmem:[#allocation2 + $0x11] sm:$0xff] }
  0xb0   : > { %12939 = vmatprep.mubr.msk.f32.mxu1 %vm279_vm0, %v15906_v42  ;;  %13172 = vmatprep.mubr.msk.f32.mxu0 %vm279_vm0, %v15808_v12 }
  0xb3   : > { %12940 = vmatmul.mubr.msk.f32.gmra.mrb[30].mxu1 %vm279_vm0, %v15916_v26  ;;  %13173 = vmatmul.mubr.msk.f32.gmra.mrb[12].mxu0 %vm279_vm0, %v15820_v52 }
  0xb4   : > { %12946 = vmatprep.mubr.msk.f32.mxu1 %vm279_vm0, %v1142_v30  ;;  %13175 = vmatprep.mubr.msk.f32.mxu0 %vm279_vm0, %v15824_v45  ;;  %v2714_v30 = vld [vmem:[#allocation2 + $0x22f] sm:$0xff] }
  0xb7   : > { %12947 = vmatmul.mubr.msk.f32.vlgmr.msra.gmra.mrb[0].mxu1 %vm279_vm0, %v1143_v17  ;;  %13176 = vmatmul.mubr.msk.f32.gmra.mrb[14].mxu0 %vm279_vm0, %v15840_v10  ;;  %v2713_v17 = vld [vmem:[#allocation2 + $0x227] sm:$0xff] }
  0xb8   : > { %12949 = vmatprep.mubr.msk.f32.mxu1 %vm279_vm0, %v15550_v3  ;;  %13178 = vmatprep.mubr.msk.f32.mxu0 %vm279_vm0, %v15842_v1  ;;  %v15974_v3 = vld [vmem:[#allocation2 + $0x207] sm:$0xff] }
  0xb9   : > { %14257 = vmatpush3.bf16.msra.mxu1 %v15697_v51  ;;  %v18349_v51 = vld [vmem:[#allocation10_spill] sm:$0xff] }
  0xba   : > { %14350 = vmatprep.subr.bf16.mxu1 %v15320_v8 }
  0xbb   : > { %12950 = vmatmul.mubr.msk.f32.gmra.mrb[2].mxu1 %vm279_vm0, %v15574_v11  ;;  %13179 = vmatmul.mubr.msk.f32.gmra.mrb[16].mxu0 %vm279_vm0, %v15853_v4  ;;  %v15984_v11 = vld [vmem:[#allocation2 + $0x20f] sm:$0xff] }
  0xbc   : > { %12952 = vmatprep.mubr.msk.f32.mxu1 %vm279_vm0, %v15580_v14  ;;  %13181 = vmatprep.mubr.msk.f32.mxu0 %vm279_vm0, %v15857_v56 }
  0xbf   : > { %12953 = vmatmul.mubr.msk.f32.gmra.mrb[4].mxu1 %vm279_vm0, %v15591_v16  ;;  %13182 = vmatmul.mubr.msk.f32.gmra.mrb[18].mxu0 %vm279_vm0, %v15868_v2 }
  0xc0   : > { %12955 = vmatprep.mubr.msk.f32.mxu1 %vm279_vm0, %v15597_v18  ;;  %13184 = vmatprep.mubr.msk.f32.mxu0 %vm279_vm0, %v15870_v13 }
  0xc3   : > { %12956 = vmatmul.mubr.msk.f32.gmra.mrb[6].mxu1 %vm279_vm0, %v15610_v20  ;;  %13185 = vmatmul.mubr.msk.f32.gmra.mrb[20].mxu0 %vm279_vm0, %v15880_v15 }
  0xc4   : > { %12958 = vmatprep.mubr.msk.f32.mxu1 %vm279_vm0, %v15614_v22  ;;  %13187 = vmatprep.mubr.msk.f32.mxu0 %vm279_vm0, %v15882_v6 }
  0xc7   : > { %12959 = vmatmul.mubr.msk.f32.gmra.mrb[8].mxu1 %vm279_vm0, %v15626_v25  ;;  %13188 = vmatmul.mubr.msk.f32.gmra.mrb[22].mxu0 %vm279_vm0, %v15892_v40 }
  0xc8   : > { %12961 = vmatprep.mubr.msk.f32.mxu1 %vm279_vm0, %v15630_v27  ;;  %13190 = vmatprep.mubr.msk.f32.mxu0 %vm279_vm0, %v15894_v9 }
  0xcb   : > { %12962 = vmatmul.mubr.msk.f32.gmra.mrb[10].mxu1 %vm279_vm0, %v15642_v29  ;;  %13191 = vmatmul.mubr.msk.f32.gmra.mrb[24].mxu0 %vm279_vm0, %v15904_v34 }
  0xcc   : > { %12964 = vmatprep.mubr.msk.f32.mxu1 %vm279_vm0, %v15646_v31  ;;  %13193 = vmatprep.mubr.msk.f32.mxu0 %vm279_vm0, %v15906_v42 }
  0xcf   : > { %12965 = vmatmul.mubr.msk.f32.gmra.mrb[12].mxu1 %vm279_vm0, %v15658_v33  ;;  %13194 = vmatmul.mubr.msk.f32.gmra.mrb[26].mxu0 %vm279_vm0, %v15916_v26 }
  0xd0   : > { %12967 = vmatprep.mubr.msk.f32.mxu1 %vm279_vm0, %v15662_v35  ;;  %13196 = vmatprep.mubr.msk.f32.mxu0 %vm279_vm0, %v15974_v3 }
  0xd3   : > { %12968 = vmatmul.mubr.msk.f32.gmra.mrb[14].mxu1 %vm279_vm0, %v15674_v37  ;;  %13197 = vmatmul.mubr.msk.f32.gmra.mrb[28].mxu0 %vm279_vm0, %v15984_v11 }
  0xd4   : > { %12970 = vmatprep.mubr.msk.f32.mxu1 %vm279_vm0, %v15676_v39  ;;  %13199 = vmatprep.mubr.msk.f32.mxu0 %vm279_vm0, %v2713_v17  ;;  %v18350_v17 = vld [vmem:[#allocation23_spill] sm:$0xff] }
  0xd7   : > { %12971 = vmatmul.mubr.msk.f32.gmra.mrb[16].mxu1 %vm279_vm0, %v15691_v43  ;;  %13200 = vmatmul.mubr.msk.f32.gmra.mrb[30].mxu0 %vm279_vm0, %v2714_v30  ;;  %v18353_v30 = vld [vmem:[#allocation12_spill] sm:$0xff] }
  0xd8   : > { %12973 = vmatprep.mubr.msk.f32.mxu1 %vm279_vm0, %v15695_v50  ;;  %13206 = vmatprep.mubr.msk.f32.mxu0 %vm279_vm0, %v15443_v44  ;;  %v18336_v44 = vld [vmem:[#allocation29_spill] sm:$0xff] }
  0xdb   : > { %12974 = vmatmul.mubr.msk.f32.gmra.mrb[18].mxu1 %vm279_vm0, %v15708_v54  ;;  %13207 = vmatmul.mubr.msk.f32.vlgmr.msra.gmra.mrb[0].mxu0 %vm279_vm0, %v15457_v46  ;;  %v18337_v46 = vld [vmem:[#allocation3_spill] sm:$0xff] }
  0xdc   : > { %14277 = vmatpush3.bf16.msra.mxu0 %v15844_v19  ;;  %12976 = vmatprep.mubr.msk.f32.mxu1 %vm279_vm0, %v15713_v57  ;;  %v18348_v19 = vld [vmem:[#allocation22_spill] sm:$0xff] }
  0xdd   : > { %13209 = vmatprep.mubr.msk.f32.mxu0 %vm279_vm0, %v15461_v47  ;;  %v18338_v47 = vld [vmem:[#allocation31_spill] sm:$0xff] }
  0xdf   : > { %12977 = vmatmul.mubr.msk.f32.gmra.mrb[20].mxu1 %vm279_vm0, %v15726_v24  ;;  %13210 = vmatmul.mubr.msk.f32.gmra.mrb[2].mxu0 %vm279_vm0, %v15472_v48  ;;  %v18339_v48 = vld [vmem:[#allocation4_spill] sm:$0xff] }
  0xe0   : > { %12979 = vmatprep.mubr.msk.f32.mxu1 %vm279_vm0, %v15730_v5  ;;  %13212 = vmatprep.mubr.msk.f32.mxu0 %vm279_vm0, %v15474_v49  ;;  %v18340_v49 = vld [vmem:[#allocation19_spill] sm:$0xff] }
  0xe3   : > { %12980 = vmatmul.mubr.msk.f32.gmra.mrb[22].mxu1 %vm279_vm0, %v15742_v7  ;;  %13213 = vmatmul.mubr.msk.f32.gmra.mrb[4].mxu0 %vm279_vm0, %v15488_v53  ;;  %v18341_v53 = vld [vmem:[#allocation5_spill] sm:$0xff] }
  0xe4   : > { %12982 = vmatprep.mubr.msk.f32.mxu1 %vm279_vm0, %v15746_v38  ;;  %13215 = vmatprep.mubr.msk.f32.mxu0 %vm279_vm0, %v15493_v55  ;;  %v18342_v55 = vld [vmem:[#allocation20_spill] sm:$0xff] }
  0xe7   : > { %12983 = vmatmul.mubr.msk.f32.gmra.mrb[24].mxu1 %vm279_vm0, %v15758_v41  ;;  %13216 = vmatmul.mubr.msk.f32.gmra.mrb[6].mxu0 %vm279_vm0, %v15511_v60  ;;  %v18343_v60 = vld [vmem:[#allocation6_spill] sm:$0xff] }
  0xe8   : > { %12985 = vmatprep.mubr.msk.f32.mxu1 %vm279_vm0, %v15762_v36  ;;  %13218 = vmatprep.mubr.msk.f32.mxu0 %vm279_vm0, %v15514_v61  ;;  %v18344_v61 = vld [vmem:[#allocation21_spill] sm:$0xff] }
  0xeb   : > { %12986 = vmatmul.mubr.msk.f32.gmra.mrb[26].mxu1 %vm279_vm0, %v15774_v32  ;;  %13219 = vmatmul.mubr.msk.f32.gmra.mrb[8].mxu0 %vm279_vm0, %v15524_v62  ;;  %v18345_v62 = vld [vmem:[#allocation7_spill] sm:$0xff] }
  0xec   : > { %12988 = vmatprep.mubr.msk.f32.mxu1 %vm279_vm0, %v15778_v28  ;;  %13221 = vmatprep.mubr.msk.f32.mxu0 %vm279_vm0, %v15526_v63  ;;  %v18346_v63 = vld [vmem:[#allocation8_spill] sm:$0xff] }
  0xef   : > { %12989 = vmatmul.mubr.msk.f32.gmra.mrb[28].mxu1 %vm279_vm0, %v15790_v23  ;;  %13222 = vmatmul.mubr.msk.f32.gmra.mrb[10].mxu0 %vm279_vm0, %v15536_v0  ;;  %v18347_v0 = vld [vmem:[#allocation9_spill] sm:$0xff] }
  0xf0   : > { %12991 = vmatprep.mubr.msk.f32.mxu1 %vm279_vm0, %v18336_v44  ;;  %13224 = vmatprep.mubr.msk.f32.mxu0 %vm279_vm0, %v18337_v46  ;;  %v18355_v46 = vld [vmem:[#allocation13_spill] sm:$0xff] }
  0xf3   : > { %12992 = vmatmul.mubr.msk.f32.gmra.mrb[30].mxu1 %vm279_vm0, %v18338_v47  ;;  %13225 = vmatmul.mubr.msk.f32.gmra.mrb[12].mxu0 %vm279_vm0, %v18339_v48  ;;  %v18356_v48 = vld [vmem:[#allocation26_spill] sm:$0xff] }
  0xf4   : > { %12998 = vmatprep.mubr.msk.f32.mxu1 %vm279_vm0, %v18340_v49  ;;  %13227 = vmatprep.mubr.msk.f32.mxu0 %vm279_vm0, %v18341_v53  ;;  %v18357_v49 = vld [vmem:[#allocation14_spill] sm:$0xff]  ;;  %v18358_v53 = vld [vmem:[#allocation27_spill] sm:$0xff] }
  0xf7   : > { %12999 = vmatmul.mubr.msk.f32.vlgmr.msra.gmra.mrb[0].mxu1 %vm279_vm0, %v18342_v55  ;;  %13228 = vmatmul.mubr.msk.f32.gmra.mrb[14].mxu0 %vm279_vm0, %v18343_v60  ;;  %v18359_v55 = vld [vmem:[#allocation15_spill] sm:$0xff] }
  0xf8   : > { %13001 = vmatprep.mubr.msk.f32.mxu1 %vm279_vm0, %v18344_v61  ;;  %13230 = vmatprep.mubr.msk.f32.mxu0 %vm279_vm0, %v18345_v62  ;;  %v18360_v61 = vld [vmem:[#allocation28_spill] sm:$0xff] }
  0xf9   : > { %14351 = vmatpush3.bf16.msra.mxu1 %v15320_v8  ;;  %v18351_v8 = vld [vmem:[#allocation11_spill] sm:$0xff] }
  0xfb   : > { %13002 = vmatmul.mubr.msk.f32.gmra.mrb[2].mxu1 %vm279_vm0, %v15724_v58  ;;  %13231 = vmatmul.mubr.msk.f32.gmra.mrb[16].mxu0 %vm279_vm0, %v18346_v63  ;;  %v18352_v58 = vld [vmem:[#allocation24_spill] sm:$0xff] }
  0xfc   : > { %13004 = vmatprep.mubr.msk.f32.mxu1 %vm279_vm0, %v15728_v59  ;;  %13233 = vmatprep.mubr.msk.f32.mxu0 %vm279_vm0, %v18347_v0  ;;  %v18354_v59 = vld [vmem:[#allocation25_spill] sm:$0xff] }
  0xff   : > { %13005 = vmatmul.mubr.msk.f32.gmra.mrb[4].mxu1 %vm279_vm0, %v18348_v19  ;;  %13234 = vmatmul.mubr.msk.f32.gmra.mrb[18].mxu0 %vm279_vm0, %v18349_v51  ;;  %v18361_v19 = vld [vmem:[#allocation16_spill] sm:$0xff] }
 0x100   : > { %13007 = vmatprep.mubr.msk.f32.mxu1 %vm279_vm0, %v18350_v17  ;;  %13236 = vmatprep.mubr.msk.f32.mxu0 %vm279_vm0, %v18351_v8  ;;  %v18362_v17 = vld [vmem:[#allocation17_spill] sm:$0xff] }
 0x103   : > { %13008 = vmatmul.mubr.msk.f32.gmra.mrb[6].mxu1 %vm279_vm0, %v18352_v58  ;;  %13237 = vmatmul.mubr.msk.f32.gmra.mrb[20].mxu0 %vm279_vm0, %v18353_v30  ;;  %v16106_v58 = vld [vmem:[#allocation2 + $0x208] sm:$0xff] }
 0x104   : > { %13010 = vmatprep.mubr.msk.f32.mxu1 %vm279_vm0, %v18354_v59  ;;  %13239 = vmatprep.mubr.msk.f32.mxu0 %vm279_vm0, %v18355_v46  ;;  %v18363_v59 = vld [vmem:[#allocation30_spill] sm:$0xff] }
 0x107   : > { %13011 = vmatmul.mubr.msk.f32.gmra.mrb[8].mxu1 %vm279_vm0, %v18356_v48  ;;  %13240 = vmatmul.mubr.msk.f32.gmra.mrb[22].mxu0 %vm279_vm0, %v18357_v49  ;;  %v18364_v48 = vld [vmem:[#allocation18_spill] sm:$0xff] }
 0x108   : > { %13013 = vmatprep.mubr.msk.f32.mxu1 %vm279_vm0, %v18358_v53  ;;  %13242 = vmatprep.mubr.msk.f32.mxu0 %vm279_vm0, %v18359_v55  ;;  %v16116_v53 = vld [vmem:[#allocation2 + $0x210] sm:$0xff] }
 0x10b   : > { %13014 = vmatmul.mubr.msk.f32.gmra.mrb[10].mxu1 %vm279_vm0, %v18360_v61  ;;  %13243 = vmatmul.mubr.msk.f32.gmra.mrb[24].mxu0 %vm279_vm0, %v18361_v19  ;;  %v3099_v61 = vld [vmem:[#allocation2 + $0x230] sm:$0xff] }
 0x10c   : > { %13016 = vmatprep.mubr.msk.f32.mxu1 %vm279_vm0, %v15792_v21  ;;  %13245 = vmatprep.mubr.msk.f32.mxu0 %vm279_vm0, %v18362_v17  ;;  %v3098_v21 = vld [vmem:[#allocation2 + $0x228] sm:$0xff] }
 0x10f   : > { %13017 = vmatmul.mubr.msk.f32.gmra.mrb[12].mxu1 %vm279_vm0, %v18363_v59  ;;  %13246 = vmatmul.mubr.msk.f32.gmra.mrb[26].mxu0 %vm279_vm0, %v18364_v48 }
 0x110   : > { %13019 = vmatprep.mubr.msk.f32.mxu1 %vm279_vm0, %v15808_v12  ;;  %13248 = vmatprep.mubr.msk.f32.mxu0 %vm279_vm0, %v16106_v58  ;;  %v18366_v12 = vld [vmem:[#allocation33_spill] sm:$0xff] }
 0x113   : > { %13020 = vmatmul.mubr.msk.f32.gmra.mrb[14].mxu1 %vm279_vm0, %v15820_v52  ;;  %13249 = vmatmul.mubr.msk.f32.gmra.mrb[28].mxu0 %vm279_vm0, %v16116_v53 }
 0x114   : > { %13022 = vmatprep.mubr.msk.f32.mxu1 %vm279_vm0, %v15824_v45  ;;  %13251 = vmatprep.mubr.msk.f32.mxu0 %vm279_vm0, %v3098_v21 }
 0x117   : > { %13023 = vmatmul.mubr.msk.f32.gmra.mrb[16].mxu1 %vm279_vm0, %v15840_v10  ;;  %13252 = vmatmul.mubr.msk.f32.gmra.mrb[30].mxu0 %vm279_vm0, %v3099_v61  ;;  %v3483_v10 = vld [vmem:[#allocation2 + $0x229] sm:$0xff] }
 0x118   : > { %13025 = vmatprep.mubr.msk.f32.mxu1 %vm279_vm0, %v15842_v1  ;;  %13258 = vmatprep.mubr.msk.f32.mxu0 %vm279_vm0, %v15580_v14  ;;  %v1928_v1 = vld [vmem:[#allocation2 + $0x128] sm:$0xff]  ;;  %v3484_v14 = vld [vmem:[#allocation2 + $0x231] sm:$0xff] }
 0x11b   : > { %13026 = vmatmul.mubr.msk.f32.gmra.mrb[18].mxu1 %vm279_vm0, %v15853_v4  ;;  %13259 = vmatmul.mubr.msk.f32.vlgmr.msra.gmra.mrb[0].mxu0 %vm279_vm0, %v15591_v16  ;;  %v18365_v4 = vld [vmem:[#allocation32_spill] sm:$0xff]  ;;  %v3943_v16 = vld [vmem:[%s18131_s3 + $0x10] sm:$0xff] }
 0x11c   : > { %13028 = vmatprep.mubr.msk.f32.mxu1 %vm279_vm0, %v15857_v56  ;;  %13261 = vmatprep.mubr.msk.f32.mxu0 %vm279_vm0, %v15597_v18  ;;  %v3944_v18 = vld [vmem:[%s18131_s3 + $0x18] sm:$0xff] }
 0x11f   : > { %13029 = vmatmul.mubr.msk.f32.gmra.mrb[20].mxu1 %vm279_vm0, %v15868_v2  ;;  %13262 = vmatmul.mubr.msk.f32.gmra.mrb[2].mxu0 %vm279_vm0, %v15610_v20  ;;  %v14278_v20 = vpack.c.bf16 %v3944_v18, %v3943_v16 }
 0x120   : > { %13031 = vmatprep.mubr.msk.f32.mxu1 %vm279_vm0, %v15870_v13  ;;  %13264 = vmatprep.mubr.msk.f32.mxu0 %vm279_vm0, %v15614_v22  ;;  %v3991_v22 = vld [vmem:[#allocation2 + $0x8] sm:$0xff] }
 0x121   : > { %14279 = vmatprep.subr.bf16.mxu1 %v14278_v20 }
 0x123   : > { %13032 = vmatmul.mubr.msk.f32.gmra.mrb[22].mxu1 %vm279_vm0, %v15880_v15  ;;  %13265 = vmatmul.mubr.msk.f32.gmra.mrb[4].mxu0 %vm279_vm0, %v15626_v25  ;;  %v3941_v25 = vld [vmem:[%s18131_s3] sm:$0xff] }
 0x124   : > { %13034 = vmatprep.mubr.msk.f32.mxu1 %vm279_vm0, %v15882_v6  ;;  %13267 = vmatprep.mubr.msk.f32.mxu0 %vm279_vm0, %v15630_v27 }
 0x127   : > { %13035 = vmatmul.mubr.msk.f32.gmra.mrb[24].mxu1 %vm279_vm0, %v15892_v40  ;;  %13268 = vmatmul.mubr.msk.f32.gmra.mrb[6].mxu0 %vm279_vm0, %v15642_v29  ;;  %v3946_v29 = vld [vmem:[%s18131_s3 + $0x28] sm:$0xff] }
 0x128   : > { %13037 = vmatprep.mubr.msk.f32.mxu1 %vm279_vm0, %v15894_v9  ;;  %13270 = vmatprep.mubr.msk.f32.mxu0 %vm279_vm0, %v15646_v31 }
 0x12b   : > { %13038 = vmatmul.mubr.msk.f32.gmra.mrb[26].mxu1 %vm279_vm0, %v15904_v34  ;;  %13271 = vmatmul.mubr.msk.f32.gmra.mrb[8].mxu0 %vm279_vm0, %v15658_v33 }
 0x12c   : > { %13040 = vmatprep.mubr.msk.f32.mxu1 %vm279_vm0, %v15906_v42  ;;  %13273 = vmatprep.mubr.msk.f32.mxu0 %vm279_vm0, %v15662_v35 }
 0x12f   : > { %13041 = vmatmul.mubr.msk.f32.gmra.mrb[28].mxu1 %vm279_vm0, %v15916_v26  ;;  %13274 = vmatmul.mubr.msk.f32.gmra.mrb[10].mxu0 %vm279_vm0, %v15674_v37  ;;  %v3942_v26 = vld [vmem:[%s18131_s3 + $0x8] sm:$0xff] }
 0x130   : > { %13043 = vmatprep.mubr.msk.f32.mxu1 %vm279_vm0, %v15974_v3  ;;  %13276 = vmatprep.mubr.msk.f32.mxu0 %vm279_vm0, %v15676_v39  ;;  %v14282_v27 = vpack.c.bf16 %v3942_v26, %v3941_v25 }
 0x133   : > { %13044 = vmatmul.mubr.msk.f32.gmra.mrb[30].mxu1 %vm279_vm0, %v15984_v11  ;;  %13277 = vmatmul.mubr.msk.f32.gmra.mrb[12].mxu0 %vm279_vm0, %v15691_v43 }
 0x134   : > { %13074 = vmatprep.mubr.msk.f32.mxu1 %vm279_vm0, %v1928_v1  ;;  %13279 = vmatprep.mubr.msk.f32.mxu0 %vm279_vm0, %v15695_v50 }
 0x137   : > { %13075 = vmatmul.mubr.msk.f32.vlgmr.msra.gmra.mrb[16].mxu1 %vm279_vm0, %v18343_v60  ;;  %13280 = vmatmul.mubr.msk.f32.gmra.mrb[14].mxu0 %vm279_vm0, %v15708_v54 }
 0x138   : > { %13077 = vmatprep.mubr.msk.f32.mxu1 %vm279_vm0, %v18345_v62  ;;  %13282 = vmatprep.mubr.msk.f32.mxu0 %vm279_vm0, %v15713_v57 }
 0x139   : > { %14281 = vmatpush3.bf16.msra.mxu1 %v14278_v20 }
 0x13a   : > { %14283 = vmatprep.subr.bf16.mxu1 %v14282_v27 }
 0x13b   : > { %13078 = vmatmul.mubr.msk.f32.gmra.mrb[18].mxu1 %vm279_vm0, %v18346_v63  ;;  %13283 = vmatmul.mubr.msk.f32.gmra.mrb[16].mxu0 %vm279_vm0, %v15726_v24 }
 0x13c   : > { %13080 = vmatprep.mubr.msk.f32.mxu1 %vm279_vm0, %v18347_v0  ;;  %13285 = vmatprep.mubr.msk.f32.mxu0 %vm279_vm0, %v15730_v5 }
 0x13f   : > { %13081 = vmatmul.mubr.msk.f32.gmra.mrb[20].mxu1 %vm279_vm0, %v18349_v51  ;;  %13286 = vmatmul.mubr.msk.f32.gmra.mrb[18].mxu0 %vm279_vm0, %v15742_v7  ;;  %v16285_v7 = vld [vmem:[%s18130_s2] ss:$0 sm:$0xff] }
 0x140   : > { %13083 = vmatprep.mubr.msk.f32.mxu1 %vm279_vm0, %v18351_v8  ;;  %13288 = vmatprep.mubr.msk.f32.mxu0 %vm279_vm0, %v15746_v38 }
 0x143   : > { %13084 = vmatmul.mubr.msk.f32.gmra.mrb[22].mxu1 %vm279_vm0, %v18353_v30  ;;  %13289 = vmatmul.mubr.msk.f32.gmra.mrb[20].mxu0 %vm279_vm0, %v15758_v41 }
 0x144   : > { %13086 = vmatprep.mubr.msk.f32.mxu1 %vm279_vm0, %v18355_v46  ;;  %13291 = vmatprep.mubr.msk.f32.mxu0 %vm279_vm0, %v15762_v36 }
 0x147   : > { %13087 = vmatmul.mubr.msk.f32.gmra.mrb[24].mxu1 %vm279_vm0, %v18357_v49  ;;  %13292 = vmatmul.mubr.msk.f32.gmra.mrb[22].mxu0 %vm279_vm0, %v15774_v32 }
 0x148   : > { %13089 = vmatprep.mubr.msk.f32.mxu1 %vm279_vm0, %v18359_v55  ;;  %13294 = vmatprep.mubr.msk.f32.mxu0 %vm279_vm0, %v15778_v28  ;;  %v3945_v28 = vld [vmem:[%s18131_s3 + $0x20] sm:$0xff] }
 0x149   : > { %v16269_v31 = vpack.c.bf16 %v3946_v29, %v3945_v28 }
 0x14b   : > { %13090 = vmatmul.mubr.msk.f32.gmra.mrb[26].mxu1 %vm279_vm0, %v18361_v19  ;;  %13295 = vmatmul.mubr.msk.f32.gmra.mrb[24].mxu0 %vm279_vm0, %v15790_v23  ;;  %v3992_v23 = vld [vmem:[#allocation2 + $0x10] sm:$0xff] }
 0x14c   : > { %13092 = vmatprep.mubr.msk.f32.mxu1 %vm279_vm0, %v18362_v17  ;;  %13297 = vmatprep.mubr.msk.f32.mxu0 %vm279_vm0, %v18336_v44 }
 0x14f   : > { %13093 = vmatmul.mubr.msk.f32.gmra.mrb[28].mxu1 %vm279_vm0, %v18364_v48  ;;  %13298 = vmatmul.mubr.msk.f32.gmra.mrb[26].mxu0 %vm279_vm0, %v18338_v47 }
 0x150   : > { %13095 = vmatprep.mubr.msk.f32.mxu1 %vm279_vm0, %v16106_v58  ;;  %13300 = vmatprep.mubr.msk.f32.mxu0 %vm279_vm0, %v18365_v4 }
 0x153   : > { %13096 = vmatmul.mubr.msk.f32.gmra.mrb[30].mxu1 %vm279_vm0, %v16116_v53  ;;  %13301 = vmatmul.mubr.msk.f32.gmra.mrb[28].mxu0 %vm279_vm0, %v18366_v12 }
 0x154   : > { %13303 = vmatprep.mubr.msk.f32.mxu0 %vm279_vm0, %v3483_v10  ;;  %13310 = vmatprep.mubr.msk.f32.mxu1 %vm279_vm0, %v3991_v22 }
 0x157   : > { %13304 = vmatmul.mubr.msk.f32.gmra.mrb[30].mxu0 %vm279_vm0, %v3484_v14  ;;  %13311 = vmatmul.mubr.msk.f32.vlgmr.msra.gmra.mrb[32].mxu1 %vm279_vm0, %v3992_v23 }
 0x158   : > { %14285 = vmatpush3.bf16.msra.mxu1 %v14282_v27 }
 0x159   : > { %14287 = vmatprep.subr.bf16.mxu1 %v16269_v31 }
 0x1ca   : > { %v13000_v32 = vpop.f32.mrb[0].mxu1 }
 0x1cb   : > { %v1721_v33 = vpop.f32.mrb[1].mxu1 }
 0x1ce   : > { %v13003_v34 = vpop.f32.mrb[2].mxu1 }
 0x1cf   : > { %v1731_v35 = vpop.f32.mrb[3].mxu1 }
 0x1d2   : > { %v13006_v36 = vpop.f32.mrb[4].mxu1 }
 0x1d3   : > { %v1741_v37 = vpop.f32.mrb[5].mxu1 }
 0x1d6   : > { %v13009_v39 = vpop.f32.mrb[6].mxu1 }
 0x1d7   : > { %v1751_v43 = vpop.f32.mrb[7].mxu1 }
 0x1da   : > { %v13012_v45 = vpop.f32.mrb[8].mxu1 }
 0x1db   : > { %v1761_v50 = vpop.f32.mrb[9].mxu1 }
 0x1de   : > { %v13015_v52 = vpop.f32.mrb[10].mxu1 }
 0x1df   : > { %v16272_v54 = vpop.f32.mrb[11].mxu1 }
 0x1e2   : > { %v16274_v56 = vpop.f32.mrb[12].mxu1 }
 0x1e3   : > { %v16276_v57 = vpop.f32.mrb[13].mxu1 }
 0x1e6   : > { %v16278_v24 = vpop.f32.mrb[14].mxu1 }
 0x1e7   : > { %v16280_v5 = vpop.f32.mrb[15].mxu1 }
 0x1ee   : > { %v13260_v6 = vpop.f32.mrb[0].mxu0 }
 0x1ef   : > { %v14352_v9 = vadd.f32 %v13260_v6, %v13000_v32  ;;  %v3647_v38 = vpop.f32.mrb[1].mxu0 }
 0x1f0   : > { %v14353_v40 = vadd.f32 %v3647_v38, %v1721_v33 }
 0x1f1   : > { %v3846_v41 = vadd.f32 %v14352_v9, %v16285_v7 }
 0x1f2   : > { %v3845_v42 = vadd.f32 %v14353_v40, %v16285_v7  ;;  %v13263_v2 = vpop.f32.mrb[2].mxu0 }
 0x1f3   : > { %v3878_v13 = vmax.f32 %v3846_v41, 0.0  ;;  %v14354_v15 = vadd.f32 %v13263_v2, %v13003_v34  ;;  %v3657_v3 = vpop.f32.mrb[3].mxu0 }
 0x1f4   : > { %v3877_v11 = vmax.f32 %v3845_v42, 0.0  ;;  %v14355_v44 = vadd.f32 %v3657_v3, %v1731_v35 }
 0x1f5   : > { %3910 = vst.msk [vmem:[#allocation2 + $0x30] sm:$0xff] %vm279_vm0, %v3878_v13  ;;  %v3848_v47 = vadd.f32 %v14354_v15, %v16285_v7 }
 0x1f6   : > { %3909 = vst.msk [vmem:[#allocation2 + $0x28] sm:$0xff] %vm279_vm0, %v3877_v11  ;;  %v3847_v60 = vadd.f32 %v14355_v44, %v16285_v7  ;;  %v13266_v62 = vpop.f32.mrb[4].mxu0 }
 0x1f7   : > { %v3880_v63 = vmax.f32 %v3848_v47, 0.0  ;;  %v14356_v0 = vadd.f32 %v13266_v62, %v13006_v36  ;;  %v3667_v51 = vpop.f32.mrb[5].mxu0 }
 0x1f8   : > { %v3879_v8 = vmax.f32 %v3847_v60, 0.0  ;;  %v14357_v30 = vadd.f32 %v3667_v51, %v1741_v37 }
 0x1f9   : > { %3912 = vst.msk [vmem:[#allocation2 + $0x50] sm:$0xff] %vm279_vm0, %v3880_v63  ;;  %v3850_v46 = vadd.f32 %v14356_v0, %v16285_v7 }
 0x1fa   : > { %3911 = vst.msk [vmem:[#allocation2 + $0x48] sm:$0xff] %vm279_vm0, %v3879_v8  ;;  %v3849_v49 = vadd.f32 %v14357_v30, %v16285_v7  ;;  %v13269_v55 = vpop.f32.mrb[6].mxu0 }
 0x1fb   : > { %v3882_v19 = vmax.f32 %v3850_v46, 0.0  ;;  %v14358_v17 = vadd.f32 %v13269_v55, %v13009_v39  ;;  %v3677_v58 = vpop.f32.mrb[7].mxu0 }
 0x1fc   : > { %v3881_v59 = vmax.f32 %v3849_v49, 0.0  ;;  %v14359_v48 = vadd.f32 %v3677_v58, %v1751_v43  ;;  %v16305_v4 = vld [vmem:[#allocation2 + $0x30] sm:$0xff] }
 0x1fd   : > { %3914 = vst.msk [vmem:[#allocation2 + $0x70] sm:$0xff] %vm279_vm0, %v3882_v19  ;;  %v3852_v53 = vadd.f32 %v14358_v17, %v16285_v7  ;;  %v16299_v21 = vld [vmem:[#allocation2 + $0x28] sm:$0xff] }
 0x1fe   : > { %3913 = vst.msk [vmem:[#allocation2 + $0x68] sm:$0xff] %vm279_vm0, %v3881_v59  ;;  %v3851_v61 = vadd.f32 %v14359_v48, %v16285_v7  ;;  %v13272_v1 = vpop.f32.mrb[8].mxu0  ;;  %13313 = vmatprep.mubr.msk.f32.mxu1 %vm279_vm0, %v16299_v21 }
 0x1ff   : > { %v3884_v10 = vmax.f32 %v3852_v53, 0.0  ;;  %v14360_v12 = vadd.f32 %v13272_v1, %v13012_v45  ;;  %v3687_v14 = vpop.f32.mrb[9].mxu0  ;;  %13314 = vmatmul.mubr.msk.f32.gmra.mrb[34].mxu1 %vm279_vm0, %v16305_v4 }
 0x200   : > { %v3883_v16 = vmax.f32 %v3851_v61, 0.0  ;;  %v14361_v18 = vadd.f32 %v3687_v14, %v1761_v50  ;;  %v16317_v26 = vld [vmem:[#allocation2 + $0x50] sm:$0xff] }
 0x201   : > { %3916 = vst.msk [vmem:[#allocation2 + $0x90] sm:$0xff] %vm279_vm0, %v3884_v10  ;;  %v3854_v20 = vadd.f32 %v14360_v12, %v16285_v7  ;;  %v16311_v22 = vld [vmem:[#allocation2 + $0x48] sm:$0xff] }
 0x202   : > { %3915 = vst.msk [vmem:[#allocation2 + $0x88] sm:$0xff] %vm279_vm0, %v3883_v16  ;;  %v3853_v23 = vadd.f32 %v14361_v18, %v16285_v7  ;;  %v13275_v25 = vpop.f32.mrb[10].mxu0  ;;  %13316 = vmatprep.mubr.msk.f32.mxu1 %vm279_vm0, %v16311_v22 }
 0x203   : > { %v3886_v27 = vmax.f32 %v3854_v20, 0.0  ;;  %v14362_v28 = vadd.f32 %v13275_v25, %v13015_v52  ;;  %v3697_v29 = vpop.f32.mrb[11].mxu0  ;;  %13317 = vmatmul.mubr.msk.f32.gmra.mrb[36].mxu1 %vm279_vm0, %v16317_v26 }
 0x204   : > { %v3885_v32 = vmax.f32 %v3853_v23, 0.0  ;;  %v14363_v33 = vadd.f32 %v3697_v29, %v16272_v54  ;;  %v16330_v39 = vld [vmem:[#allocation2 + $0x70] sm:$0xff] }
 0x205   : > { %3918 = vst.msk [vmem:[#allocation2 + $0xb0] sm:$0xff] %vm279_vm0, %v3886_v27  ;;  %v3856_v34 = vadd.f32 %v14362_v28, %v16285_v7  ;;  %v16324_v35 = vld [vmem:[#allocation2 + $0x68] sm:$0xff] }
 0x206   : > { %3917 = vst.msk [vmem:[#allocation2 + $0xa8] sm:$0xff] %vm279_vm0, %v3885_v32  ;;  %v3855_v36 = vadd.f32 %v14363_v33, %v16285_v7  ;;  %v13278_v37 = vpop.f32.mrb[12].mxu0  ;;  %13319 = vmatprep.mubr.msk.f32.mxu1 %vm279_vm0, %v16324_v35 }
 0x207   : > { %v3888_v43 = vmax.f32 %v3856_v34, 0.0  ;;  %v14364_v45 = vadd.f32 %v13278_v37, %v16274_v56  ;;  %v3707_v50 = vpop.f32.mrb[13].mxu0  ;;  %13320 = vmatmul.mubr.msk.f32.gmra.mrb[38].mxu1 %vm279_vm0, %v16330_v39 }
 0x208   : > { %v3887_v52 = vmax.f32 %v3855_v36, 0.0  ;;  %v14365_v54 = vadd.f32 %v3707_v50, %v16276_v57  ;;  %v16344_v56 = vld [vmem:[#allocation2 + $0x90] sm:$0xff] }
 0x209   : > { %3920 = vst.msk [vmem:[#allocation2 + $0xd0] sm:$0xff] %vm279_vm0, %v3888_v43  ;;  %v3858_v6 = vadd.f32 %v14364_v45, %v16285_v7  ;;  %v16338_v9 = vld [vmem:[#allocation2 + $0x88] sm:$0xff] }
 0x20a   : > { %3919 = vst.msk [vmem:[#allocation2 + $0xc8] sm:$0xff] %vm279_vm0, %v3887_v52  ;;  %v3857_v38 = vadd.f32 %v14365_v54, %v16285_v7  ;;  %v13076_v40 = vpop.f32.mrb[16].mxu1  ;;  %v13281_v41 = vpop.f32.mrb[14].mxu0  ;;  %13322 = vmatprep.mubr.msk.f32.mxu1 %vm279_vm0, %v16338_v9 }
 0x20b   : > { %v3890_v42 = vmax.f32 %v3858_v6, 0.0  ;;  %v14366_v57 = vadd.f32 %v13281_v41, %v16278_v24  ;;  %v2186_v2 = vpop.f32.mrb[17].mxu1  ;;  %v3717_v13 = vpop.f32.mrb[15].mxu0  ;;  %13323 = vmatmul.mubr.msk.f32.gmra.mrb[40].mxu1 %vm279_vm0, %v16344_v56 }
 0x20c   : > { %v3889_v15 = vmax.f32 %v3857_v38, 0.0  ;;  %v14367_v3 = vadd.f32 %v3717_v13, %v16280_v5  ;;  %v16358_v62 = vld [vmem:[#allocation2 + $0xb0] sm:$0xff] }
 0x20d   : > { %3922 = vst.msk [vmem:[#allocation2 + $0xf0] sm:$0xff] %vm279_vm0, %v3890_v42  ;;  %v3860_v11 = vadd.f32 %v14366_v57, %v16285_v7  ;;  %v16352_v44 = vld [vmem:[#allocation2 + $0xa8] sm:$0xff] }
 0x20e   : > { %3921 = vst.msk [vmem:[#allocation2 + $0xe8] sm:$0xff] %vm279_vm0, %v3889_v15  ;;  %v3859_v47 = vadd.f32 %v14367_v3, %v16285_v7  ;;  %v13079_v60 = vpop.f32.mrb[18].mxu1  ;;  %v13284_v24 = vpop.f32.mrb[16].mxu0  ;;  %13325 = vmatprep.mubr.msk.f32.mxu1 %vm279_vm0, %v16352_v44 }
 0x20f   : > { %v3892_v63 = vmax.f32 %v3860_v11, 0.0  ;;  %v14368_v0 = vadd.f32 %v13284_v24, %v13076_v40  ;;  %v2196_v5 = vpop.f32.mrb[19].mxu1  ;;  %v3727_v51 = vpop.f32.mrb[17].mxu0  ;;  %13326 = vmatmul.mubr.msk.f32.gmra.mrb[42].mxu1 %vm279_vm0, %v16358_v62 }
 0x210   : > { %v3891_v8 = vmax.f32 %v3859_v47, 0.0  ;;  %v14369_v30 = vadd.f32 %v3727_v51, %v2186_v2  ;;  %v16370_v58 = vld [vmem:[#allocation2 + $0xd0] sm:$0xff] }
 0x211   : > { %3924 = vst.msk [vmem:[#allocation2 + $0x110] sm:$0xff] %vm279_vm0, %v3892_v63  ;;  %v3862_v46 = vadd.f32 %v14368_v0, %v16285_v7  ;;  %v16364_v49 = vld [vmem:[#allocation2 + $0xc8] sm:$0xff] }
 0x212   : > { %3923 = vst.msk [vmem:[#allocation2 + $0x108] sm:$0xff] %vm279_vm0, %v3891_v8  ;;  %v3861_v55 = vadd.f32 %v14369_v30, %v16285_v7  ;;  %v13082_v19 = vpop.f32.mrb[20].mxu1  ;;  %v13287_v17 = vpop.f32.mrb[18].mxu0  ;;  %13328 = vmatprep.mubr.msk.f32.mxu1 %vm279_vm0, %v16364_v49 }
 0x213   : > { %v3894_v59 = vmax.f32 %v3862_v46, 0.0  ;;  %v14370_v48 = vadd.f32 %v13287_v17, %v13079_v60  ;;  %v2206_v53 = vpop.f32.mrb[21].mxu1  ;;  %v3737_v61 = vpop.f32.mrb[19].mxu0  ;;  %13329 = vmatmul.mubr.msk.f32.gmra.mrb[44].mxu1 %vm279_vm0, %v16370_v58 }
 0x214   : > { %v3893_v1 = vmax.f32 %v3861_v55, 0.0  ;;  %v14371_v10 = vadd.f32 %v3737_v61, %v2196_v5  ;;  %v16382_v23 = vld [vmem:[#allocation2 + $0xf0] sm:$0xff] }
 0x215   : > { %3926 = vst.msk [vmem:[#allocation2 + $0x130] sm:$0xff] %vm279_vm0, %v3894_v59  ;;  %v3864_v12 = vadd.f32 %v14370_v48, %v16285_v7  ;;  %v16376_v14 = vld [vmem:[#allocation2 + $0xe8] sm:$0xff] }
 0x216   : > { %3925 = vst.msk [vmem:[#allocation2 + $0x128] sm:$0xff] %vm279_vm0, %v3893_v1  ;;  %v3863_v16 = vadd.f32 %v14371_v10, %v16285_v7  ;;  %v13085_v18 = vpop.f32.mrb[22].mxu1  ;;  %v13290_v20 = vpop.f32.mrb[20].mxu0  ;;  %13331 = vmatprep.mubr.msk.f32.mxu1 %vm279_vm0, %v16376_v14 }
 0x217   : > { %v3896_v25 = vmax.f32 %v3864_v12, 0.0  ;;  %v14372_v27 = vadd.f32 %v13290_v20, %v13082_v19  ;;  %v2216_v28 = vpop.f32.mrb[23].mxu1  ;;  %v3747_v29 = vpop.f32.mrb[21].mxu0  ;;  %13332 = vmatmul.mubr.msk.f32.gmra.mrb[46].mxu1 %vm279_vm0, %v16382_v23 }
 0x218   : > { %v3895_v32 = vmax.f32 %v3863_v16, 0.0  ;;  %v14373_v33 = vadd.f32 %v3747_v29, %v2206_v53  ;;  %v16394_v50 = vld [vmem:[#allocation2 + $0x110] sm:$0xff] }
 0x219   : > { %3928 = vst.msk [vmem:[#allocation2 + $0x150] sm:$0xff] %vm279_vm0, %v3896_v25  ;;  %v3866_v34 = vadd.f32 %v14372_v27, %v16285_v7  ;;  %v16388_v36 = vld [vmem:[#allocation2 + $0x108] sm:$0xff] }
 0x21a   : > { %3927 = vst.msk [vmem:[#allocation2 + $0x148] sm:$0xff] %vm279_vm0, %v3895_v32  ;;  %v3865_v37 = vadd.f32 %v14373_v33, %v16285_v7  ;;  %v13088_v43 = vpop.f32.mrb[24].mxu1  ;;  %v13293_v45 = vpop.f32.mrb[22].mxu0  ;;  %13334 = vmatprep.mubr.msk.f32.mxu1 %vm279_vm0, %v16388_v36 }
 0x21b   : > { %v3898_v52 = vmax.f32 %v3866_v34, 0.0  ;;  %v14374_v54 = vadd.f32 %v13293_v45, %v13085_v18  ;;  %v2226_v6 = vpop.f32.mrb[25].mxu1  ;;  %v3757_v38 = vpop.f32.mrb[23].mxu0  ;;  %13335 = vmatmul.mubr.msk.f32.gmra.mrb[48].mxu1 %vm279_vm0, %v16394_v50 }
 0x21c   : > { %v3897_v40 = vmax.f32 %v3865_v37, 0.0  ;;  %v14375_v41 = vadd.f32 %v3757_v38, %v2216_v28  ;;  %v16406_v3 = vld [vmem:[#allocation2 + $0x130] sm:$0xff] }
 0x21d   : > { %3930 = vst.msk [vmem:[#allocation2 + $0x170] sm:$0xff] %vm279_vm0, %v3898_v52  ;;  %v3868_v42 = vadd.f32 %v14374_v54, %v16285_v7  ;;  %v16400_v57 = vld [vmem:[#allocation2 + $0x128] sm:$0xff] }
 0x21e   : > { %3929 = vst.msk [vmem:[#allocation2 + $0x168] sm:$0xff] %vm279_vm0, %v3897_v40  ;;  %v3867_v2 = vadd.f32 %v14375_v41, %v16285_v7  ;;  %v13091_v13 = vpop.f32.mrb[26].mxu1  ;;  %v13296_v15 = vpop.f32.mrb[24].mxu0  ;;  %13337 = vmatprep.mubr.msk.f32.mxu1 %vm279_vm0, %v16400_v57 }
 0x21f   : > { %v3900_v11 = vmax.f32 %v3868_v42, 0.0  ;;  %v14376_v47 = vadd.f32 %v13296_v15, %v13088_v43  ;;  %v2236_v60 = vpop.f32.mrb[27].mxu1  ;;  %v3767_v24 = vpop.f32.mrb[25].mxu0  ;;  %13338 = vmatmul.mubr.msk.f32.gmra.mrb[50].mxu1 %vm279_vm0, %v16406_v3 }
 0x220   : > { %v3899_v63 = vmax.f32 %v3867_v2, 0.0  ;;  %v14377_v0 = vadd.f32 %v3767_v24, %v2226_v6  ;;  %v16418_v55 = vld [vmem:[#allocation2 + $0x150] sm:$0xff] }
 0x221   : > { %3932 = vst.msk [vmem:[#allocation2 + $0x190] sm:$0xff] %vm279_vm0, %v3900_v11  ;;  %v3870_v5 = vadd.f32 %v14376_v47, %v16285_v7  ;;  %v16412_v51 = vld [vmem:[#allocation2 + $0x148] sm:$0xff] }
 0x222   : > { %3931 = vst.msk [vmem:[#allocation2 + $0x188] sm:$0xff] %vm279_vm0, %v3899_v63  ;;  %v3869_v8 = vadd.f32 %v14377_v0, %v16285_v7  ;;  %v13094_v30 = vpop.f32.mrb[28].mxu1  ;;  %v13299_v46 = vpop.f32.mrb[26].mxu0  ;;  %13340 = vmatprep.mubr.msk.f32.mxu1 %vm279_vm0, %v16412_v51  ;;  %v3959_v63 = vld [vmem:[#allocation2 + $0x7] sm:$0xff] }
 0x223   : > { %v3902_v19 = vmax.f32 %v3870_v5, 0.0  ;;  %v14378_v17 = vadd.f32 %v13299_v46, %v13091_v13  ;;  %v2246_v59 = vpop.f32.mrb[29].mxu1  ;;  %v3777_v48 = vpop.f32.mrb[27].mxu0  ;;  %13341 = vmatmul.mubr.msk.f32.gmra.mrb[52].mxu1 %vm279_vm0, %v16418_v55  ;;  %v3947_v5 = vld [vmem:[%s18131_s3 + $0x30] sm:$0xff] }
 0x224   : > { %v3901_v53 = vmax.f32 %v3869_v8, 0.0  ;;  %v14379_v61 = vadd.f32 %v3777_v48, %v2236_v60  ;;  %v16430_v20 = vld [vmem:[#allocation2 + $0x170] sm:$0xff]  ;;  %v3948_v8 = vld [vmem:[%s18131_s3 + $0x38] sm:$0xff] }
 0x225   : > { %3934 = vst.msk [vmem:[#allocation2 + $0x1b0] sm:$0xff] %vm279_vm0, %v3902_v19  ;;  %v3872_v1 = vadd.f32 %v14378_v17, %v16285_v7  ;;  %v16424_v10 = vld [vmem:[#allocation2 + $0x168] sm:$0xff]  ;;  %v16483_v46 = vpack.c.bf16 %v3948_v8, %v3947_v5  ;;  %v3949_v8 = vld [vmem:[%s18131_s3 + $0x40] sm:$0xff] }
 0x226   : > { %3933 = vst.msk [vmem:[#allocation2 + $0x1a8] sm:$0xff] %vm279_vm0, %v3901_v53  ;;  %v3871_v12 = vadd.f32 %v14379_v61, %v16285_v7  ;;  %v13097_v16 = vpop.f32.mrb[30].mxu1  ;;  %v13302_v18 = vpop.f32.mrb[28].mxu0  ;;  %13343 = vmatprep.mubr.msk.f32.mxu1 %vm279_vm0, %v16424_v10  ;;  %v16486_v19 = vld [vmem:[#allocation2 + $0x27] sm:$0xff]  ;;  %v16492_v17 = vld [vmem:[#allocation2 + $0x2f] sm:$0xff] }
 0x227   : > { %v3904_v25 = vmax.f32 %v3872_v1, 0.0  ;;  %v14380_v27 = vadd.f32 %v13302_v18, %v13094_v30  ;;  %v2256_v28 = vpop.f32.mrb[31].mxu1  ;;  %v3787_v29 = vpop.f32.mrb[29].mxu0  ;;  %13344 = vmatmul.mubr.msk.f32.gmra.mrb[54].mxu1 %vm279_vm0, %v16430_v20  ;;  %v3960_v30 = vld [vmem:[#allocation2 + $0xf] sm:$0xff]  ;;  %v16512_v61 = vld [vmem:[#allocation2 + $0x87] sm:$0xff] }
 0x228   : > { %v3903_v32 = vmax.f32 %v3871_v12, 0.0  ;;  %v14381_v33 = vadd.f32 %v3787_v29, %v2246_v59  ;;  %v16442_v52 = vld [vmem:[#allocation2 + $0x190] sm:$0xff]  ;;  %v16496_v59 = vld [vmem:[#allocation2 + $0x47] sm:$0xff] }
 0x229   : > { %3936 = vst.msk [vmem:[#allocation2 + $0x1d0] sm:$0xff] %vm279_vm0, %v3904_v25  ;;  %v3874_v34 = vadd.f32 %v14380_v27, %v16285_v7  ;;  %v16436_v37 = vld [vmem:[#allocation2 + $0x188] sm:$0xff] }
 0x22a   : > { %3935 = vst.msk [vmem:[#allocation2 + $0x1c8] sm:$0xff] %vm279_vm0, %v3903_v32  ;;  %v3873_v43 = vadd.f32 %v14381_v33, %v16285_v7  ;;  %v13305_v45 = vpop.f32.mrb[30].mxu0  ;;  %13346 = vmatprep.mubr.msk.f32.mxu1 %vm279_vm0, %v16436_v37  ;;  %v16500_v48 = vld [vmem:[#allocation2 + $0x4f] sm:$0xff]  ;;  %v16520_v12 = vld [vmem:[#allocation2 + $0xa7] sm:$0xff] }
 0x22b   : > { %v3906_v54 = vmax.f32 %v3874_v34, 0.0  ;;  %v14382_v6 = vadd.f32 %v13305_v45, %v13097_v16  ;;  %v3797_v38 = vpop.f32.mrb[31].mxu0  ;;  %13347 = vmatmul.mubr.msk.f32.gmra.mrb[56].mxu1 %vm279_vm0, %v16442_v52  ;;  %v16508_v53 = vld [vmem:[#allocation2 + $0x6f] sm:$0xff]  ;;  %v16528_v18 = vld [vmem:[#allocation2 + $0xc7] sm:$0xff] }
 0x22c   : > { %v3905_v40 = vmax.f32 %v3873_v43, 0.0  ;;  %v14383_v41 = vadd.f32 %v3797_v38, %v2256_v28  ;;  %v16454_v15 = vld [vmem:[#allocation2 + $0x1b0] sm:$0xff]  ;;  %v16536_v27 = vld [vmem:[#allocation2 + $0xe7] sm:$0xff] }
 0x22d   : > { %3938 = vst.msk [vmem:[#allocation2 + $0x1f0] sm:$0xff] %vm279_vm0, %v3906_v54  ;;  %v3876_v42 = vadd.f32 %v14382_v6, %v16285_v7  ;;  %v16448_v2 = vld [vmem:[#allocation2 + $0x1a8] sm:$0xff] }
 0x22e   : > { %3937 = vst.msk [vmem:[#allocation2 + $0x1e8] sm:$0xff] %vm279_vm0, %v3905_v40  ;;  %v3875_v13 = vadd.f32 %v14383_v41, %v16285_v7  ;;  %13349 = vmatprep.mubr.msk.f32.mxu1 %vm279_vm0, %v16448_v2  ;;  %v16516_v1 = vld [vmem:[#allocation2 + $0x8f] sm:$0xff]  ;;  %v16544_v29 = vld [vmem:[#allocation2 + $0x107] sm:$0xff] }
 0x22f   : > { %v3908_v11 = vmax.f32 %v3876_v42, 0.0  ;;  %13350 = vmatmul.mubr.msk.f32.gmra.mrb[58].mxu1 %vm279_vm0, %v16454_v15  ;;  %v16524_v16 = vld [vmem:[#allocation2 + $0xaf] sm:$0xff]  ;;  %v16552_v33 = vld [vmem:[#allocation2 + $0x127] sm:$0xff] }
 0x230   : > { %v3907_v47 = vmax.f32 %v3875_v13, 0.0  ;;  %v16464_v7 = vld [vmem:[#allocation2 + $0x1d0] sm:$0xff]  ;;  %v16560_v43 = vld [vmem:[#allocation2 + $0x147] sm:$0xff] }
 0x231   : > { %3940 = vst.msk [vmem:[#allocation2 + $0x210] sm:$0xff] %vm279_vm0, %v3908_v11  ;;  %v16459_v60 = vld [vmem:[#allocation2 + $0x1c8] sm:$0xff]  ;;  %18368 = vst [vmem:[#allocation3_spill] sm:$0xff] %v16464_v7 }
 0x232   : > { %18367 = vst [vmem:[#allocation29_spill] sm:$0xff] %v16459_v60  ;;  %3939 = vst.msk [vmem:[#allocation2 + $0x208] sm:$0xff] %vm279_vm0, %v3907_v47  ;;  %13352 = vmatprep.mubr.msk.f32.mxu1 %vm279_vm0, %v16459_v60  ;;  %v16532_v25 = vld [vmem:[#allocation2 + $0xcf] sm:$0xff]  ;;  %v16568_v54 = vld [vmem:[#allocation2 + $0x167] sm:$0xff] }
 0x233   : > { %13353 = vmatmul.mubr.msk.f32.gmra.mrb[60].mxu1 %vm279_vm0, %v16464_v7  ;;  %v16540_v28 = vld [vmem:[#allocation2 + $0xef] sm:$0xff]  ;;  %v16576_v38 = vld [vmem:[#allocation2 + $0x187] sm:$0xff] }
 0x234   : > { %v16472_v0 = vld [vmem:[#allocation2 + $0x1f0] sm:$0xff]  ;;  %v16584_v41 = vld [vmem:[#allocation2 + $0x1a7] sm:$0xff] }
 0x235   : > { %v16468_v24 = vld [vmem:[#allocation2 + $0x1e8] sm:$0xff]  ;;  %18370 = vst [vmem:[#allocation4_spill] sm:$0xff] %v16472_v0  ;;  %v16624_v60 = vld [vmem:[#allocation2 + $0x31] sm:$0xff] }
 0x236   : > { %18369 = vst [vmem:[#allocation31_spill] sm:$0xff] %v16468_v24  ;;  %13355 = vmatprep.mubr.msk.f32.mxu1 %vm279_vm0, %v16468_v24  ;;  %v16548_v32 = vld [vmem:[#allocation2 + $0x10f] sm:$0xff]  ;;  %v16592_v13 = vld [vmem:[#allocation2 + $0x1c7] sm:$0xff] }
 0x237   : > { %13356 = vmatmul.mubr.msk.f32.gmra.mrb[62].mxu1 %vm279_vm0, %v16472_v0  ;;  %v16556_v34 = vld [vmem:[#allocation2 + $0x12f] sm:$0xff]  ;;  %v16600_v47 = vld [vmem:[#allocation2 + $0x1e7] sm:$0xff] }
 0x238   : > { %13362 = vmatprep.mubr.msk.f32.mxu1 %vm279_vm0, %v3959_v63  ;;  %v16564_v45 = vld [vmem:[#allocation2 + $0x14f] sm:$0xff] }
 0x239   : > { %v16572_v6 = vld [vmem:[#allocation2 + $0x16f] sm:$0xff] }
 0x23a   : > { %v16580_v40 = vld [vmem:[#allocation2 + $0x18f] sm:$0xff] }
 0x23b   : > { %13363 = vmatmul.mubr.msk.f32.vlgmr.msra.gmra.mrb[32].mxu1 %vm279_vm0, %v3960_v30  ;;  %v16588_v42 = vld [vmem:[#allocation2 + $0x1af] sm:$0xff] }
 0x23c   : > { %14289 = vmatpush3.bf16.msra.mxu1 %v16269_v31  ;;  %13365 = vmatprep.mubr.msk.f32.mxu1 %vm279_vm0, %v16486_v19  ;;  %v16504_v31 = vld [vmem:[#allocation2 + $0x67] sm:$0xff]  ;;  %v16596_v11 = vld [vmem:[#allocation2 + $0x1cf] sm:$0xff] }
 0x23d   : > { %14291 = vmatprep.subr.bf16.mxu1 %v16483_v46  ;;  %v4665_v63 = vld [vmem:[#allocation2 + $0x9] sm:$0xff]  ;;  %v4666_v0 = vld [vmem:[#allocation2 + $0x11] sm:$0xff] }
 0x23e   : > { %v16604_v5 = vld [vmem:[#allocation2 + $0x1ef] sm:$0xff] }
 0x23f   : > { %13366 = vmatmul.mubr.msk.f32.gmra.mrb[34].mxu1 %vm279_vm0, %v16492_v17  ;;  %v3950_v30 = vld [vmem:[%s18131_s3 + $0x48] sm:$0xff] }
 0x240   : > { %13368 = vmatprep.mubr.msk.f32.mxu1 %vm279_vm0, %v16496_v59  ;;  %v16615_v24 = vpack.c.bf16 %v3950_v30, %v3949_v8  ;;  %v16618_v7 = vld [vmem:[#allocation2 + $0x29] sm:$0xff]  ;;  %v16640_v8 = vld [vmem:[#allocation2 + $0x71] sm:$0xff] }
 0x241   : > { %18374 = vst [vmem:[#allocation6_spill] sm:$0xff] %v16640_v8  ;;  %v16644_v30 = vld [vmem:[#allocation2 + $0x89] sm:$0xff] }
 0x242   : > { %18375 = vst [vmem:[#allocation21_spill] sm:$0xff] %v16644_v30 }
 0x243   : > { %13369 = vmatmul.mubr.msk.f32.gmra.mrb[36].mxu1 %vm279_vm0, %v16500_v48 }
 0x244   : > { %13371 = vmatprep.mubr.msk.f32.mxu1 %vm279_vm0, %v16504_v31 }
 0x247   : > { %13372 = vmatmul.mubr.msk.f32.gmra.mrb[38].mxu1 %vm279_vm0, %v16508_v53 }
 0x248   : > { %13374 = vmatprep.mubr.msk.f32.mxu1 %vm279_vm0, %v16512_v61 }
 0x24b   : > { %13375 = vmatmul.mubr.msk.f32.gmra.mrb[40].mxu1 %vm279_vm0, %v16516_v1 }
 0x24c   : > { %13377 = vmatprep.mubr.msk.f32.mxu1 %vm279_vm0, %v16520_v12 }
 0x24f   : > { %13378 = vmatmul.mubr.msk.f32.gmra.mrb[42].mxu1 %vm279_vm0, %v16524_v16 }
 0x250   : > { %13380 = vmatprep.mubr.msk.f32.mxu1 %vm279_vm0, %v16528_v18 }
 0x253   : > { %13381 = vmatmul.mubr.msk.f32.gmra.mrb[44].mxu1 %vm279_vm0, %v16532_v25 }
 0x254   : > { %13383 = vmatprep.mubr.msk.f32.mxu1 %vm279_vm0, %v16536_v27 }
 0x257   : > { %13384 = vmatmul.mubr.msk.f32.gmra.mrb[46].mxu1 %vm279_vm0, %v16540_v28 }
 0x258   : > { %13386 = vmatprep.mubr.msk.f32.mxu1 %vm279_vm0, %v16544_v29 }
 0x25b   : > { %13387 = vmatmul.mubr.msk.f32.gmra.mrb[48].mxu1 %vm279_vm0, %v16548_v32 }
 0x25c   : > { %13389 = vmatprep.mubr.msk.f32.mxu1 %vm279_vm0, %v16552_v33 }
 0x25f   : > { %13390 = vmatmul.mubr.msk.f32.gmra.mrb[50].mxu1 %vm279_vm0, %v16556_v34 }
 0x260   : > { %13392 = vmatprep.mubr.msk.f32.mxu1 %vm279_vm0, %v16560_v43 }
 0x263   : > { %13393 = vmatmul.mubr.msk.f32.gmra.mrb[52].mxu1 %vm279_vm0, %v16564_v45 }
 0x264   : > { %13395 = vmatprep.mubr.msk.f32.mxu1 %vm279_vm0, %v16568_v54 }
 0x267   : > { %13396 = vmatmul.mubr.msk.f32.gmra.mrb[54].mxu1 %vm279_vm0, %v16572_v6 }
 0x268   : > { %13398 = vmatprep.mubr.msk.f32.mxu1 %vm279_vm0, %v16576_v38 }
 0x26b   : > { %13399 = vmatmul.mubr.msk.f32.gmra.mrb[56].mxu1 %vm279_vm0, %v16580_v40 }
 0x26c   : > { %13401 = vmatprep.mubr.msk.f32.mxu1 %vm279_vm0, %v16584_v41 }
 0x26f   : > { %13402 = vmatmul.mubr.msk.f32.gmra.mrb[58].mxu1 %vm279_vm0, %v16588_v42 }
 0x270   : > { %13404 = vmatprep.mubr.msk.f32.mxu1 %vm279_vm0, %v16592_v13 }
 0x273   : > { %13405 = vmatmul.mubr.msk.f32.gmra.mrb[60].mxu1 %vm279_vm0, %v16596_v11 }
 0x274   : > { %13407 = vmatprep.mubr.msk.f32.mxu1 %vm279_vm0, %v16600_v47 }
 0x277   : > { %13408 = vmatmul.mubr.msk.f32.gmra.mrb[62].mxu1 %vm279_vm0, %v16604_v5 }
 0x278   : > { %13414 = vmatprep.mubr.msk.f32.mxu1 %vm279_vm0, %v4665_v63  ;;  %v16628_v63 = vld [vmem:[#allocation2 + $0x49] sm:$0xff] }
 0x279   : > { %18371 = vst [vmem:[#allocation19_spill] sm:$0xff] %v16628_v63 }
 0x27b   : > { %13415 = vmatmul.mubr.msk.f32.vlgmr.msra.gmra.mrb[32].mxu1 %vm279_vm0, %v4666_v0  ;;  %v16632_v0 = vld [vmem:[#allocation2 + $0x51] sm:$0xff] }
 0x27c   : > { %14293 = vmatpush3.bf16.msra.mxu1 %v16483_v46  ;;  %13417 = vmatprep.mubr.msk.f32.mxu1 %vm279_vm0, %v16618_v7  ;;  %18372 = vst [vmem:[#allocation5_spill] sm:$0xff] %v16632_v0  ;;  %v16636_v46 = vld [vmem:[#allocation2 + $0x69] sm:$0xff] }
 0x27d   : > { %14295 = vmatprep.subr.bf16.mxu1 %v16615_v24  ;;  %18373 = vst [vmem:[#allocation20_spill] sm:$0xff] %v16636_v46 }
 0x27f   : > { %13418 = vmatmul.mubr.msk.f32.gmra.mrb[34].mxu1 %vm279_vm0, %v16624_v60 }
 0x280   : > { %13420 = vmatprep.mubr.msk.f32.mxu1 %vm279_vm0, %v16628_v63  ;;  %v16648_v63 = vld [vmem:[#allocation2 + $0x91] sm:$0xff] }
 0x281   : > { %18376 = vst [vmem:[#allocation7_spill] sm:$0xff] %v16648_v63 }
 0x283   : > { %13421 = vmatmul.mubr.msk.f32.gmra.mrb[36].mxu1 %vm279_vm0, %v16632_v0  ;;  %v16652_v0 = vld [vmem:[#allocation2 + $0xa9] sm:$0xff] }
 0x284   : > { %13423 = vmatprep.mubr.msk.f32.mxu1 %vm279_vm0, %v16636_v46  ;;  %18377 = vst [vmem:[#allocation8_spill] sm:$0xff] %v16652_v0  ;;  %v16656_v46 = vld [vmem:[#allocation2 + $0xb1] sm:$0xff] }
 0x285   : > { %18378 = vst [vmem:[#allocation9_spill] sm:$0xff] %v16656_v46 }
 0x287   : > { %13424 = vmatmul.mubr.msk.f32.gmra.mrb[38].mxu1 %vm279_vm0, %v16640_v8  ;;  %v16660_v8 = vld [vmem:[#allocation2 + $0xc9] sm:$0xff] }
 0x288   : > { %13426 = vmatprep.mubr.msk.f32.mxu1 %vm279_vm0, %v16644_v30  ;;  %18379 = vst [vmem:[#allocation22_spill] sm:$0xff] %v16660_v8  ;;  %v16664_v30 = vld [vmem:[#allocation2 + $0xd1] sm:$0xff] }
 0x289   : > { %18380 = vst [vmem:[#allocation10_spill] sm:$0xff] %v16664_v30 }
 0x28b   : > { %13427 = vmatmul.mubr.msk.f32.gmra.mrb[40].mxu1 %vm279_vm0, %v16648_v63  ;;  %v16668_v63 = vld [vmem:[#allocation2 + $0xe9] sm:$0xff] }
 0x28c   : > { %13429 = vmatprep.mubr.msk.f32.mxu1 %vm279_vm0, %v16652_v0  ;;  %18381 = vst [vmem:[#allocation23_spill] sm:$0xff] %v16668_v63  ;;  %v16672_v0 = vld [vmem:[#allocation2 + $0xf1] sm:$0xff] }
 0x28d   : > { %18382 = vst [vmem:[#allocation11_spill] sm:$0xff] %v16672_v0 }
 0x28f   : > { %13430 = vmatmul.mubr.msk.f32.gmra.mrb[42].mxu1 %vm279_vm0, %v16656_v46  ;;  %v16676_v46 = vld [vmem:[#allocation2 + $0x109] sm:$0xff] }
 0x290   : > { %13432 = vmatprep.mubr.msk.f32.mxu1 %vm279_vm0, %v16660_v8  ;;  %18383 = vst [vmem:[#allocation24_spill] sm:$0xff] %v16676_v46  ;;  %v16680_v8 = vld [vmem:[#allocation2 + $0x111] sm:$0xff] }
 0x291   : > { %18384 = vst [vmem:[#allocation12_spill] sm:$0xff] %v16680_v8 }
 0x293   : > { %13433 = vmatmul.mubr.msk.f32.gmra.mrb[44].mxu1 %vm279_vm0, %v16664_v30  ;;  %v16684_v30 = vld [vmem:[#allocation2 + $0x129] sm:$0xff] }
 0x294   : > { %13435 = vmatprep.mubr.msk.f32.mxu1 %vm279_vm0, %v16668_v63  ;;  %18385 = vst [vmem:[#allocation25_spill] sm:$0xff] %v16684_v30  ;;  %v16688_v63 = vld [vmem:[#allocation2 + $0x131] sm:$0xff] }
 0x295   : > { %18386 = vst [vmem:[#allocation13_spill] sm:$0xff] %v16688_v63 }
 0x297   : > { %13436 = vmatmul.mubr.msk.f32.gmra.mrb[46].mxu1 %vm279_vm0, %v16672_v0  ;;  %v16692_v0 = vld [vmem:[#allocation2 + $0x149] sm:$0xff] }
 0x298   : > { %13438 = vmatprep.mubr.msk.f32.mxu1 %vm279_vm0, %v16676_v46  ;;  %18387 = vst [vmem:[#allocation26_spill] sm:$0xff] %v16692_v0  ;;  %v16696_v46 = vld [vmem:[#allocation2 + $0x151] sm:$0xff] }
 0x299   : > { %18388 = vst [vmem:[#allocation14_spill] sm:$0xff] %v16696_v46 }
 0x29b   : > { %13439 = vmatmul.mubr.msk.f32.gmra.mrb[48].mxu1 %vm279_vm0, %v16680_v8  ;;  %v16700_v8 = vld [vmem:[#allocation2 + $0x169] sm:$0xff] }
 0x29c   : > { %13441 = vmatprep.mubr.msk.f32.mxu1 %vm279_vm0, %v16684_v30  ;;  %18389 = vst [vmem:[#allocation27_spill] sm:$0xff] %v16700_v8  ;;  %v16704_v30 = vld [vmem:[#allocation2 + $0x171] sm:$0xff] }
 0x29d   : > { %18390 = vst [vmem:[#allocation15_spill] sm:$0xff] %v16704_v30 }
 0x29f   : > { %13442 = vmatmul.mubr.msk.f32.gmra.mrb[50].mxu1 %vm279_vm0, %v16688_v63  ;;  %v16708_v63 = vld [vmem:[#allocation2 + $0x189] sm:$0xff] }
 0x2a0   : > { %13444 = vmatprep.mubr.msk.f32.mxu1 %vm279_vm0, %v16692_v0  ;;  %18391 = vst [vmem:[#allocation28_spill] sm:$0xff] %v16708_v63  ;;  %v16712_v0 = vld [vmem:[#allocation2 + $0x191] sm:$0xff] }
 0x2a1   : > { %18392 = vst [vmem:[#allocation16_spill] sm:$0xff] %v16712_v0 }
 0x2a3   : > { %13445 = vmatmul.mubr.msk.f32.gmra.mrb[52].mxu1 %vm279_vm0, %v16696_v46  ;;  %v16716_v46 = vld [vmem:[#allocation2 + $0x1a9] sm:$0xff] }
 0x2a4   : > { %13447 = vmatprep.mubr.msk.f32.mxu1 %vm279_vm0, %v16700_v8  ;;  %18393 = vst [vmem:[#allocation17_spill] sm:$0xff] %v16716_v46  ;;  %v16720_v8 = vld [vmem:[#allocation2 + $0x1b1] sm:$0xff] }
 0x2a5   : > { %18394 = vst [vmem:[#allocation30_spill] sm:$0xff] %v16720_v8 }
 0x2a7   : > { %13448 = vmatmul.mubr.msk.f32.gmra.mrb[54].mxu1 %vm279_vm0, %v16704_v30  ;;  %v16724_v30 = vld [vmem:[#allocation2 + $0x1c9] sm:$0xff] }
 0x2a8   : > { %13450 = vmatprep.mubr.msk.f32.mxu1 %vm279_vm0, %v16708_v63  ;;  %18395 = vst [vmem:[#allocation18_spill] sm:$0xff] %v16724_v30  ;;  %v16728_v63 = vld [vmem:[#allocation2 + $0x1d1] sm:$0xff] }
 0x2a9   : > { %18396 = vst [vmem:[#allocation32_spill] sm:$0xff] %v16728_v63 }
 0x2ab   : > { %13451 = vmatmul.mubr.msk.f32.gmra.mrb[56].mxu1 %vm279_vm0, %v16712_v0  ;;  %v16732_v0 = vld [vmem:[#allocation2 + $0x1e9] sm:$0xff] }
 0x2ac   : > { %13453 = vmatprep.mubr.msk.f32.mxu1 %vm279_vm0, %v16716_v46  ;;  %v16736_v46 = vld [vmem:[#allocation2 + $0x1f1] sm:$0xff] }
 0x2ad   : > { %18397 = vst [vmem:[#allocation33_spill] sm:$0xff] %v16736_v46 }
 0x2af   : > { %13454 = vmatmul.mubr.msk.f32.gmra.mrb[58].mxu1 %vm279_vm0, %v16720_v8  ;;  %v3951_v8 = vld [vmem:[%s18131_s3 + $0x50] sm:$0xff] }
 0x2b0   : > { %13456 = vmatprep.mubr.msk.f32.mxu1 %vm279_vm0, %v16724_v30  ;;  %v3952_v30 = vld [vmem:[%s18131_s3 + $0x58] sm:$0xff] }
 0x2b3   : > { %13457 = vmatmul.mubr.msk.f32.gmra.mrb[60].mxu1 %vm279_vm0, %v16728_v63  ;;  %v14298_v63 = vpack.c.bf16 %v3952_v30, %v3951_v8  ;;  %v3954_v8 = vld [vmem:[%s18131_s3 + $0x68] sm:$0xff] }
 0x2b4   : > { %13459 = vmatprep.mubr.msk.f32.mxu1 %vm279_vm0, %v16732_v0 }
 0x2b7   : > { %13460 = vmatmul.mubr.msk.f32.gmra.mrb[62].mxu1 %vm279_vm0, %v16736_v46 }
 0x2b8   : > { %13466 = vmatprep.mubr.msk.f32.mxu1 %vm279_vm0, %v16486_v19  ;;  %v16811_v19 = vld [vmem:[#allocation2 + $0x20f] sm:$0xff] }
 0x2bb   : > { %13467 = vmatmul.mubr.msk.f32.vlgmr.msra.gmra.mrb[32].mxu1 %vm279_vm0, %v16492_v17  ;;  %v3953_v17 = vld [vmem:[%s18131_s3 + $0x60] sm:$0xff] }
 0x2bc   : > { %14297 = vmatpush3.bf16.msra.mxu1 %v16615_v24  ;;  %13469 = vmatprep.mubr.msk.f32.mxu1 %vm279_vm0, %v16496_v59  ;;  %v16807_v24 = vld [vmem:[#allocation2 + $0x207] sm:$0xff]  ;;  %v14302_v30 = vpack.c.bf16 %v3954_v8, %v3953_v17 }
 0x2bd   : > { %14299 = vmatprep.subr.bf16.mxu1 %v14298_v63  ;;  %v18413_v17 = vld [vmem:[#allocation11_spill] sm:$0xff]  ;;  %v18414_v8 = vld [vmem:[#allocation24_spill] sm:$0xff] }
 0x2bf   : > { %13470 = vmatmul.mubr.msk.f32.gmra.mrb[34].mxu1 %vm279_vm0, %v16500_v48 }
 0x2c0   : > { %13472 = vmatprep.mubr.msk.f32.mxu1 %vm279_vm0, %v16504_v31 }
 0x2c3   : > { %13473 = vmatmul.mubr.msk.f32.gmra.mrb[36].mxu1 %vm279_vm0, %v16508_v53 }
 0x2c4   : > { %13475 = vmatprep.mubr.msk.f32.mxu1 %vm279_vm0, %v16512_v61 }
 0x2c7   : > { %13476 = vmatmul.mubr.msk.f32.gmra.mrb[38].mxu1 %vm279_vm0, %v16516_v1 }
 0x2c8   : > { %13478 = vmatprep.mubr.msk.f32.mxu1 %vm279_vm0, %v16520_v12 }
 0x2cb   : > { %13479 = vmatmul.mubr.msk.f32.gmra.mrb[40].mxu1 %vm279_vm0, %v16524_v16 }
 0x2cc   : > { %13481 = vmatprep.mubr.msk.f32.mxu1 %vm279_vm0, %v16528_v18 }
 0x2cf   : > { %13482 = vmatmul.mubr.msk.f32.gmra.mrb[42].mxu1 %vm279_vm0, %v16532_v25 }
 0x2d0   : > { %13484 = vmatprep.mubr.msk.f32.mxu1 %vm279_vm0, %v16536_v27 }
 0x2d3   : > { %13485 = vmatmul.mubr.msk.f32.gmra.mrb[44].mxu1 %vm279_vm0, %v16540_v28 }
 0x2d4   : > { %13487 = vmatprep.mubr.msk.f32.mxu1 %vm279_vm0, %v16544_v29 }
 0x2d7   : > { %13488 = vmatmul.mubr.msk.f32.gmra.mrb[46].mxu1 %vm279_vm0, %v16548_v32 }
 0x2d8   : > { %13490 = vmatprep.mubr.msk.f32.mxu1 %vm279_vm0, %v16552_v33 }
 0x2db   : > { %13491 = vmatmul.mubr.msk.f32.gmra.mrb[48].mxu1 %vm279_vm0, %v16556_v34 }
 0x2dc   : > { %13493 = vmatprep.mubr.msk.f32.mxu1 %vm279_vm0, %v16560_v43 }
 0x2df   : > { %13494 = vmatmul.mubr.msk.f32.gmra.mrb[50].mxu1 %vm279_vm0, %v16564_v45 }
 0x2e0   : > { %13496 = vmatprep.mubr.msk.f32.mxu1 %vm279_vm0, %v16568_v54 }
 0x2e3   : > { %13497 = vmatmul.mubr.msk.f32.gmra.mrb[52].mxu1 %vm279_vm0, %v16572_v6 }
 0x2e4   : > { %13499 = vmatprep.mubr.msk.f32.mxu1 %vm279_vm0, %v16576_v38 }
 0x2e7   : > { %13500 = vmatmul.mubr.msk.f32.gmra.mrb[54].mxu1 %vm279_vm0, %v16580_v40 }
 0x2e8   : > { %13502 = vmatprep.mubr.msk.f32.mxu1 %vm279_vm0, %v16584_v41 }
 0x2eb   : > { %13503 = vmatmul.mubr.msk.f32.gmra.mrb[56].mxu1 %vm279_vm0, %v16588_v42 }
 0x2ec   : > { %13505 = vmatprep.mubr.msk.f32.mxu1 %vm279_vm0, %v16592_v13 }
 0x2ef   : > { %13506 = vmatmul.mubr.msk.f32.gmra.mrb[58].mxu1 %vm279_vm0, %v16596_v11 }
 0x2f0   : > { %13508 = vmatprep.mubr.msk.f32.mxu1 %vm279_vm0, %v16600_v47 }
 0x2f3   : > { %13509 = vmatmul.mubr.msk.f32.gmra.mrb[60].mxu1 %vm279_vm0, %v16604_v5 }
 0x2f4   : > { %13511 = vmatprep.mubr.msk.f32.mxu1 %vm279_vm0, %v16807_v24 }
 0x2f7   : > { %13512 = vmatmul.mubr.msk.f32.gmra.mrb[62].mxu1 %vm279_vm0, %v16811_v19 }
 0x2f8   : > { %13518 = vmatprep.mubr.msk.f32.mxu1 %vm279_vm0, %v16299_v21  ;;  %v18398_v21 = vld [vmem:[#allocation29_spill] sm:$0xff] }
 0x2fb   : > { %13519 = vmatmul.mubr.msk.f32.vlgmr.msra.gmra.mrb[32].mxu1 %vm279_vm0, %v16305_v4  ;;  %v18399_v4 = vld [vmem:[#allocation3_spill] sm:$0xff] }
 0x2fc   : > { %14301 = vmatpush3.bf16.msra.mxu1 %v14298_v63  ;;  %13521 = vmatprep.mubr.msk.f32.mxu1 %vm279_vm0, %v16311_v22  ;;  %v18400_v22 = vld [vmem:[#allocation31_spill] sm:$0xff] }
 0x2fd   : > { %14303 = vmatprep.subr.bf16.mxu1 %v14302_v30  ;;  %v18412_v63 = vld [vmem:[#allocation23_spill] sm:$0xff] }
 0x2ff   : > { %13522 = vmatmul.mubr.msk.f32.gmra.mrb[34].mxu1 %vm279_vm0, %v16317_v26  ;;  %v18401_v26 = vld [vmem:[#allocation4_spill] sm:$0xff] }
 0x300   : > { %13524 = vmatprep.mubr.msk.f32.mxu1 %vm279_vm0, %v16324_v35  ;;  %v16881_v35 = vld [vmem:[#allocation2 + $0x208] sm:$0xff] }
 0x303   : > { %13525 = vmatmul.mubr.msk.f32.gmra.mrb[36].mxu1 %vm279_vm0, %v16330_v39  ;;  %v16885_v39 = vld [vmem:[#allocation2 + $0x210] sm:$0xff] }
 0x304   : > { %13527 = vmatprep.mubr.msk.f32.mxu1 %vm279_vm0, %v16338_v9  ;;  %v3955_v9 = vld [vmem:[%s18131_s3 + $0x70] sm:$0xff] }
 0x307   : > { %13528 = vmatmul.mubr.msk.f32.gmra.mrb[38].mxu1 %vm279_vm0, %v16344_v56  ;;  %v3956_v56 = vld [vmem:[%s18131_s3 + $0x78] sm:$0xff] }
 0x308   : > { %13530 = vmatprep.mubr.msk.f32.mxu1 %vm279_vm0, %v16352_v44  ;;  %v14306_v44 = vpack.c.bf16 %v3956_v56, %v3955_v9  ;;  %v18416_v9 = vld [vmem:[#allocation25_spill] sm:$0xff] }
 0x309   : > { %v18417_v56 = vld [vmem:[#allocation13_spill] sm:$0xff] }
 0x30b   : > { %13531 = vmatmul.mubr.msk.f32.gmra.mrb[40].mxu1 %vm279_vm0, %v16358_v62  ;;  %v18402_v62 = vld [vmem:[#allocation19_spill] sm:$0xff] }
 0x30c   : > { %13533 = vmatprep.mubr.msk.f32.mxu1 %vm279_vm0, %v16364_v49  ;;  %v18403_v49 = vld [vmem:[#allocation5_spill] sm:$0xff] }
 0x30f   : > { %13534 = vmatmul.mubr.msk.f32.gmra.mrb[42].mxu1 %vm279_vm0, %v16370_v58  ;;  %v18404_v58 = vld [vmem:[#allocation20_spill] sm:$0xff] }
 0x310   : > { %13536 = vmatprep.mubr.msk.f32.mxu1 %vm279_vm0, %v16376_v14  ;;  %v18405_v14 = vld [vmem:[#allocation6_spill] sm:$0xff] }
 0x313   : > { %13537 = vmatmul.mubr.msk.f32.gmra.mrb[44].mxu1 %vm279_vm0, %v16382_v23  ;;  %v18406_v23 = vld [vmem:[#allocation21_spill] sm:$0xff] }
 0x314   : > { %13539 = vmatprep.mubr.msk.f32.mxu1 %vm279_vm0, %v16388_v36  ;;  %v18407_v36 = vld [vmem:[#allocation7_spill] sm:$0xff] }
 0x317   : > { %13540 = vmatmul.mubr.msk.f32.gmra.mrb[46].mxu1 %vm279_vm0, %v16394_v50  ;;  %v18408_v50 = vld [vmem:[#allocation8_spill] sm:$0xff] }
 0x318   : > { %13542 = vmatprep.mubr.msk.f32.mxu1 %vm279_vm0, %v16400_v57  ;;  %v18409_v57 = vld [vmem:[#allocation9_spill] sm:$0xff] }
 0x31b   : > { %13543 = vmatmul.mubr.msk.f32.gmra.mrb[48].mxu1 %vm279_vm0, %v16406_v3 }
 0x31c   : > { %13545 = vmatprep.mubr.msk.f32.mxu1 %vm279_vm0, %v16412_v51 }
 0x31f   : > { %13546 = vmatmul.mubr.msk.f32.gmra.mrb[50].mxu1 %vm279_vm0, %v16418_v55 }
 0x320   : > { %13548 = vmatprep.mubr.msk.f32.mxu1 %vm279_vm0, %v16424_v10 }
 0x323   : > { %13549 = vmatmul.mubr.msk.f32.gmra.mrb[52].mxu1 %vm279_vm0, %v16430_v20 }
 0x324   : > { %13551 = vmatprep.mubr.msk.f32.mxu1 %vm279_vm0, %v16436_v37 }
 0x327   : > { %13552 = vmatmul.mubr.msk.f32.gmra.mrb[54].mxu1 %vm279_vm0, %v16442_v52 }
 0x328   : > { %13554 = vmatprep.mubr.msk.f32.mxu1 %vm279_vm0, %v16448_v2 }
 0x32b   : > { %13555 = vmatmul.mubr.msk.f32.gmra.mrb[56].mxu1 %vm279_vm0, %v16454_v15 }
 0x32c   : > { %13557 = vmatprep.mubr.msk.f32.mxu1 %vm279_vm0, %v18398_v21 }
 0x32f   : > { %13558 = vmatmul.mubr.msk.f32.gmra.mrb[58].mxu1 %vm279_vm0, %v18399_v4 }
 0x330   : > { %13560 = vmatprep.mubr.msk.f32.mxu1 %vm279_vm0, %v18400_v22 }
 0x333   : > { %13561 = vmatmul.mubr.msk.f32.gmra.mrb[60].mxu1 %vm279_vm0, %v18401_v26 }
 0x334   : > { %13563 = vmatprep.mubr.msk.f32.mxu1 %vm279_vm0, %v16881_v35 }
 0x337   : > { %13564 = vmatmul.mubr.msk.f32.gmra.mrb[62].mxu1 %vm279_vm0, %v16885_v39 }
 0x338   : > { %13570 = vmatprep.mubr.msk.f32.mxu1 %vm279_vm0, %v16618_v7  ;;  %v18411_v7 = vld [vmem:[#allocation10_spill] sm:$0xff] }
 0x33b   : > { %13571 = vmatmul.mubr.msk.f32.vlgmr.msra.gmra.mrb[32].mxu1 %vm279_vm0, %v16624_v60  ;;  %v18410_v60 = vld [vmem:[#allocation22_spill] sm:$0xff] }
 0x33c   : > { %14305 = vmatpush3.bf16.msra.mxu1 %v14302_v30  ;;  %13573 = vmatprep.mubr.msk.f32.mxu1 %vm279_vm0, %v18402_v62  ;;  %v18415_v30 = vld [vmem:[#allocation12_spill] sm:$0xff] }
 0x33d   : > { %14307 = vmatprep.subr.bf16.mxu1 %v14306_v44 }
 0x33f   : > { %13574 = vmatmul.mubr.msk.f32.gmra.mrb[34].mxu1 %vm279_vm0, %v18403_v49 }
 0x340   : > { %13576 = vmatprep.mubr.msk.f32.mxu1 %vm279_vm0, %v18404_v58 }
 0x343   : > { %13577 = vmatmul.mubr.msk.f32.gmra.mrb[36].mxu1 %vm279_vm0, %v18405_v14 }
 0x344   : > { %13579 = vmatprep.mubr.msk.f32.mxu1 %vm279_vm0, %v18406_v23 }
 0x347   : > { %13580 = vmatmul.mubr.msk.f32.gmra.mrb[38].mxu1 %vm279_vm0, %v18407_v36 }
 0x348   : > { %13582 = vmatprep.mubr.msk.f32.mxu1 %vm279_vm0, %v18408_v50 }
 0x34b   : > { %13583 = vmatmul.mubr.msk.f32.gmra.mrb[40].mxu1 %vm279_vm0, %v18409_v57 }
 0x34c   : > { %13585 = vmatprep.mubr.msk.f32.mxu1 %vm279_vm0, %v18410_v60  ;;  %v18418_v60 = vld [vmem:[#allocation26_spill] sm:$0xff] }
 0x34f   : > { %13586 = vmatmul.mubr.msk.f32.gmra.mrb[42].mxu1 %vm279_vm0, %v18411_v7  ;;  %v18419_v7 = vld [vmem:[#allocation14_spill] sm:$0xff] }
 0x350   : > { %13588 = vmatprep.mubr.msk.f32.mxu1 %vm279_vm0, %v18412_v63  ;;  %v18420_v63 = vld [vmem:[#allocation27_spill] sm:$0xff] }
 0x353   : > { %13589 = vmatmul.mubr.msk.f32.gmra.mrb[44].mxu1 %vm279_vm0, %v18413_v17  ;;  %v18421_v17 = vld [vmem:[#allocation15_spill] sm:$0xff] }
 0x354   : > { %13591 = vmatprep.mubr.msk.f32.mxu1 %vm279_vm0, %v18414_v8  ;;  %v18422_v8 = vld [vmem:[#allocation28_spill] sm:$0xff] }
 0x357   : > { %13592 = vmatmul.mubr.msk.f32.gmra.mrb[46].mxu1 %vm279_vm0, %v18415_v30  ;;  %v18423_v30 = vld [vmem:[#allocation16_spill] sm:$0xff] }
 0x358   : > { %13594 = vmatprep.mubr.msk.f32.mxu1 %vm279_vm0, %v18416_v9  ;;  %v18424_v9 = vld [vmem:[#allocation17_spill] sm:$0xff] }
 0x35b   : > { %13595 = vmatmul.mubr.msk.f32.gmra.mrb[48].mxu1 %vm279_vm0, %v18417_v56  ;;  %v18425_v56 = vld [vmem:[#allocation30_spill] sm:$0xff] }
 0x35c   : > { %13597 = vmatprep.mubr.msk.f32.mxu1 %vm279_vm0, %v18418_v60  ;;  %v18426_v60 = vld [vmem:[#allocation18_spill] sm:$0xff] }
 0x35f   : > { %13598 = vmatmul.mubr.msk.f32.gmra.mrb[50].mxu1 %vm279_vm0, %v18419_v7  ;;  %v18427_v7 = vld [vmem:[#allocation32_spill] sm:$0xff] }
 0x360   : > { %13600 = vmatprep.mubr.msk.f32.mxu1 %vm279_vm0, %v18420_v63 }
 0x363   : > { %13601 = vmatmul.mubr.msk.f32.gmra.mrb[52].mxu1 %vm279_vm0, %v18421_v17 }
 0x364   : > { %13603 = vmatprep.mubr.msk.f32.mxu1 %vm279_vm0, %v18422_v8  ;;  %v16955_v8 = vld [vmem:[#allocation2 + $0x209] sm:$0xff] }
 0x367   : > { %13604 = vmatmul.mubr.msk.f32.gmra.mrb[54].mxu1 %vm279_vm0, %v18423_v30 }
 0x368   : > { %13606 = vmatprep.mubr.msk.f32.mxu1 %vm279_vm0, %v18424_v9  ;;  %v16959_v9 = vld [vmem:[#allocation2 + $0x211] sm:$0xff] }
 0x36b   : > { %13607 = vmatmul.mubr.msk.f32.gmra.mrb[56].mxu1 %vm279_vm0, %v18425_v56 }
 0x36c   : > { %13609 = vmatprep.mubr.msk.f32.mxu1 %vm279_vm0, %v18426_v60  ;;  %v3957_v60 = vld [vmem:[%s18131_s3 + $0x80] sm:$0xff] }
 0x36f   : > { %13610 = vmatmul.mubr.msk.f32.gmra.mrb[58].mxu1 %vm279_vm0, %v18427_v7  ;;  %v3958_v7 = vld [vmem:[%s18131_s3 + $0x88] sm:$0xff] }
 0x370   : > { %13612 = vmatprep.mubr.msk.f32.mxu1 %vm279_vm0, %v16732_v0 }
 0x373   : > { %13613 = vmatmul.mubr.msk.f32.gmra.mrb[60].mxu1 %vm279_vm0, %v16736_v46  ;;  %v14310_v46 = vpack.c.bf16 %v3958_v7, %v3957_v60 }
 0x374   : > { %13615 = vmatprep.mubr.msk.f32.mxu1 %vm279_vm0, %v16955_v8 }
 0x377   : > { %13616 = vmatmul.mubr.msk.f32.gmra.mrb[62].mxu1 %vm279_vm0, %v16959_v9 }
 0x378   : > { %13622 = vmatprep.mubr.msk.f32.mxu1 %vm279_vm0, %v16496_v59  ;;  %v6235_v59 = vld [vmem:[#allocation2 + $0x227] sm:$0xff] }
 0x37b   : > { %13623 = vmatmul.mubr.msk.f32.vlgmr.msra.gmra.mrb[32].mxu1 %vm279_vm0, %v16500_v48  ;;  %v6236_v48 = vld [vmem:[#allocation2 + $0x22f] sm:$0xff] }
 0x37c   : > { %14309 = vmatpush3.bf16.msra.mxu1 %v14306_v44  ;;  %13625 = vmatprep.mubr.msk.f32.mxu1 %vm279_vm0, %v16504_v31  ;;  %v6590_v31 = vld [vmem:[#allocation2 + $0x48] sm:$0xff]  ;;  %v17166_v44 = vld [vmem:[%s18132_s4] ss:$0 sm:$0xff] }
 0x37d   : > { %14311 = vmatprep.subr.bf16.mxu1 %v14310_v46 }
 0x37f   : > { %13626 = vmatmul.mubr.msk.f32.gmra.mrb[34].mxu1 %vm279_vm0, %v16508_v53  ;;  %v7465_v53 = vld [vmem:[%s18133_s5 + $0x10] sm:$0xff] }
 0x380   : > { %13628 = vmatprep.mubr.msk.f32.mxu1 %vm279_vm0, %v16512_v61  ;;  %v7466_v61 = vld [vmem:[%s18133_s5 + $0x18] sm:$0xff] }
 0x383   : > { %13629 = vmatmul.mubr.msk.f32.gmra.mrb[36].mxu1 %vm279_vm0, %v16516_v1  ;;  %v14314_v1 = vpack.c.bf16 %v7466_v61, %v7465_v53 }
 0x384   : > { %13631 = vmatprep.mubr.msk.f32.mxu1 %vm279_vm0, %v16520_v12  ;;  %v6591_v12 = vld [vmem:[#allocation2 + $0x50] sm:$0xff] }
 0x385   : > { %14315 = vmatprep.subr.bf16.mxu0 %v14314_v1 }
 0x386   : > { %14317 = vmatpush3.bf16.msra.mxu0 %v14314_v1 }
 0x387   : > { %13632 = vmatmul.mubr.msk.f32.gmra.mrb[38].mxu1 %vm279_vm0, %v16524_v16  ;;  %v6592_v16 = vld [vmem:[#allocation2 + $0x68] sm:$0xff] }
 0x388   : > { %13634 = vmatprep.mubr.msk.f32.mxu1 %vm279_vm0, %v16528_v18  ;;  %v6593_v18 = vld [vmem:[#allocation2 + $0x70] sm:$0xff] }
 0x38b   : > { %13635 = vmatmul.mubr.msk.f32.gmra.mrb[40].mxu1 %vm279_vm0, %v16532_v25  ;;  %v6594_v25 = vld [vmem:[#allocation2 + $0x88] sm:$0xff] }
 0x38c   : > { %13637 = vmatprep.mubr.msk.f32.mxu1 %vm279_vm0, %v16536_v27  ;;  %v6595_v27 = vld [vmem:[#allocation2 + $0x90] sm:$0xff] }
 0x38f   : > { %13638 = vmatmul.mubr.msk.f32.gmra.mrb[42].mxu1 %vm279_vm0, %v16540_v28  ;;  %v6596_v28 = vld [vmem:[#allocation2 + $0xa8] sm:$0xff] }
 0x390   : > { %13640 = vmatprep.mubr.msk.f32.mxu1 %vm279_vm0, %v16544_v29  ;;  %v6597_v29 = vld [vmem:[#allocation2 + $0xb0] sm:$0xff] }
 0x393   : > { %13641 = vmatmul.mubr.msk.f32.gmra.mrb[44].mxu1 %vm279_vm0, %v16548_v32  ;;  %v6598_v32 = vld [vmem:[#allocation2 + $0xc8] sm:$0xff] }
 0x394   : > { %13643 = vmatprep.mubr.msk.f32.mxu1 %vm279_vm0, %v16552_v33  ;;  %v6599_v33 = vld [vmem:[#allocation2 + $0xd0] sm:$0xff] }
 0x397   : > { %13644 = vmatmul.mubr.msk.f32.gmra.mrb[46].mxu1 %vm279_vm0, %v16556_v34  ;;  %v6600_v34 = vld [vmem:[#allocation2 + $0xe8] sm:$0xff] }
 0x398   : > { %13646 = vmatprep.mubr.msk.f32.mxu1 %vm279_vm0, %v16560_v43  ;;  %v6601_v43 = vld [vmem:[#allocation2 + $0xf0] sm:$0xff] }
 0x39b   : > { %13647 = vmatmul.mubr.msk.f32.gmra.mrb[48].mxu1 %vm279_vm0, %v16564_v45  ;;  %v6602_v45 = vld [vmem:[#allocation2 + $0x108] sm:$0xff] }
 0x39c   : > { %13649 = vmatprep.mubr.msk.f32.mxu1 %vm279_vm0, %v16568_v54  ;;  %v6603_v54 = vld [vmem:[#allocation2 + $0x110] sm:$0xff] }
 0x39f   : > { %13650 = vmatmul.mubr.msk.f32.gmra.mrb[50].mxu1 %vm279_vm0, %v16572_v6  ;;  %v6604_v6 = vld [vmem:[#allocation2 + $0x128] sm:$0xff] }
 0x3a0   : > { %13652 = vmatprep.mubr.msk.f32.mxu1 %vm279_vm0, %v16576_v38  ;;  %v18435_v38 = vld [vmem:[#allocation13_spill] sm:$0xff] }
 0x3a3   : > { %13653 = vmatmul.mubr.msk.f32.gmra.mrb[52].mxu1 %vm279_vm0, %v16580_v40  ;;  %v18436_v40 = vld [vmem:[#allocation26_spill] sm:$0xff] }
 0x3a4   : > { %13655 = vmatprep.mubr.msk.f32.mxu1 %vm279_vm0, %v16584_v41  ;;  %v18437_v41 = vld [vmem:[#allocation14_spill] sm:$0xff] }
 0x3a7   : > { %13656 = vmatmul.mubr.msk.f32.gmra.mrb[54].mxu1 %vm279_vm0, %v16588_v42  ;;  %v18438_v42 = vld [vmem:[#allocation28_spill] sm:$0xff] }
 0x3a8   : > { %13658 = vmatprep.mubr.msk.f32.mxu1 %vm279_vm0, %v16592_v13  ;;  %v18439_v13 = vld [vmem:[#allocation17_spill] sm:$0xff] }
 0x3ab   : > { %13659 = vmatmul.mubr.msk.f32.gmra.mrb[56].mxu1 %vm279_vm0, %v16596_v11  ;;  %v18440_v11 = vld [vmem:[#allocation18_spill] sm:$0xff] }
 0x3ac   : > { %13661 = vmatprep.mubr.msk.f32.mxu1 %vm279_vm0, %v16600_v47  ;;  %v18441_v47 = vld [vmem:[#allocation32_spill] sm:$0xff] }
 0x3af   : > { %13662 = vmatmul.mubr.msk.f32.gmra.mrb[58].mxu1 %vm279_vm0, %v16604_v5  ;;  %v18442_v5 = vld [vmem:[#allocation33_spill] sm:$0xff] }
 0x3b0   : > { %13664 = vmatprep.mubr.msk.f32.mxu1 %vm279_vm0, %v16807_v24  ;;  %v7006_v24 = vld [vmem:[#allocation2 + $0x231] sm:$0xff] }
 0x3b3   : > { %13665 = vmatmul.mubr.msk.f32.gmra.mrb[60].mxu1 %vm279_vm0, %v16811_v19  ;;  %v7513_v19 = vld [vmem:[#allocation2 + $0x8] sm:$0xff] }
 0x3b4   : > { %13667 = vmatprep.mubr.msk.f32.mxu1 %vm279_vm0, %v6235_v59  ;;  %13778 = vmatprep.mubr.msk.f32.mxu0 %vm279_vm0, %v7513_v19 }
 0x3b7   : > { %13668 = vmatmul.mubr.msk.f32.gmra.mrb[62].mxu1 %vm279_vm0, %v6236_v48 }
 0x3b8   : > { %13674 = vmatprep.mubr.msk.f32.mxu1 %vm279_vm0, %v6590_v31 }
 0x3bb   : > { %13675 = vmatmul.mubr.msk.f32.vlgmr.msra.gmra.mrb[32].mxu1 %vm279_vm0, %v6591_v12 }
 0x3bc   : > { %14313 = vmatpush3.bf16.msra.mxu1 %v14310_v46  ;;  %13677 = vmatprep.mubr.msk.f32.mxu1 %vm279_vm0, %v6592_v16  ;;  %v7005_v46 = vld [vmem:[#allocation2 + $0x229] sm:$0xff] }
 0x3bf   : > { %13678 = vmatmul.mubr.msk.f32.gmra.mrb[34].mxu1 %vm279_vm0, %v6593_v18 }
 0x3c0   : > { %13680 = vmatprep.mubr.msk.f32.mxu1 %vm279_vm0, %v6594_v25 }
 0x3c3   : > { %13681 = vmatmul.mubr.msk.f32.gmra.mrb[36].mxu1 %vm279_vm0, %v6595_v27 }
 0x3c4   : > { %13683 = vmatprep.mubr.msk.f32.mxu1 %vm279_vm0, %v6596_v28 }
 0x3c7   : > { %13684 = vmatmul.mubr.msk.f32.gmra.mrb[38].mxu1 %vm279_vm0, %v6597_v29 }
 0x3c8   : > { %13686 = vmatprep.mubr.msk.f32.mxu1 %vm279_vm0, %v6598_v32 }
 0x3cb   : > { %13687 = vmatmul.mubr.msk.f32.gmra.mrb[40].mxu1 %vm279_vm0, %v6599_v33 }
 0x3cc   : > { %13689 = vmatprep.mubr.msk.f32.mxu1 %vm279_vm0, %v6600_v34 }
 0x3cf   : > { %13690 = vmatmul.mubr.msk.f32.gmra.mrb[42].mxu1 %vm279_vm0, %v6601_v43 }
 0x3d0   : > { %13692 = vmatprep.mubr.msk.f32.mxu1 %vm279_vm0, %v6602_v45 }
 0x3d3   : > { %13693 = vmatmul.mubr.msk.f32.gmra.mrb[44].mxu1 %vm279_vm0, %v6603_v54 }
 0x3d4   : > { %13695 = vmatprep.mubr.msk.f32.mxu1 %vm279_vm0, %v6604_v6 }
 0x3d7   : > { %13696 = vmatmul.mubr.msk.f32.gmra.mrb[46].mxu1 %vm279_vm0, %v16406_v3  ;;  %v6620_v3 = vld [vmem:[#allocation2 + $0x228] sm:$0xff] }
 0x3d8   : > { %13698 = vmatprep.mubr.msk.f32.mxu1 %vm279_vm0, %v16412_v51  ;;  %v6621_v51 = vld [vmem:[#allocation2 + $0x230] sm:$0xff] }
 0x3db   : > { %13699 = vmatmul.mubr.msk.f32.gmra.mrb[48].mxu1 %vm279_vm0, %v16418_v55  ;;  %v18428_v55 = vld [vmem:[#allocation22_spill] sm:$0xff] }
 0x3dc   : > { %13701 = vmatprep.mubr.msk.f32.mxu1 %vm279_vm0, %v16424_v10  ;;  %v18429_v10 = vld [vmem:[#allocation10_spill] sm:$0xff] }
 0x3df   : > { %13702 = vmatmul.mubr.msk.f32.gmra.mrb[50].mxu1 %vm279_vm0, %v16430_v20  ;;  %v18430_v20 = vld [vmem:[#allocation23_spill] sm:$0xff] }
 0x3e0   : > { %13704 = vmatprep.mubr.msk.f32.mxu1 %vm279_vm0, %v16436_v37  ;;  %v18431_v37 = vld [vmem:[#allocation11_spill] sm:$0xff] }
 0x3e3   : > { %13705 = vmatmul.mubr.msk.f32.gmra.mrb[52].mxu1 %vm279_vm0, %v16442_v52  ;;  %v18432_v52 = vld [vmem:[#allocation24_spill] sm:$0xff] }
 0x3e4   : > { %13707 = vmatprep.mubr.msk.f32.mxu1 %vm279_vm0, %v16448_v2  ;;  %v18433_v2 = vld [vmem:[#allocation12_spill] sm:$0xff] }
 0x3e7   : > { %13708 = vmatmul.mubr.msk.f32.gmra.mrb[54].mxu1 %vm279_vm0, %v16454_v15  ;;  %v18434_v15 = vld [vmem:[#allocation25_spill] sm:$0xff] }
 0x3e8   : > { %13710 = vmatprep.mubr.msk.f32.mxu1 %vm279_vm0, %v18398_v21  ;;  %v7514_v21 = vld [vmem:[#allocation2 + $0x10] sm:$0xff] }
 0x3e9   : > { %13779 = vmatmul.mubr.msk.f32.vlgmr.msra.gmra.mrb[32].mxu0 %vm279_vm0, %v7514_v21 }
 0x3eb   : > { %13711 = vmatmul.mubr.msk.f32.gmra.mrb[56].mxu1 %vm279_vm0, %v18399_v4  ;;  %v7464_v4 = vld [vmem:[%s18133_s5 + $0x8] sm:$0xff] }
 0x3ec   : > { %13713 = vmatprep.mubr.msk.f32.mxu1 %vm279_vm0, %v18400_v22 }
 0x3ef   : > { %13714 = vmatmul.mubr.msk.f32.gmra.mrb[58].mxu1 %vm279_vm0, %v18401_v26  ;;  %v7467_v26 = vld [vmem:[%s18133_s5 + $0x20] sm:$0xff] }
 0x3f0   : > { %13716 = vmatprep.mubr.msk.f32.mxu1 %vm279_vm0, %v16881_v35  ;;  %v7468_v35 = vld [vmem:[%s18133_s5 + $0x28] sm:$0xff] }
 0x3f3   : > { %13717 = vmatmul.mubr.msk.f32.gmra.mrb[60].mxu1 %vm279_vm0, %v16885_v39  ;;  %v17160_v39 = vpack.c.bf16 %v7468_v35, %v7467_v26 }
 0x3f4   : > { %13719 = vmatprep.mubr.msk.f32.mxu1 %vm279_vm0, %v6620_v3 }
 0x3f7   : > { %13720 = vmatmul.mubr.msk.f32.gmra.mrb[62].mxu1 %vm279_vm0, %v6621_v51 }
 0x3f8   : > { %13726 = vmatprep.mubr.msk.f32.mxu1 %vm279_vm0, %v18402_v62 }
 0x3fb   : > { %13727 = vmatmul.mubr.msk.f32.vlgmr.msra.gmra.mrb[32].mxu1 %vm279_vm0, %v18403_v49 }
 0x3fc   : > { %13729 = vmatprep.mubr.msk.f32.mxu1 %vm279_vm0, %v18404_v58 }
 0x3ff   : > { %13730 = vmatmul.mubr.msk.f32.gmra.mrb[34].mxu1 %vm279_vm0, %v18405_v14 }
 0x400   : > { %13732 = vmatprep.mubr.msk.f32.mxu1 %vm279_vm0, %v18406_v23 }
 0x403   : > { %13733 = vmatmul.mubr.msk.f32.gmra.mrb[36].mxu1 %vm279_vm0, %v18407_v36 }
 0x404   : > { %13735 = vmatprep.mubr.msk.f32.mxu1 %vm279_vm0, %v18408_v50 }
 0x407   : > { %13736 = vmatmul.mubr.msk.f32.gmra.mrb[38].mxu1 %vm279_vm0, %v18409_v57 }
 0x408   : > { %13738 = vmatprep.mubr.msk.f32.mxu1 %vm279_vm0, %v18428_v55 }
 0x40b   : > { %13739 = vmatmul.mubr.msk.f32.gmra.mrb[40].mxu1 %vm279_vm0, %v18429_v10 }
 0x40c   : > { %13741 = vmatprep.mubr.msk.f32.mxu1 %vm279_vm0, %v18430_v20 }
 0x40f   : > { %13742 = vmatmul.mubr.msk.f32.gmra.mrb[42].mxu1 %vm279_vm0, %v18431_v37 }
 0x410   : > { %13744 = vmatprep.mubr.msk.f32.mxu1 %vm279_vm0, %v18432_v52 }
 0x413   : > { %13745 = vmatmul.mubr.msk.f32.gmra.mrb[44].mxu1 %vm279_vm0, %v18433_v2 }
 0x414   : > { %13747 = vmatprep.mubr.msk.f32.mxu1 %vm279_vm0, %v18434_v15 }
 0x417   : > { %13748 = vmatmul.mubr.msk.f32.gmra.mrb[46].mxu1 %vm279_vm0, %v18435_v38 }
 0x418   : > { %13750 = vmatprep.mubr.msk.f32.mxu1 %vm279_vm0, %v18436_v40 }
 0x41b   : > { %13751 = vmatmul.mubr.msk.f32.gmra.mrb[48].mxu1 %vm279_vm0, %v18437_v41 }
 0x41c   : > { %13753 = vmatprep.mubr.msk.f32.mxu1 %vm279_vm0, %v18420_v63 }
 0x41f   : > { %13754 = vmatmul.mubr.msk.f32.gmra.mrb[50].mxu1 %vm279_vm0, %v18421_v17 }
 0x420   : > { %13756 = vmatprep.mubr.msk.f32.mxu1 %vm279_vm0, %v18438_v42 }
 0x423   : > { %13757 = vmatmul.mubr.msk.f32.gmra.mrb[52].mxu1 %vm279_vm0, %v18423_v30 }
 0x424   : > { %13759 = vmatprep.mubr.msk.f32.mxu1 %vm279_vm0, %v18439_v13 }
 0x427   : > { %13760 = vmatmul.mubr.msk.f32.gmra.mrb[54].mxu1 %vm279_vm0, %v18425_v56 }
 0x428   : > { %13762 = vmatprep.mubr.msk.f32.mxu1 %vm279_vm0, %v18440_v11 }
 0x42b   : > { %13763 = vmatmul.mubr.msk.f32.gmra.mrb[56].mxu1 %vm279_vm0, %v18441_v47 }
 0x42c   : > { %13765 = vmatprep.mubr.msk.f32.mxu1 %vm279_vm0, %v16732_v0  ;;  %v7463_v0 = vld [vmem:[%s18133_s5] sm:$0xff] }
 0x42d   : > { %v14318_v22 = vpack.c.bf16 %v7464_v4, %v7463_v0 }
 0x42f   : > { %13766 = vmatmul.mubr.msk.f32.gmra.mrb[58].mxu1 %vm279_vm0, %v18442_v5  ;;  %14319 = vmatprep.subr.bf16.mxu0 %v14318_v22 }
 0x430   : > { %13768 = vmatprep.mubr.msk.f32.mxu1 %vm279_vm0, %v16955_v8  ;;  %14321 = vmatpush3.bf16.msra.mxu0 %v14318_v22 }
 0x431   : > { %14323 = vmatprep.subr.bf16.mxu0 %v17160_v39 }
 0x433   : > { %13769 = vmatmul.mubr.msk.f32.gmra.mrb[60].mxu1 %vm279_vm0, %v16959_v9 }
 0x434   : > { %13771 = vmatprep.mubr.msk.f32.mxu1 %vm279_vm0, %v7005_v46 }
 0x437   : > { %13772 = vmatmul.mubr.msk.f32.gmra.mrb[62].mxu1 %vm279_vm0, %v7006_v24 }
 0x4ce   : > { %v13728_v62 = vpop.f32.mrb[32].mxu1 }
 0x4cf   : > { %v7368_v49 = vadd.f32 %v13728_v62, %v17166_v44  ;;  %v7169_v58 = vpop.f32.mrb[33].mxu1 }
 0x4d0   : > { %v7367_v14 = vadd.f32 %v17166_v44, %v7169_v58 }
 0x4d1   : > { %v7400_v23 = vmax.f32 %v7368_v49, 0.0 }
 0x4d2   : > { %v7399_v36 = vmax.f32 %v7367_v14, 0.0  ;;  %v13731_v50 = vpop.f32.mrb[34].mxu1 }
 0x4d3   : > { %7432 = vst.msk [vmem:[#allocation2 + $0x30] sm:$0xff] %vm279_vm0, %v7400_v23  ;;  %v7370_v57 = vadd.f32 %v13731_v50, %v17166_v44  ;;  %v7179_v60 = vpop.f32.mrb[35].mxu1 }
 0x4d4   : > { %7431 = vst.msk [vmem:[#allocation2 + $0x28] sm:$0xff] %vm279_vm0, %v7399_v36  ;;  %v7369_v7 = vadd.f32 %v17166_v44, %v7179_v60 }
 0x4d5   : > { %v7402_v63 = vmax.f32 %v7370_v57, 0.0 }
 0x4d6   : > { %v7401_v17 = vmax.f32 %v7369_v7, 0.0  ;;  %v13734_v8 = vpop.f32.mrb[36].mxu1 }
 0x4d7   : > { %7434 = vst.msk [vmem:[#allocation2 + $0x50] sm:$0xff] %vm279_vm0, %v7402_v63  ;;  %v7372_v30 = vadd.f32 %v13734_v8, %v17166_v44  ;;  %v7189_v9 = vpop.f32.mrb[37].mxu1 }
 0x4d8   : > { %7433 = vst.msk [vmem:[#allocation2 + $0x48] sm:$0xff] %vm279_vm0, %v7401_v17  ;;  %v7371_v56 = vadd.f32 %v17166_v44, %v7189_v9 }
 0x4d9   : > { %v7404_v59 = vmax.f32 %v7372_v30, 0.0 }
 0x4da   : > { %v7403_v48 = vmax.f32 %v7371_v56, 0.0  ;;  %v13737_v31 = vpop.f32.mrb[38].mxu1  ;;  %v17186_v16 = vld [vmem:[#allocation2 + $0x30] sm:$0xff] }
 0x4db   : > { %7436 = vst.msk [vmem:[#allocation2 + $0x70] sm:$0xff] %vm279_vm0, %v7404_v59  ;;  %v7374_v53 = vadd.f32 %v13737_v31, %v17166_v44  ;;  %v7199_v61 = vpop.f32.mrb[39].mxu1  ;;  %v17180_v1 = vld [vmem:[#allocation2 + $0x28] sm:$0xff] }
 0x4dc   : > { %7435 = vst.msk [vmem:[#allocation2 + $0x68] sm:$0xff] %vm279_vm0, %v7403_v48  ;;  %v7373_v12 = vadd.f32 %v17166_v44, %v7199_v61  ;;  %13781 = vmatprep.mubr.msk.f32.mxu0 %vm279_vm0, %v17180_v1 }
 0x4dd   : > { %v7406_v18 = vmax.f32 %v7374_v53, 0.0  ;;  %13782 = vmatmul.mubr.msk.f32.gmra.mrb[34].mxu0 %vm279_vm0, %v17186_v16 }
 0x4de   : > { %v7405_v25 = vmax.f32 %v7373_v12, 0.0  ;;  %v13740_v27 = vpop.f32.mrb[40].mxu1  ;;  %v17198_v34 = vld [vmem:[#allocation2 + $0x50] sm:$0xff] }
 0x4df   : > { %7438 = vst.msk [vmem:[#allocation2 + $0x90] sm:$0xff] %vm279_vm0, %v7406_v18  ;;  %v7376_v28 = vadd.f32 %v13740_v27, %v17166_v44  ;;  %v7209_v29 = vpop.f32.mrb[41].mxu1  ;;  %v17192_v32 = vld [vmem:[#allocation2 + $0x48] sm:$0xff] }
 0x4e0   : > { %7437 = vst.msk [vmem:[#allocation2 + $0x88] sm:$0xff] %vm279_vm0, %v7405_v25  ;;  %v7375_v33 = vadd.f32 %v17166_v44, %v7209_v29  ;;  %13784 = vmatprep.mubr.msk.f32.mxu0 %vm279_vm0, %v17192_v32 }
 0x4e1   : > { %v7408_v43 = vmax.f32 %v7376_v28, 0.0  ;;  %13785 = vmatmul.mubr.msk.f32.gmra.mrb[36].mxu0 %vm279_vm0, %v17198_v34 }
 0x4e2   : > { %v7407_v45 = vmax.f32 %v7375_v33, 0.0  ;;  %v13743_v54 = vpop.f32.mrb[42].mxu1  ;;  %v17210_v10 = vld [vmem:[#allocation2 + $0x70] sm:$0xff] }
 0x4e3   : > { %7440 = vst.msk [vmem:[#allocation2 + $0xb0] sm:$0xff] %vm279_vm0, %v7408_v43  ;;  %v7378_v6 = vadd.f32 %v13743_v54, %v17166_v44  ;;  %v7219_v3 = vpop.f32.mrb[43].mxu1  ;;  %v17204_v51 = vld [vmem:[#allocation2 + $0x68] sm:$0xff] }
 0x4e4   : > { %7439 = vst.msk [vmem:[#allocation2 + $0xa8] sm:$0xff] %vm279_vm0, %v7407_v45  ;;  %v7377_v55 = vadd.f32 %v17166_v44, %v7219_v3  ;;  %13787 = vmatprep.mubr.msk.f32.mxu0 %vm279_vm0, %v17204_v51 }
 0x4e5   : > { %v7410_v20 = vmax.f32 %v7378_v6, 0.0  ;;  %13788 = vmatmul.mubr.msk.f32.gmra.mrb[38].mxu0 %vm279_vm0, %v17210_v10 }
 0x4e6   : > { %v7409_v37 = vmax.f32 %v7377_v55, 0.0  ;;  %v13746_v52 = vpop.f32.mrb[44].mxu1  ;;  %v17222_v41 = vld [vmem:[#allocation2 + $0x90] sm:$0xff] }
 0x4e7   : > { %7442 = vst.msk [vmem:[#allocation2 + $0xd0] sm:$0xff] %vm279_vm0, %v7410_v20  ;;  %v7380_v2 = vadd.f32 %v13746_v52, %v17166_v44  ;;  %v7229_v15 = vpop.f32.mrb[45].mxu1  ;;  %v17216_v38 = vld [vmem:[#allocation2 + $0x88] sm:$0xff] }
 0x4e8   : > { %7441 = vst.msk [vmem:[#allocation2 + $0xc8] sm:$0xff] %vm279_vm0, %v7409_v37  ;;  %v7379_v40 = vadd.f32 %v17166_v44, %v7229_v15  ;;  %13790 = vmatprep.mubr.msk.f32.mxu0 %vm279_vm0, %v17216_v38 }
 0x4e9   : > { %v7412_v42 = vmax.f32 %v7380_v2, 0.0  ;;  %13791 = vmatmul.mubr.msk.f32.gmra.mrb[40].mxu0 %vm279_vm0, %v17222_v41 }
 0x4ea   : > { %v7411_v13 = vmax.f32 %v7379_v40, 0.0  ;;  %v13749_v11 = vpop.f32.mrb[46].mxu1  ;;  %v17234_v19 = vld [vmem:[#allocation2 + $0xb0] sm:$0xff] }
 0x4eb   : > { %7444 = vst.msk [vmem:[#allocation2 + $0xf0] sm:$0xff] %vm279_vm0, %v7412_v42  ;;  %v7382_v47 = vadd.f32 %v13749_v11, %v17166_v44  ;;  %v7239_v5 = vpop.f32.mrb[47].mxu1  ;;  %v17228_v46 = vld [vmem:[#allocation2 + $0xa8] sm:$0xff] }
 0x4ec   : > { %7443 = vst.msk [vmem:[#allocation2 + $0xe8] sm:$0xff] %vm279_vm0, %v7411_v13  ;;  %v7381_v24 = vadd.f32 %v17166_v44, %v7239_v5  ;;  %13793 = vmatprep.mubr.msk.f32.mxu0 %vm279_vm0, %v17228_v46 }
 0x4ed   : > { %v7414_v21 = vmax.f32 %v7382_v47, 0.0  ;;  %13794 = vmatmul.mubr.msk.f32.gmra.mrb[42].mxu0 %vm279_vm0, %v17234_v19 }
 0x4ee   : > { %v7413_v0 = vmax.f32 %v7381_v24, 0.0  ;;  %v13752_v4 = vpop.f32.mrb[48].mxu1  ;;  %v17246_v49 = vld [vmem:[#allocation2 + $0xd0] sm:$0xff] }
 0x4ef   : > { %7446 = vst.msk [vmem:[#allocation2 + $0x110] sm:$0xff] %vm279_vm0, %v7414_v21  ;;  %v7384_v22 = vadd.f32 %v13752_v4, %v17166_v44  ;;  %v7249_v26 = vpop.f32.mrb[49].mxu1  ;;  %v17240_v35 = vld [vmem:[#allocation2 + $0xc8] sm:$0xff] }
 0x4f0   : > { %7445 = vst.msk [vmem:[#allocation2 + $0x108] sm:$0xff] %vm279_vm0, %v7413_v0  ;;  %v7383_v62 = vadd.f32 %v17166_v44, %v7249_v26  ;;  %13796 = vmatprep.mubr.msk.f32.mxu0 %vm279_vm0, %v17240_v35 }
 0x4f1   : > { %v7416_v58 = vmax.f32 %v7384_v22, 0.0  ;;  %13797 = vmatmul.mubr.msk.f32.gmra.mrb[44].mxu0 %vm279_vm0, %v17246_v49 }
 0x4f2   : > { %v7415_v14 = vmax.f32 %v7383_v62, 0.0  ;;  %v13755_v23 = vpop.f32.mrb[50].mxu1  ;;  %v17258_v7 = vld [vmem:[#allocation2 + $0xf0] sm:$0xff] }
 0x4f3   : > { %7448 = vst.msk [vmem:[#allocation2 + $0x130] sm:$0xff] %vm279_vm0, %v7416_v58  ;;  %v7386_v36 = vadd.f32 %v13755_v23, %v17166_v44  ;;  %v7259_v50 = vpop.f32.mrb[51].mxu1  ;;  %v17252_v57 = vld [vmem:[#allocation2 + $0xe8] sm:$0xff] }
 0x4f4   : > { %7447 = vst.msk [vmem:[#allocation2 + $0x128] sm:$0xff] %vm279_vm0, %v7415_v14  ;;  %v7385_v60 = vadd.f32 %v17166_v44, %v7259_v50  ;;  %13799 = vmatprep.mubr.msk.f32.mxu0 %vm279_vm0, %v17252_v57 }
 0x4f5   : > { %v7418_v63 = vmax.f32 %v7386_v36, 0.0  ;;  %13800 = vmatmul.mubr.msk.f32.gmra.mrb[46].mxu0 %vm279_vm0, %v17258_v7 }
 0x4f6   : > { %v7417_v17 = vmax.f32 %v7385_v60, 0.0  ;;  %v13758_v8 = vpop.f32.mrb[52].mxu1  ;;  %v17270_v48 = vld [vmem:[#allocation2 + $0x110] sm:$0xff] }
 0x4f7   : > { %7450 = vst.msk [vmem:[#allocation2 + $0x150] sm:$0xff] %vm279_vm0, %v7418_v63  ;;  %v7388_v30 = vadd.f32 %v13758_v8, %v17166_v44  ;;  %v7269_v9 = vpop.f32.mrb[53].mxu1  ;;  %v17264_v56 = vld [vmem:[#allocation2 + $0x108] sm:$0xff] }
 0x4f8   : > { %7449 = vst.msk [vmem:[#allocation2 + $0x148] sm:$0xff] %vm279_vm0, %v7417_v17  ;;  %v7387_v59 = vadd.f32 %v17166_v44, %v7269_v9  ;;  %13802 = vmatprep.mubr.msk.f32.mxu0 %vm279_vm0, %v17264_v56  ;;  %v7481_v9 = vld [vmem:[#allocation2 + $0x7] sm:$0xff] }
 0x4f9   : > { %v7420_v31 = vmax.f32 %v7388_v30, 0.0  ;;  %13803 = vmatmul.mubr.msk.f32.gmra.mrb[48].mxu0 %vm279_vm0, %v17270_v48 }
 0x4fa   : > { %v7419_v53 = vmax.f32 %v7387_v59, 0.0  ;;  %v13761_v61 = vpop.f32.mrb[54].mxu1  ;;  %v17282_v28 = vld [vmem:[#allocation2 + $0x130] sm:$0xff] }
 0x4fb   : > { %7452 = vst.msk [vmem:[#allocation2 + $0x170] sm:$0xff] %vm279_vm0, %v7420_v31  ;;  %v7390_v12 = vadd.f32 %v13761_v61, %v17166_v44  ;;  %v7279_v18 = vpop.f32.mrb[55].mxu1  ;;  %v17276_v25 = vld [vmem:[#allocation2 + $0x128] sm:$0xff]  ;;  %v7469_v31 = vld [vmem:[%s18133_s5 + $0x30] sm:$0xff] }
 0x4fc   : > { %7451 = vst.msk [vmem:[#allocation2 + $0x168] sm:$0xff] %vm279_vm0, %v7419_v53  ;;  %v7389_v27 = vadd.f32 %v17166_v44, %v7279_v18  ;;  %13805 = vmatprep.mubr.msk.f32.mxu0 %vm279_vm0, %v17276_v25  ;;  %v7470_v53 = vld [vmem:[%s18133_s5 + $0x38] sm:$0xff]  ;;  %v7482_v61 = vld [vmem:[#allocation2 + $0xf] sm:$0xff]  ;;  %v17362_v18 = vld [vmem:[#allocation2 + $0x27] sm:$0xff] }
 0x4fd   : > { %v7422_v29 = vmax.f32 %v7390_v12, 0.0  ;;  %13806 = vmatmul.mubr.msk.f32.gmra.mrb[50].mxu0 %vm279_vm0, %v17282_v28  ;;  %v17359_v12 = vpack.c.bf16 %v7470_v53, %v7469_v31  ;;  %v7471_v53 = vld [vmem:[%s18133_s5 + $0x40] sm:$0xff] }
 0x4fe   : > { %v7421_v33 = vmax.f32 %v7389_v27, 0.0  ;;  %v13764_v43 = vpop.f32.mrb[56].mxu1  ;;  %v17294_v55 = vld [vmem:[#allocation2 + $0x150] sm:$0xff] }
 0x4ff   : > { %7454 = vst.msk [vmem:[#allocation2 + $0x190] sm:$0xff] %vm279_vm0, %v7422_v29  ;;  %v7392_v45 = vadd.f32 %v13764_v43, %v17166_v44  ;;  %v7289_v54 = vpop.f32.mrb[57].mxu1  ;;  %v17288_v6 = vld [vmem:[#allocation2 + $0x148] sm:$0xff] }
 0x500   : > { %7453 = vst.msk [vmem:[#allocation2 + $0x188] sm:$0xff] %vm279_vm0, %v7421_v33  ;;  %v7391_v3 = vadd.f32 %v17166_v44, %v7289_v54  ;;  %13808 = vmatprep.mubr.msk.f32.mxu0 %vm279_vm0, %v17288_v6  ;;  %v17368_v27 = vld [vmem:[#allocation2 + $0x2f] sm:$0xff]  ;;  %v17372_v29 = vld [vmem:[#allocation2 + $0x47] sm:$0xff] }
 0x501   : > { %v7424_v20 = vmax.f32 %v7392_v45, 0.0  ;;  %13809 = vmatmul.mubr.msk.f32.gmra.mrb[52].mxu0 %vm279_vm0, %v17294_v55  ;;  %v17376_v33 = vld [vmem:[#allocation2 + $0x4f] sm:$0xff]  ;;  %v17388_v45 = vld [vmem:[#allocation2 + $0x87] sm:$0xff] }
 0x502   : > { %v7423_v37 = vmax.f32 %v7391_v3, 0.0  ;;  %v13767_v52 = vpop.f32.mrb[58].mxu1  ;;  %v17306_v13 = vld [vmem:[#allocation2 + $0x170] sm:$0xff]  ;;  %v17396_v3 = vld [vmem:[#allocation2 + $0xa7] sm:$0xff] }
 0x503   : > { %7456 = vst.msk [vmem:[#allocation2 + $0x1b0] sm:$0xff] %vm279_vm0, %v7424_v20  ;;  %v7394_v2 = vadd.f32 %v13767_v52, %v17166_v44  ;;  %v7299_v15 = vpop.f32.mrb[59].mxu1  ;;  %v17300_v40 = vld [vmem:[#allocation2 + $0x168] sm:$0xff] }
 0x504   : > { %7455 = vst.msk [vmem:[#allocation2 + $0x1a8] sm:$0xff] %vm279_vm0, %v7423_v37  ;;  %v7393_v42 = vadd.f32 %v17166_v44, %v7299_v15  ;;  %13811 = vmatprep.mubr.msk.f32.mxu0 %vm279_vm0, %v17300_v40  ;;  %v17384_v43 = vld [vmem:[#allocation2 + $0x6f] sm:$0xff]  ;;  %v17404_v37 = vld [vmem:[#allocation2 + $0xc7] sm:$0xff] }
 0x505   : > { %v7426_v11 = vmax.f32 %v7394_v2, 0.0  ;;  %13812 = vmatmul.mubr.msk.f32.gmra.mrb[54].mxu0 %vm279_vm0, %v17306_v13  ;;  %v17392_v54 = vld [vmem:[#allocation2 + $0x8f] sm:$0xff]  ;;  %v17412_v2 = vld [vmem:[#allocation2 + $0xe7] sm:$0xff] }
 0x506   : > { %v7425_v47 = vmax.f32 %v7393_v42, 0.0  ;;  %v13770_v5 = vpop.f32.mrb[60].mxu1  ;;  %v17318_v22 = vld [vmem:[#allocation2 + $0x190] sm:$0xff]  ;;  %v17420_v42 = vld [vmem:[#allocation2 + $0x107] sm:$0xff] }
 0x507   : > { %7458 = vst.msk [vmem:[#allocation2 + $0x1d0] sm:$0xff] %vm279_vm0, %v7426_v11  ;;  %v7396_v24 = vadd.f32 %v13770_v5, %v17166_v44  ;;  %v7309_v21 = vpop.f32.mrb[61].mxu1  ;;  %v17312_v0 = vld [vmem:[#allocation2 + $0x188] sm:$0xff] }
 0x508   : > { %7457 = vst.msk [vmem:[#allocation2 + $0x1c8] sm:$0xff] %vm279_vm0, %v7425_v47  ;;  %v7395_v4 = vadd.f32 %v17166_v44, %v7309_v21  ;;  %13814 = vmatprep.mubr.msk.f32.mxu0 %vm279_vm0, %v17312_v0  ;;  %v17400_v20 = vld [vmem:[#allocation2 + $0xaf] sm:$0xff]  ;;  %v17428_v47 = vld [vmem:[#allocation2 + $0x127] sm:$0xff] }
 0x509   : > { %v7428_v26 = vmax.f32 %v7396_v24, 0.0  ;;  %13815 = vmatmul.mubr.msk.f32.gmra.mrb[56].mxu0 %vm279_vm0, %v17318_v22  ;;  %v17408_v52 = vld [vmem:[#allocation2 + $0xcf] sm:$0xff]  ;;  %v17436_v24 = vld [vmem:[#allocation2 + $0x147] sm:$0xff] }
 0x50a   : > { %v7427_v62 = vmax.f32 %v7395_v4, 0.0  ;;  %v13773_v58 = vpop.f32.mrb[62].mxu1  ;;  %v17330_v60 = vld [vmem:[#allocation2 + $0x1b0] sm:$0xff]  ;;  %v17444_v4 = vld [vmem:[#allocation2 + $0x167] sm:$0xff] }
 0x50b   : > { %7460 = vst.msk [vmem:[#allocation2 + $0x1f0] sm:$0xff] %vm279_vm0, %v7428_v26  ;;  %v7398_v14 = vadd.f32 %v13773_v58, %v17166_v44  ;;  %v7319_v23 = vpop.f32.mrb[63].mxu1  ;;  %v17324_v36 = vld [vmem:[#allocation2 + $0x1a8] sm:$0xff] }
 0x50c   : > { %7459 = vst.msk [vmem:[#allocation2 + $0x1e8] sm:$0xff] %vm279_vm0, %v7427_v62  ;;  %v7397_v50 = vadd.f32 %v17166_v44, %v7319_v23  ;;  %13817 = vmatprep.mubr.msk.f32.mxu0 %vm279_vm0, %v17324_v36  ;;  %v17416_v15 = vld [vmem:[#allocation2 + $0xef] sm:$0xff]  ;;  %v17452_v62 = vld [vmem:[#allocation2 + $0x187] sm:$0xff] }
 0x50d   : > { %v7430_v63 = vmax.f32 %v7398_v14, 0.0  ;;  %13818 = vmatmul.mubr.msk.f32.gmra.mrb[58].mxu0 %vm279_vm0, %v17330_v60  ;;  %v17424_v11 = vld [vmem:[#allocation2 + $0x10f] sm:$0xff]  ;;  %v17460_v14 = vld [vmem:[#allocation2 + $0x1a7] sm:$0xff] }
 0x50e   : > { %v7429_v17 = vmax.f32 %v7397_v50, 0.0  ;;  %v17340_v44 = vld [vmem:[#allocation2 + $0x1d0] sm:$0xff] }
 0x50f   : > { %7462 = vst.msk [vmem:[#allocation2 + $0x210] sm:$0xff] %vm279_vm0, %v7430_v63  ;;  %v17335_v8 = vld [vmem:[#allocation2 + $0x1c8] sm:$0xff]  ;;  %18444 = vst [vmem:[#allocation3_spill] sm:$0xff] %v17340_v44 }
 0x510   : > { %18443 = vst [vmem:[#allocation29_spill] sm:$0xff] %v17335_v8  ;;  %7461 = vst.msk [vmem:[#allocation2 + $0x208] sm:$0xff] %vm279_vm0, %v7429_v17  ;;  %13820 = vmatprep.mubr.msk.f32.mxu0 %vm279_vm0, %v17335_v8  ;;  %v17432_v5 = vld [vmem:[#allocation2 + $0x12f] sm:$0xff]  ;;  %v17468_v50 = vld [vmem:[#allocation2 + $0x1c7] sm:$0xff] }
 0x511   : > { %13821 = vmatmul.mubr.msk.f32.gmra.mrb[60].mxu0 %vm279_vm0, %v17340_v44  ;;  %v17440_v21 = vld [vmem:[#allocation2 + $0x14f] sm:$0xff] }
 0x512   : > { %v17348_v59 = vld [vmem:[#allocation2 + $0x1f0] sm:$0xff] }
 0x513   : > { %v17344_v30 = vld [vmem:[#allocation2 + $0x1e8] sm:$0xff]  ;;  %18446 = vst [vmem:[#allocation4_spill] sm:$0xff] %v17348_v59  ;;  %v17500_v8 = vld [vmem:[#allocation2 + $0x31] sm:$0xff] }
 0x514   : > { %18445 = vst [vmem:[#allocation31_spill] sm:$0xff] %v17344_v30  ;;  %13823 = vmatprep.mubr.msk.f32.mxu0 %vm279_vm0, %v17344_v30  ;;  %v17448_v26 = vld [vmem:[#allocation2 + $0x16f] sm:$0xff]  ;;  %v17476_v17 = vld [vmem:[#allocation2 + $0x1e7] sm:$0xff] }
 0x515   : > { %13824 = vmatmul.mubr.msk.f32.gmra.mrb[62].mxu0 %vm279_vm0, %v17348_v59  ;;  %v17456_v58 = vld [vmem:[#allocation2 + $0x18f] sm:$0xff] }
 0x516   : > { %13830 = vmatprep.mubr.msk.f32.mxu0 %vm279_vm0, %v7481_v9  ;;  %v17464_v23 = vld [vmem:[#allocation2 + $0x1af] sm:$0xff] }
 0x517   : > { %v17472_v63 = vld [vmem:[#allocation2 + $0x1cf] sm:$0xff] }
 0x518   : > { %v8187_v9 = vld [vmem:[#allocation2 + $0x9] sm:$0xff]  ;;  %v8188_v59 = vld [vmem:[#allocation2 + $0x11] sm:$0xff] }
 0x519   : > { %13831 = vmatmul.mubr.msk.f32.vlgmr.msra.gmra.mrb[32].mxu0 %vm279_vm0, %v7482_v61  ;;  %v17480_v31 = vld [vmem:[#allocation2 + $0x1ef] sm:$0xff] }
 0x51a   : > { %14325 = vmatpush3.bf16.msra.mxu0 %v17160_v39  ;;  %13833 = vmatprep.mubr.msk.f32.mxu0 %vm279_vm0, %v17362_v18  ;;  %v17380_v39 = vld [vmem:[#allocation2 + $0x67] sm:$0xff] }
 0x51b   : > { %14327 = vmatprep.subr.bf16.mxu0 %v17359_v12  ;;  %v7472_v61 = vld [vmem:[%s18133_s5 + $0x48] sm:$0xff] }
 0x51c   : > { %v17491_v30 = vpack.c.bf16 %v7472_v61, %v7471_v53  ;;  %v17494_v44 = vld [vmem:[#allocation2 + $0x29] sm:$0xff]  ;;  %v17516_v53 = vld [vmem:[#allocation2 + $0x71] sm:$0xff] }
 0x51d   : > { %13834 = vmatmul.mubr.msk.f32.gmra.mrb[34].mxu0 %vm279_vm0, %v17368_v27  ;;  %18450 = vst [vmem:[#allocation6_spill] sm:$0xff] %v17516_v53  ;;  %v17520_v61 = vld [vmem:[#allocation2 + $0x89] sm:$0xff] }
 0x51e   : > { %13836 = vmatprep.mubr.msk.f32.mxu0 %vm279_vm0, %v17372_v29  ;;  %18451 = vst [vmem:[#allocation21_spill] sm:$0xff] %v17520_v61 }
 0x521   : > { %13837 = vmatmul.mubr.msk.f32.gmra.mrb[36].mxu0 %vm279_vm0, %v17376_v33 }
 0x522   : > { %13839 = vmatprep.mubr.msk.f32.mxu0 %vm279_vm0, %v17380_v39 }
 0x525   : > { %13840 = vmatmul.mubr.msk.f32.gmra.mrb[38].mxu0 %vm279_vm0, %v17384_v43 }
 0x526   : > { %13842 = vmatprep.mubr.msk.f32.mxu0 %vm279_vm0, %v17388_v45 }
 0x529   : > { %13843 = vmatmul.mubr.msk.f32.gmra.mrb[40].mxu0 %vm279_vm0, %v17392_v54 }
 0x52a   : > { %13845 = vmatprep.mubr.msk.f32.mxu0 %vm279_vm0, %v17396_v3 }
 0x52d   : > { %13846 = vmatmul.mubr.msk.f32.gmra.mrb[42].mxu0 %vm279_vm0, %v17400_v20 }
 0x52e   : > { %13848 = vmatprep.mubr.msk.f32.mxu0 %vm279_vm0, %v17404_v37 }
 0x531   : > { %13849 = vmatmul.mubr.msk.f32.gmra.mrb[44].mxu0 %vm279_vm0, %v17408_v52 }
 0x532   : > { %13851 = vmatprep.mubr.msk.f32.mxu0 %vm279_vm0, %v17412_v2 }
 0x535   : > { %13852 = vmatmul.mubr.msk.f32.gmra.mrb[46].mxu0 %vm279_vm0, %v17416_v15 }
 0x536   : > { %13854 = vmatprep.mubr.msk.f32.mxu0 %vm279_vm0, %v17420_v42 }
 0x539   : > { %13855 = vmatmul.mubr.msk.f32.gmra.mrb[48].mxu0 %vm279_vm0, %v17424_v11 }
 0x53a   : > { %13857 = vmatprep.mubr.msk.f32.mxu0 %vm279_vm0, %v17428_v47 }
 0x53d   : > { %13858 = vmatmul.mubr.msk.f32.gmra.mrb[50].mxu0 %vm279_vm0, %v17432_v5 }
 0x53e   : > { %13860 = vmatprep.mubr.msk.f32.mxu0 %vm279_vm0, %v17436_v24 }
 0x541   : > { %13861 = vmatmul.mubr.msk.f32.gmra.mrb[52].mxu0 %vm279_vm0, %v17440_v21 }
 0x542   : > { %13863 = vmatprep.mubr.msk.f32.mxu0 %vm279_vm0, %v17444_v4 }
 0x545   : > { %13864 = vmatmul.mubr.msk.f32.gmra.mrb[54].mxu0 %vm279_vm0, %v17448_v26 }
 0x546   : > { %13866 = vmatprep.mubr.msk.f32.mxu0 %vm279_vm0, %v17452_v62 }
 0x549   : > { %13867 = vmatmul.mubr.msk.f32.gmra.mrb[56].mxu0 %vm279_vm0, %v17456_v58 }
 0x54a   : > { %13869 = vmatprep.mubr.msk.f32.mxu0 %vm279_vm0, %v17460_v14 }
 0x54d   : > { %13870 = vmatmul.mubr.msk.f32.gmra.mrb[58].mxu0 %vm279_vm0, %v17464_v23 }
 0x54e   : > { %13872 = vmatprep.mubr.msk.f32.mxu0 %vm279_vm0, %v17468_v50 }
 0x551   : > { %13873 = vmatmul.mubr.msk.f32.gmra.mrb[60].mxu0 %vm279_vm0, %v17472_v63 }
 0x552   : > { %13875 = vmatprep.mubr.msk.f32.mxu0 %vm279_vm0, %v17476_v17 }
 0x555   : > { %13876 = vmatmul.mubr.msk.f32.gmra.mrb[62].mxu0 %vm279_vm0, %v17480_v31 }
 0x556   : > { %13882 = vmatprep.mubr.msk.f32.mxu0 %vm279_vm0, %v8187_v9  ;;  %v17504_v9 = vld [vmem:[#allocation2 + $0x49] sm:$0xff] }
 0x557   : > { %18447 = vst [vmem:[#allocation19_spill] sm:$0xff] %v17504_v9 }
 0x559   : > { %13883 = vmatmul.mubr.msk.f32.vlgmr.msra.gmra.mrb[32].mxu0 %vm279_vm0, %v8188_v59  ;;  %v17508_v59 = vld [vmem:[#allocation2 + $0x51] sm:$0xff] }
 0x55a   : > { %14329 = vmatpush3.bf16.msra.mxu0 %v17359_v12  ;;  %13885 = vmatprep.mubr.msk.f32.mxu0 %vm279_vm0, %v17494_v44  ;;  %18448 = vst [vmem:[#allocation5_spill] sm:$0xff] %v17508_v59  ;;  %v17512_v12 = vld [vmem:[#allocation2 + $0x69] sm:$0xff] }
 0x55b   : > { %14331 = vmatprep.subr.bf16.mxu0 %v17491_v30  ;;  %18449 = vst [vmem:[#allocation20_spill] sm:$0xff] %v17512_v12 }
 0x55d   : > { %13886 = vmatmul.mubr.msk.f32.gmra.mrb[34].mxu0 %vm279_vm0, %v17500_v8 }
 0x55e   : > { %13888 = vmatprep.mubr.msk.f32.mxu0 %vm279_vm0, %v17504_v9  ;;  %v17524_v9 = vld [vmem:[#allocation2 + $0x91] sm:$0xff] }
 0x55f   : > { %18452 = vst [vmem:[#allocation7_spill] sm:$0xff] %v17524_v9 }
 0x561   : > { %13889 = vmatmul.mubr.msk.f32.gmra.mrb[36].mxu0 %vm279_vm0, %v17508_v59  ;;  %v17528_v59 = vld [vmem:[#allocation2 + $0xa9] sm:$0xff] }
 0x562   : > { %13891 = vmatprep.mubr.msk.f32.mxu0 %vm279_vm0, %v17512_v12  ;;  %18453 = vst [vmem:[#allocation8_spill] sm:$0xff] %v17528_v59  ;;  %v17532_v12 = vld [vmem:[#allocation2 + $0xb1] sm:$0xff] }
 0x563   : > { %18454 = vst [vmem:[#allocation9_spill] sm:$0xff] %v17532_v12 }
 0x565   : > { %13892 = vmatmul.mubr.msk.f32.gmra.mrb[38].mxu0 %vm279_vm0, %v17516_v53  ;;  %v17536_v53 = vld [vmem:[#allocation2 + $0xc9] sm:$0xff] }
 0x566   : > { %13894 = vmatprep.mubr.msk.f32.mxu0 %vm279_vm0, %v17520_v61  ;;  %18455 = vst [vmem:[#allocation27_spill] sm:$0xff] %v17536_v53  ;;  %v17540_v61 = vld [vmem:[#allocation2 + $0xd1] sm:$0xff] }
 0x567   : > { %18456 = vst [vmem:[#allocation15_spill] sm:$0xff] %v17540_v61 }
 0x569   : > { %13895 = vmatmul.mubr.msk.f32.gmra.mrb[40].mxu0 %vm279_vm0, %v17524_v9  ;;  %v17544_v9 = vld [vmem:[#allocation2 + $0xe9] sm:$0xff] }
 0x56a   : > { %13897 = vmatprep.mubr.msk.f32.mxu0 %vm279_vm0, %v17528_v59  ;;  %18457 = vst [vmem:[#allocation16_spill] sm:$0xff] %v17544_v9  ;;  %v17548_v59 = vld [vmem:[#allocation2 + $0xf1] sm:$0xff] }
 0x56b   : > { %18458 = vst [vmem:[#allocation30_spill] sm:$0xff] %v17548_v59 }
 0x56d   : > { %13898 = vmatmul.mubr.msk.f32.gmra.mrb[42].mxu0 %vm279_vm0, %v17532_v12  ;;  %v17552_v12 = vld [vmem:[#allocation2 + $0x109] sm:$0xff] }
 0x56e   : > { %13900 = vmatprep.mubr.msk.f32.mxu0 %vm279_vm0, %v17536_v53  ;;  %18459 = vst [vmem:[#allocation22_spill] sm:$0xff] %v17552_v12  ;;  %v17556_v53 = vld [vmem:[#allocation2 + $0x111] sm:$0xff] }
 0x56f   : > { %18460 = vst [vmem:[#allocation10_spill] sm:$0xff] %v17556_v53 }
 0x571   : > { %13901 = vmatmul.mubr.msk.f32.gmra.mrb[44].mxu0 %vm279_vm0, %v17540_v61  ;;  %v17560_v61 = vld [vmem:[#allocation2 + $0x129] sm:$0xff] }
 0x572   : > { %13903 = vmatprep.mubr.msk.f32.mxu0 %vm279_vm0, %v17544_v9  ;;  %18461 = vst [vmem:[#allocation23_spill] sm:$0xff] %v17560_v61  ;;  %v17564_v9 = vld [vmem:[#allocation2 + $0x131] sm:$0xff] }
 0x573   : > { %18462 = vst [vmem:[#allocation11_spill] sm:$0xff] %v17564_v9 }
 0x575   : > { %13904 = vmatmul.mubr.msk.f32.gmra.mrb[46].mxu0 %vm279_vm0, %v17548_v59  ;;  %v17568_v59 = vld [vmem:[#allocation2 + $0x149] sm:$0xff] }
 0x576   : > { %13906 = vmatprep.mubr.msk.f32.mxu0 %vm279_vm0, %v17552_v12  ;;  %18463 = vst [vmem:[#allocation24_spill] sm:$0xff] %v17568_v59  ;;  %v17572_v12 = vld [vmem:[#allocation2 + $0x151] sm:$0xff] }
 0x577   : > { %18464 = vst [vmem:[#allocation12_spill] sm:$0xff] %v17572_v12 }
 0x579   : > { %13907 = vmatmul.mubr.msk.f32.gmra.mrb[48].mxu0 %vm279_vm0, %v17556_v53  ;;  %v17576_v53 = vld [vmem:[#allocation2 + $0x169] sm:$0xff] }
 0x57a   : > { %13909 = vmatprep.mubr.msk.f32.mxu0 %vm279_vm0, %v17560_v61  ;;  %18465 = vst [vmem:[#allocation25_spill] sm:$0xff] %v17576_v53  ;;  %v17580_v61 = vld [vmem:[#allocation2 + $0x171] sm:$0xff] }
 0x57b   : > { %18466 = vst [vmem:[#allocation13_spill] sm:$0xff] %v17580_v61 }
 0x57d   : > { %13910 = vmatmul.mubr.msk.f32.gmra.mrb[50].mxu0 %vm279_vm0, %v17564_v9  ;;  %v17584_v9 = vld [vmem:[#allocation2 + $0x189] sm:$0xff] }
 0x57e   : > { %13912 = vmatprep.mubr.msk.f32.mxu0 %vm279_vm0, %v17568_v59  ;;  %18467 = vst [vmem:[#allocation26_spill] sm:$0xff] %v17584_v9  ;;  %v17588_v59 = vld [vmem:[#allocation2 + $0x191] sm:$0xff] }
 0x57f   : > { %18468 = vst [vmem:[#allocation14_spill] sm:$0xff] %v17588_v59 }
 0x581   : > { %13913 = vmatmul.mubr.msk.f32.gmra.mrb[52].mxu0 %vm279_vm0, %v17572_v12  ;;  %v17592_v12 = vld [vmem:[#allocation2 + $0x1a9] sm:$0xff] }
 0x582   : > { %13915 = vmatprep.mubr.msk.f32.mxu0 %vm279_vm0, %v17576_v53  ;;  %18469 = vst [vmem:[#allocation28_spill] sm:$0xff] %v17592_v12  ;;  %v17596_v53 = vld [vmem:[#allocation2 + $0x1b1] sm:$0xff] }
 0x583   : > { %18470 = vst [vmem:[#allocation17_spill] sm:$0xff] %v17596_v53 }
 0x585   : > { %13916 = vmatmul.mubr.msk.f32.gmra.mrb[54].mxu0 %vm279_vm0, %v17580_v61  ;;  %v17600_v61 = vld [vmem:[#allocation2 + $0x1c9] sm:$0xff] }
 0x586   : > { %13918 = vmatprep.mubr.msk.f32.mxu0 %vm279_vm0, %v17584_v9  ;;  %18471 = vst [vmem:[#allocation18_spill] sm:$0xff] %v17600_v61  ;;  %v17604_v9 = vld [vmem:[#allocation2 + $0x1d1] sm:$0xff] }
 0x587   : > { %18472 = vst [vmem:[#allocation32_spill] sm:$0xff] %v17604_v9 }
 0x589   : > { %13919 = vmatmul.mubr.msk.f32.gmra.mrb[56].mxu0 %vm279_vm0, %v17588_v59  ;;  %v17608_v59 = vld [vmem:[#allocation2 + $0x1e9] sm:$0xff] }
 0x58a   : > { %13921 = vmatprep.mubr.msk.f32.mxu0 %vm279_vm0, %v17592_v12  ;;  %v17612_v12 = vld [vmem:[#allocation2 + $0x1f1] sm:$0xff] }
 0x58b   : > { %18473 = vst [vmem:[#allocation33_spill] sm:$0xff] %v17612_v12 }
 0x58d   : > { %13922 = vmatmul.mubr.msk.f32.gmra.mrb[58].mxu0 %vm279_vm0, %v17596_v53  ;;  %v7473_v53 = vld [vmem:[%s18133_s5 + $0x50] sm:$0xff] }
 0x58e   : > { %13924 = vmatprep.mubr.msk.f32.mxu0 %vm279_vm0, %v17600_v61  ;;  %v7474_v61 = vld [vmem:[%s18133_s5 + $0x58] sm:$0xff] }
 0x591   : > { %13925 = vmatmul.mubr.msk.f32.gmra.mrb[60].mxu0 %vm279_vm0, %v17604_v9  ;;  %v14334_v9 = vpack.c.bf16 %v7474_v61, %v7473_v53  ;;  %v7476_v53 = vld [vmem:[%s18133_s5 + $0x68] sm:$0xff] }
 0x592   : > { %13927 = vmatprep.mubr.msk.f32.mxu0 %vm279_vm0, %v17608_v59 }
 0x595   : > { %13928 = vmatmul.mubr.msk.f32.gmra.mrb[62].mxu0 %vm279_vm0, %v17612_v12 }
 0x596   : > { %13934 = vmatprep.mubr.msk.f32.mxu0 %vm279_vm0, %v17362_v18  ;;  %v17687_v18 = vld [vmem:[#allocation2 + $0x20f] sm:$0xff] }
 0x599   : > { %13935 = vmatmul.mubr.msk.f32.vlgmr.msra.gmra.mrb[32].mxu0 %vm279_vm0, %v17368_v27  ;;  %v7475_v27 = vld [vmem:[%s18133_s5 + $0x60] sm:$0xff] }
 0x59a   : > { %14333 = vmatpush3.bf16.msra.mxu0 %v17491_v30  ;;  %13937 = vmatprep.mubr.msk.f32.mxu0 %vm279_vm0, %v17372_v29  ;;  %v17683_v30 = vld [vmem:[#allocation2 + $0x207] sm:$0xff]  ;;  %v14338_v61 = vpack.c.bf16 %v7476_v53, %v7475_v27  ;;  %v18489_v53 = vld [vmem:[#allocation30_spill] sm:$0xff] }
 0x59b   : > { %14335 = vmatprep.subr.bf16.mxu0 %v14334_v9  ;;  %v18488_v27 = vld [vmem:[#allocation16_spill] sm:$0xff] }
 0x59d   : > { %13938 = vmatmul.mubr.msk.f32.gmra.mrb[34].mxu0 %vm279_vm0, %v17376_v33 }
 0x59e   : > { %13940 = vmatprep.mubr.msk.f32.mxu0 %vm279_vm0, %v17380_v39 }
 0x5a1   : > { %13941 = vmatmul.mubr.msk.f32.gmra.mrb[36].mxu0 %vm279_vm0, %v17384_v43 }
 0x5a2   : > { %13943 = vmatprep.mubr.msk.f32.mxu0 %vm279_vm0, %v17388_v45 }
 0x5a5   : > { %13944 = vmatmul.mubr.msk.f32.gmra.mrb[38].mxu0 %vm279_vm0, %v17392_v54 }
 0x5a6   : > { %13946 = vmatprep.mubr.msk.f32.mxu0 %vm279_vm0, %v17396_v3 }
 0x5a9   : > { %13947 = vmatmul.mubr.msk.f32.gmra.mrb[40].mxu0 %vm279_vm0, %v17400_v20 }
 0x5aa   : > { %13949 = vmatprep.mubr.msk.f32.mxu0 %vm279_vm0, %v17404_v37 }
 0x5ad   : > { %13950 = vmatmul.mubr.msk.f32.gmra.mrb[42].mxu0 %vm279_vm0, %v17408_v52 }
 0x5ae   : > { %13952 = vmatprep.mubr.msk.f32.mxu0 %vm279_vm0, %v17412_v2 }
 0x5b1   : > { %13953 = vmatmul.mubr.msk.f32.gmra.mrb[44].mxu0 %vm279_vm0, %v17416_v15 }
 0x5b2   : > { %13955 = vmatprep.mubr.msk.f32.mxu0 %vm279_vm0, %v17420_v42 }
 0x5b5   : > { %13956 = vmatmul.mubr.msk.f32.gmra.mrb[46].mxu0 %vm279_vm0, %v17424_v11 }
 0x5b6   : > { %13958 = vmatprep.mubr.msk.f32.mxu0 %vm279_vm0, %v17428_v47 }
 0x5b9   : > { %13959 = vmatmul.mubr.msk.f32.gmra.mrb[48].mxu0 %vm279_vm0, %v17432_v5 }
 0x5ba   : > { %13961 = vmatprep.mubr.msk.f32.mxu0 %vm279_vm0, %v17436_v24 }
 0x5bd   : > { %13962 = vmatmul.mubr.msk.f32.gmra.mrb[50].mxu0 %vm279_vm0, %v17440_v21 }
 0x5be   : > { %13964 = vmatprep.mubr.msk.f32.mxu0 %vm279_vm0, %v17444_v4 }
 0x5c1   : > { %13965 = vmatmul.mubr.msk.f32.gmra.mrb[52].mxu0 %vm279_vm0, %v17448_v26 }
 0x5c2   : > { %13967 = vmatprep.mubr.msk.f32.mxu0 %vm279_vm0, %v17452_v62 }
 0x5c5   : > { %13968 = vmatmul.mubr.msk.f32.gmra.mrb[54].mxu0 %vm279_vm0, %v17456_v58 }
 0x5c6   : > { %13970 = vmatprep.mubr.msk.f32.mxu0 %vm279_vm0, %v17460_v14 }
 0x5c9   : > { %13971 = vmatmul.mubr.msk.f32.gmra.mrb[56].mxu0 %vm279_vm0, %v17464_v23 }
 0x5ca   : > { %13973 = vmatprep.mubr.msk.f32.mxu0 %vm279_vm0, %v17468_v50 }
 0x5cd   : > { %13974 = vmatmul.mubr.msk.f32.gmra.mrb[58].mxu0 %vm279_vm0, %v17472_v63 }
 0x5ce   : > { %13976 = vmatprep.mubr.msk.f32.mxu0 %vm279_vm0, %v17476_v17 }
 0x5d1   : > { %13977 = vmatmul.mubr.msk.f32.gmra.mrb[60].mxu0 %vm279_vm0, %v17480_v31 }
 0x5d2   : > { %13979 = vmatprep.mubr.msk.f32.mxu0 %vm279_vm0, %v17683_v30 }
 0x5d5   : > { %13980 = vmatmul.mubr.msk.f32.gmra.mrb[62].mxu0 %vm279_vm0, %v17687_v18 }
 0x5d6   : > { %13986 = vmatprep.mubr.msk.f32.mxu0 %vm279_vm0, %v17180_v1  ;;  %v18474_v1 = vld [vmem:[#allocation29_spill] sm:$0xff] }
 0x5d9   : > { %13987 = vmatmul.mubr.msk.f32.vlgmr.msra.gmra.mrb[32].mxu0 %vm279_vm0, %v17186_v16  ;;  %v18475_v16 = vld [vmem:[#allocation3_spill] sm:$0xff] }
 0x5da   : > { %14337 = vmatpush3.bf16.msra.mxu0 %v14334_v9  ;;  %13989 = vmatprep.mubr.msk.f32.mxu0 %vm279_vm0, %v17192_v32  ;;  %v18476_v32 = vld [vmem:[#allocation31_spill] sm:$0xff] }
 0x5db   : > { %14339 = vmatprep.subr.bf16.mxu0 %v14338_v61  ;;  %v18487_v9 = vld [vmem:[#allocation15_spill] sm:$0xff] }
 0x5dd   : > { %13990 = vmatmul.mubr.msk.f32.gmra.mrb[34].mxu0 %vm279_vm0, %v17198_v34  ;;  %v18477_v34 = vld [vmem:[#allocation4_spill] sm:$0xff] }
 0x5de   : > { %13992 = vmatprep.mubr.msk.f32.mxu0 %vm279_vm0, %v17204_v51  ;;  %v17757_v51 = vld [vmem:[#allocation2 + $0x208] sm:$0xff] }
 0x5e1   : > { %13993 = vmatmul.mubr.msk.f32.gmra.mrb[36].mxu0 %vm279_vm0, %v17210_v10  ;;  %v17761_v10 = vld [vmem:[#allocation2 + $0x210] sm:$0xff] }
 0x5e2   : > { %13995 = vmatprep.mubr.msk.f32.mxu0 %vm279_vm0, %v17216_v38  ;;  %v7477_v38 = vld [vmem:[%s18133_s5 + $0x70] sm:$0xff] }
 0x5e5   : > { %13996 = vmatmul.mubr.msk.f32.gmra.mrb[38].mxu0 %vm279_vm0, %v17222_v41  ;;  %v7478_v41 = vld [vmem:[%s18133_s5 + $0x78] sm:$0xff] }
 0x5e6   : > { %13998 = vmatprep.mubr.msk.f32.mxu0 %vm279_vm0, %v17228_v46  ;;  %v14342_v46 = vpack.c.bf16 %v7478_v41, %v7477_v38  ;;  %v18491_v38 = vld [vmem:[#allocation10_spill] sm:$0xff]  ;;  %v18492_v41 = vld [vmem:[#allocation23_spill] sm:$0xff] }
 0x5e9   : > { %13999 = vmatmul.mubr.msk.f32.gmra.mrb[40].mxu0 %vm279_vm0, %v17234_v19  ;;  %v18478_v19 = vld [vmem:[#allocation19_spill] sm:$0xff] }
 0x5ea   : > { %14001 = vmatprep.mubr.msk.f32.mxu0 %vm279_vm0, %v17240_v35  ;;  %v18479_v35 = vld [vmem:[#allocation5_spill] sm:$0xff] }
 0x5ed   : > { %14002 = vmatmul.mubr.msk.f32.gmra.mrb[42].mxu0 %vm279_vm0, %v17246_v49  ;;  %v18480_v49 = vld [vmem:[#allocation20_spill] sm:$0xff] }
 0x5ee   : > { %14004 = vmatprep.mubr.msk.f32.mxu0 %vm279_vm0, %v17252_v57  ;;  %v18481_v57 = vld [vmem:[#allocation6_spill] sm:$0xff] }
 0x5f1   : > { %14005 = vmatmul.mubr.msk.f32.gmra.mrb[44].mxu0 %vm279_vm0, %v17258_v7  ;;  %v18482_v7 = vld [vmem:[#allocation21_spill] sm:$0xff] }
 0x5f2   : > { %14007 = vmatprep.mubr.msk.f32.mxu0 %vm279_vm0, %v17264_v56  ;;  %v18483_v56 = vld [vmem:[#allocation7_spill] sm:$0xff] }
 0x5f5   : > { %14008 = vmatmul.mubr.msk.f32.gmra.mrb[46].mxu0 %vm279_vm0, %v17270_v48  ;;  %v18484_v48 = vld [vmem:[#allocation8_spill] sm:$0xff] }
 0x5f6   : > { %14010 = vmatprep.mubr.msk.f32.mxu0 %vm279_vm0, %v17276_v25 }
 0x5f9   : > { %14011 = vmatmul.mubr.msk.f32.gmra.mrb[48].mxu0 %vm279_vm0, %v17282_v28 }
 0x5fa   : > { %14013 = vmatprep.mubr.msk.f32.mxu0 %vm279_vm0, %v17288_v6 }
 0x5fd   : > { %14014 = vmatmul.mubr.msk.f32.gmra.mrb[50].mxu0 %vm279_vm0, %v17294_v55 }
 0x5fe   : > { %14016 = vmatprep.mubr.msk.f32.mxu0 %vm279_vm0, %v17300_v40 }
 0x601   : > { %14017 = vmatmul.mubr.msk.f32.gmra.mrb[52].mxu0 %vm279_vm0, %v17306_v13 }
 0x602   : > { %14019 = vmatprep.mubr.msk.f32.mxu0 %vm279_vm0, %v17312_v0 }
 0x605   : > { %14020 = vmatmul.mubr.msk.f32.gmra.mrb[54].mxu0 %vm279_vm0, %v17318_v22 }
 0x606   : > { %14022 = vmatprep.mubr.msk.f32.mxu0 %vm279_vm0, %v17324_v36 }
 0x609   : > { %14023 = vmatmul.mubr.msk.f32.gmra.mrb[56].mxu0 %vm279_vm0, %v17330_v60 }
 0x60a   : > { %14025 = vmatprep.mubr.msk.f32.mxu0 %vm279_vm0, %v18474_v1 }
 0x60d   : > { %14026 = vmatmul.mubr.msk.f32.gmra.mrb[58].mxu0 %vm279_vm0, %v18475_v16 }
 0x60e   : > { %14028 = vmatprep.mubr.msk.f32.mxu0 %vm279_vm0, %v18476_v32 }
 0x611   : > { %14029 = vmatmul.mubr.msk.f32.gmra.mrb[60].mxu0 %vm279_vm0, %v18477_v34 }
 0x612   : > { %14031 = vmatprep.mubr.msk.f32.mxu0 %vm279_vm0, %v17757_v51 }
 0x615   : > { %14032 = vmatmul.mubr.msk.f32.gmra.mrb[62].mxu0 %vm279_vm0, %v17761_v10 }
 0x616   : > { %14038 = vmatprep.mubr.msk.f32.mxu0 %vm279_vm0, %v17494_v44  ;;  %v18486_v44 = vld [vmem:[#allocation27_spill] sm:$0xff] }
 0x619   : > { %14039 = vmatmul.mubr.msk.f32.vlgmr.msra.gmra.mrb[32].mxu0 %vm279_vm0, %v17500_v8  ;;  %v18485_v8 = vld [vmem:[#allocation9_spill] sm:$0xff] }
 0x61a   : > { %14341 = vmatpush3.bf16.msra.mxu0 %v14338_v61  ;;  %14041 = vmatprep.mubr.msk.f32.mxu0 %vm279_vm0, %v18478_v19  ;;  %v18490_v61 = vld [vmem:[#allocation22_spill] sm:$0xff] }
 0x61b   : > { %14343 = vmatprep.subr.bf16.mxu0 %v14342_v46 }
 0x61d   : > { %14042 = vmatmul.mubr.msk.f32.gmra.mrb[34].mxu0 %vm279_vm0, %v18479_v35 }
 0x61e   : > { %14044 = vmatprep.mubr.msk.f32.mxu0 %vm279_vm0, %v18480_v49 }
 0x621   : > { %14045 = vmatmul.mubr.msk.f32.gmra.mrb[36].mxu0 %vm279_vm0, %v18481_v57 }
 0x622   : > { %14047 = vmatprep.mubr.msk.f32.mxu0 %vm279_vm0, %v18482_v7 }
 0x625   : > { %14048 = vmatmul.mubr.msk.f32.gmra.mrb[38].mxu0 %vm279_vm0, %v18483_v56 }
 0x626   : > { %14050 = vmatprep.mubr.msk.f32.mxu0 %vm279_vm0, %v18484_v48 }
 0x629   : > { %14051 = vmatmul.mubr.msk.f32.gmra.mrb[40].mxu0 %vm279_vm0, %v18485_v8  ;;  %v18493_v8 = vld [vmem:[#allocation11_spill] sm:$0xff] }
 0x62a   : > { %14053 = vmatprep.mubr.msk.f32.mxu0 %vm279_vm0, %v18486_v44  ;;  %v18494_v44 = vld [vmem:[#allocation24_spill] sm:$0xff] }
 0x62d   : > { %14054 = vmatmul.mubr.msk.f32.gmra.mrb[42].mxu0 %vm279_vm0, %v18487_v9  ;;  %v18495_v9 = vld [vmem:[#allocation12_spill] sm:$0xff] }
 0x62e   : > { %14056 = vmatprep.mubr.msk.f32.mxu0 %vm279_vm0, %v18488_v27  ;;  %v18496_v27 = vld [vmem:[#allocation25_spill] sm:$0xff] }
 0x631   : > { %14057 = vmatmul.mubr.msk.f32.gmra.mrb[44].mxu0 %vm279_vm0, %v18489_v53  ;;  %v18497_v53 = vld [vmem:[#allocation13_spill] sm:$0xff] }
 0x632   : > { %14059 = vmatprep.mubr.msk.f32.mxu0 %vm279_vm0, %v18490_v61  ;;  %v18498_v61 = vld [vmem:[#allocation26_spill] sm:$0xff] }
 0x635   : > { %14060 = vmatmul.mubr.msk.f32.gmra.mrb[46].mxu0 %vm279_vm0, %v18491_v38  ;;  %v18499_v38 = vld [vmem:[#allocation14_spill] sm:$0xff] }
 0x636   : > { %14062 = vmatprep.mubr.msk.f32.mxu0 %vm279_vm0, %v18492_v41  ;;  %v18500_v41 = vld [vmem:[#allocation28_spill] sm:$0xff] }
 0x639   : > { %14063 = vmatmul.mubr.msk.f32.gmra.mrb[48].mxu0 %vm279_vm0, %v18493_v8  ;;  %v18501_v8 = vld [vmem:[#allocation17_spill] sm:$0xff] }
 0x63a   : > { %14065 = vmatprep.mubr.msk.f32.mxu0 %vm279_vm0, %v18494_v44  ;;  %v18502_v44 = vld [vmem:[#allocation18_spill] sm:$0xff] }
 0x63d   : > { %14066 = vmatmul.mubr.msk.f32.gmra.mrb[50].mxu0 %vm279_vm0, %v18495_v9  ;;  %v18503_v9 = vld [vmem:[#allocation32_spill] sm:$0xff] }
 0x63e   : > { %14068 = vmatprep.mubr.msk.f32.mxu0 %vm279_vm0, %v18496_v27 }
 0x641   : > { %14069 = vmatmul.mubr.msk.f32.gmra.mrb[52].mxu0 %vm279_vm0, %v18497_v53 }
 0x642   : > { %14071 = vmatprep.mubr.msk.f32.mxu0 %vm279_vm0, %v18498_v61  ;;  %v17831_v61 = vld [vmem:[#allocation2 + $0x209] sm:$0xff] }
 0x645   : > { %14072 = vmatmul.mubr.msk.f32.gmra.mrb[54].mxu0 %vm279_vm0, %v18499_v38 }
 0x646   : > { %14074 = vmatprep.mubr.msk.f32.mxu0 %vm279_vm0, %v18500_v41  ;;  %v17835_v41 = vld [vmem:[#allocation2 + $0x211] sm:$0xff] }
 0x649   : > { %14075 = vmatmul.mubr.msk.f32.gmra.mrb[56].mxu0 %vm279_vm0, %v18501_v8 }
 0x64a   : > { %14077 = vmatprep.mubr.msk.f32.mxu0 %vm279_vm0, %v18502_v44  ;;  %v7479_v44 = vld [vmem:[%s18133_s5 + $0x80] sm:$0xff] }
 0x64d   : > { %14078 = vmatmul.mubr.msk.f32.gmra.mrb[58].mxu0 %vm279_vm0, %v18503_v9  ;;  %v7480_v9 = vld [vmem:[%s18133_s5 + $0x88] sm:$0xff] }
 0x64e   : > { %14080 = vmatprep.mubr.msk.f32.mxu0 %vm279_vm0, %v17608_v59 }
 0x651   : > { %14081 = vmatmul.mubr.msk.f32.gmra.mrb[60].mxu0 %vm279_vm0, %v17612_v12  ;;  %v14346_v12 = vpack.c.bf16 %v7480_v9, %v7479_v44 }
 0x652   : > { %14083 = vmatprep.mubr.msk.f32.mxu0 %vm279_vm0, %v17831_v61 }
 0x655   : > { %14084 = vmatmul.mubr.msk.f32.gmra.mrb[62].mxu0 %vm279_vm0, %v17835_v41 }
 0x656   : > { %14090 = vmatprep.mubr.msk.f32.mxu0 %vm279_vm0, %v17372_v29  ;;  %v9757_v29 = vld [vmem:[#allocation2 + $0x227] sm:$0xff] }
 0x659   : > { %14091 = vmatmul.mubr.msk.f32.vlgmr.msra.gmra.mrb[32].mxu0 %vm279_vm0, %v17376_v33  ;;  %v9758_v33 = vld [vmem:[#allocation2 + $0x22f] sm:$0xff] }
 0x65a   : > { %14345 = vmatpush3.bf16.msra.mxu0 %v14342_v46  ;;  %14093 = vmatprep.mubr.msk.f32.mxu0 %vm279_vm0, %v17380_v39  ;;  %v10112_v39 = vld [vmem:[#allocation2 + $0x48] sm:$0xff] }
 0x65b   : > { %14347 = vmatprep.subr.bf16.mxu0 %v14346_v12 }
 0x65d   : > { %14094 = vmatmul.mubr.msk.f32.gmra.mrb[34].mxu0 %vm279_vm0, %v17384_v43  ;;  %v10113_v43 = vld [vmem:[#allocation2 + $0x50] sm:$0xff] }
 0x65e   : > { %14096 = vmatprep.mubr.msk.f32.mxu0 %vm279_vm0, %v17388_v45  ;;  %v10114_v45 = vld [vmem:[#allocation2 + $0x68] sm:$0xff] }
 0x661   : > { %14097 = vmatmul.mubr.msk.f32.gmra.mrb[36].mxu0 %vm279_vm0, %v17392_v54  ;;  %v10115_v54 = vld [vmem:[#allocation2 + $0x70] sm:$0xff] }
 0x662   : > { %14099 = vmatprep.mubr.msk.f32.mxu0 %vm279_vm0, %v17396_v3  ;;  %v10116_v3 = vld [vmem:[#allocation2 + $0x88] sm:$0xff] }
 0x665   : > { %14100 = vmatmul.mubr.msk.f32.gmra.mrb[38].mxu0 %vm279_vm0, %v17400_v20  ;;  %v10117_v20 = vld [vmem:[#allocation2 + $0x90] sm:$0xff] }
 0x666   : > { %14102 = vmatprep.mubr.msk.f32.mxu0 %vm279_vm0, %v17404_v37  ;;  %v10118_v37 = vld [vmem:[#allocation2 + $0xa8] sm:$0xff] }
 0x669   : > { %14103 = vmatmul.mubr.msk.f32.gmra.mrb[40].mxu0 %vm279_vm0, %v17408_v52  ;;  %v10119_v52 = vld [vmem:[#allocation2 + $0xb0] sm:$0xff] }
 0x66a   : > { %14105 = vmatprep.mubr.msk.f32.mxu0 %vm279_vm0, %v17412_v2  ;;  %v10120_v2 = vld [vmem:[#allocation2 + $0xc8] sm:$0xff] }
 0x66d   : > { %14106 = vmatmul.mubr.msk.f32.gmra.mrb[42].mxu0 %vm279_vm0, %v17416_v15  ;;  %v10121_v15 = vld [vmem:[#allocation2 + $0xd0] sm:$0xff] }
 0x66e   : > { %14108 = vmatprep.mubr.msk.f32.mxu0 %vm279_vm0, %v17420_v42  ;;  %v10122_v42 = vld [vmem:[#allocation2 + $0xe8] sm:$0xff] }
 0x671   : > { %14109 = vmatmul.mubr.msk.f32.gmra.mrb[44].mxu0 %vm279_vm0, %v17424_v11  ;;  %v10123_v11 = vld [vmem:[#allocation2 + $0xf0] sm:$0xff] }
 0x672   : > { %14111 = vmatprep.mubr.msk.f32.mxu0 %vm279_vm0, %v17428_v47  ;;  %v10124_v47 = vld [vmem:[#allocation2 + $0x108] sm:$0xff] }
 0x675   : > { %14112 = vmatmul.mubr.msk.f32.gmra.mrb[46].mxu0 %vm279_vm0, %v17432_v5  ;;  %v10125_v5 = vld [vmem:[#allocation2 + $0x110] sm:$0xff] }
 0x676   : > { %14114 = vmatprep.mubr.msk.f32.mxu0 %vm279_vm0, %v17436_v24  ;;  %v18512_v24 = vld [vmem:[#allocation11_spill] sm:$0xff] }
 0x679   : > { %14115 = vmatmul.mubr.msk.f32.gmra.mrb[48].mxu0 %vm279_vm0, %v17440_v21  ;;  %v18513_v21 = vld [vmem:[#allocation24_spill] sm:$0xff] }
 0x67a   : > { %14117 = vmatprep.mubr.msk.f32.mxu0 %vm279_vm0, %v17444_v4  ;;  %v18514_v4 = vld [vmem:[#allocation12_spill] sm:$0xff] }
 0x67d   : > { %14118 = vmatmul.mubr.msk.f32.gmra.mrb[50].mxu0 %vm279_vm0, %v17448_v26  ;;  %v18515_v26 = vld [vmem:[#allocation26_spill] sm:$0xff] }
 0x67e   : > { %14120 = vmatprep.mubr.msk.f32.mxu0 %vm279_vm0, %v17452_v62  ;;  %v18516_v62 = vld [vmem:[#allocation28_spill] sm:$0xff] }
 0x681   : > { %14121 = vmatmul.mubr.msk.f32.gmra.mrb[52].mxu0 %vm279_vm0, %v17456_v58  ;;  %v18517_v58 = vld [vmem:[#allocation18_spill] sm:$0xff] }
 0x682   : > { %14123 = vmatprep.mubr.msk.f32.mxu0 %vm279_vm0, %v17460_v14  ;;  %v18518_v14 = vld [vmem:[#allocation32_spill] sm:$0xff] }
 0x685   : > { %14124 = vmatmul.mubr.msk.f32.gmra.mrb[54].mxu0 %vm279_vm0, %v17464_v23  ;;  %v18519_v23 = vld [vmem:[#allocation33_spill] sm:$0xff] }
 0x686   : > { %14126 = vmatprep.mubr.msk.f32.mxu0 %vm279_vm0, %v17468_v50  ;;  %v10527_v50 = vld [vmem:[#allocation2 + $0x229] sm:$0xff] }
 0x689   : > { %14127 = vmatmul.mubr.msk.f32.gmra.mrb[56].mxu0 %vm279_vm0, %v17472_v63  ;;  %v10528_v63 = vld [vmem:[#allocation2 + $0x231] sm:$0xff] }
 0x68a   : > { %14129 = vmatprep.mubr.msk.f32.mxu0 %vm279_vm0, %v17476_v17  ;;  %v18020_v17 = vld [vmem:[%s18134_s6] ss:$0 sm:$0xff] }
 0x68d   : > { %14130 = vmatmul.mubr.msk.f32.gmra.mrb[58].mxu0 %vm279_vm0, %v17480_v31 }
 0x68e   : > { %14132 = vmatprep.mubr.msk.f32.mxu0 %vm279_vm0, %v17683_v30 }
 0x691   : > { %14133 = vmatmul.mubr.msk.f32.gmra.mrb[60].mxu0 %vm279_vm0, %v17687_v18 }
 0x692   : > { %14135 = vmatprep.mubr.msk.f32.mxu0 %vm279_vm0, %v9757_v29 }
 0x695   : > { %14136 = vmatmul.mubr.msk.f32.gmra.mrb[62].mxu0 %vm279_vm0, %v9758_v33 }
 0x696   : > { %14142 = vmatprep.mubr.msk.f32.mxu0 %vm279_vm0, %v10112_v39 }
 0x699   : > { %14143 = vmatmul.mubr.msk.f32.vlgmr.msra.gmra.mrb[32].mxu0 %vm279_vm0, %v10113_v43 }
 0x69a   : > { %14349 = vmatpush3.bf16.msra.mxu0 %v14346_v12  ;;  %14145 = vmatprep.mubr.msk.f32.mxu0 %vm279_vm0, %v10114_v45 }
 0x69d   : > { %14146 = vmatmul.mubr.msk.f32.gmra.mrb[34].mxu0 %vm279_vm0, %v10115_v54 }
 0x69e   : > { %14148 = vmatprep.mubr.msk.f32.mxu0 %vm279_vm0, %v10116_v3 }
 0x6a1   : > { %14149 = vmatmul.mubr.msk.f32.gmra.mrb[36].mxu0 %vm279_vm0, %v10117_v20 }
 0x6a2   : > { %14151 = vmatprep.mubr.msk.f32.mxu0 %vm279_vm0, %v10118_v37 }
 0x6a5   : > { %14152 = vmatmul.mubr.msk.f32.gmra.mrb[38].mxu0 %vm279_vm0, %v10119_v52 }
 0x6a6   : > { %14154 = vmatprep.mubr.msk.f32.mxu0 %vm279_vm0, %v10120_v2 }
 0x6a9   : > { %14155 = vmatmul.mubr.msk.f32.gmra.mrb[40].mxu0 %vm279_vm0, %v10121_v15 }
 0x6aa   : > { %14157 = vmatprep.mubr.msk.f32.mxu0 %vm279_vm0, %v10122_v42 }
 0x6ad   : > { %14158 = vmatmul.mubr.msk.f32.gmra.mrb[42].mxu0 %vm279_vm0, %v10123_v11 }
 0x6ae   : > { %14160 = vmatprep.mubr.msk.f32.mxu0 %vm279_vm0, %v10124_v47 }
 0x6b1   : > { %14161 = vmatmul.mubr.msk.f32.gmra.mrb[44].mxu0 %vm279_vm0, %v10125_v5 }
 0x6b2   : > { %14163 = vmatprep.mubr.msk.f32.mxu0 %vm279_vm0, %v17276_v25  ;;  %v10142_v25 = vld [vmem:[#allocation2 + $0x228] sm:$0xff] }
 0x6b5   : > { %14164 = vmatmul.mubr.msk.f32.gmra.mrb[46].mxu0 %vm279_vm0, %v17282_v28  ;;  %v10143_v28 = vld [vmem:[#allocation2 + $0x230] sm:$0xff] }
 0x6b6   : > { %14166 = vmatprep.mubr.msk.f32.mxu0 %vm279_vm0, %v17288_v6  ;;  %v18504_v6 = vld [vmem:[#allocation9_spill] sm:$0xff] }
 0x6b9   : > { %14167 = vmatmul.mubr.msk.f32.gmra.mrb[48].mxu0 %vm279_vm0, %v17294_v55  ;;  %v18505_v55 = vld [vmem:[#allocation27_spill] sm:$0xff] }
 0x6ba   : > { %14169 = vmatprep.mubr.msk.f32.mxu0 %vm279_vm0, %v17300_v40  ;;  %v18506_v40 = vld [vmem:[#allocation15_spill] sm:$0xff] }
 0x6bd   : > { %14170 = vmatmul.mubr.msk.f32.gmra.mrb[50].mxu0 %vm279_vm0, %v17306_v13  ;;  %v18507_v13 = vld [vmem:[#allocation16_spill] sm:$0xff] }
 0x6be   : > { %14172 = vmatprep.mubr.msk.f32.mxu0 %vm279_vm0, %v17312_v0  ;;  %v18508_v0 = vld [vmem:[#allocation30_spill] sm:$0xff] }
 0x6c1   : > { %14173 = vmatmul.mubr.msk.f32.gmra.mrb[52].mxu0 %vm279_vm0, %v17318_v22  ;;  %v18509_v22 = vld [vmem:[#allocation22_spill] sm:$0xff] }
 0x6c2   : > { %14175 = vmatprep.mubr.msk.f32.mxu0 %vm279_vm0, %v17324_v36  ;;  %v18510_v36 = vld [vmem:[#allocation10_spill] sm:$0xff] }
 0x6c5   : > { %14176 = vmatmul.mubr.msk.f32.gmra.mrb[54].mxu0 %vm279_vm0, %v17330_v60  ;;  %v18511_v60 = vld [vmem:[#allocation23_spill] sm:$0xff] }
 0x6c6   : > { %14178 = vmatprep.mubr.msk.f32.mxu0 %vm279_vm0, %v18474_v1 }
 0x6c9   : > { %14179 = vmatmul.mubr.msk.f32.gmra.mrb[56].mxu0 %vm279_vm0, %v18475_v16 }
 0x6ca   : > { %14181 = vmatprep.mubr.msk.f32.mxu0 %vm279_vm0, %v18476_v32 }
 0x6cd   : > { %14182 = vmatmul.mubr.msk.f32.gmra.mrb[58].mxu0 %vm279_vm0, %v18477_v34 }
 0x6ce   : > { %14184 = vmatprep.mubr.msk.f32.mxu0 %vm279_vm0, %v17757_v51 }
 0x6d1   : > { %14185 = vmatmul.mubr.msk.f32.gmra.mrb[60].mxu0 %vm279_vm0, %v17761_v10 }
 0x6d2   : > { %14187 = vmatprep.mubr.msk.f32.mxu0 %vm279_vm0, %v10142_v25 }
 0x6d5   : > { %14188 = vmatmul.mubr.msk.f32.gmra.mrb[62].mxu0 %vm279_vm0, %v10143_v28 }
 0x6d6   : > { %14194 = vmatprep.mubr.msk.f32.mxu0 %vm279_vm0, %v18478_v19 }
 0x6d9   : > { %14195 = vmatmul.mubr.msk.f32.vlgmr.msra.gmra.mrb[32].mxu0 %vm279_vm0, %v18479_v35 }
 0x6da   : > { %14197 = vmatprep.mubr.msk.f32.mxu0 %vm279_vm0, %v18480_v49 }
 0x6dd   : > { %14198 = vmatmul.mubr.msk.f32.gmra.mrb[34].mxu0 %vm279_vm0, %v18481_v57 }
 0x6de   : > { %14200 = vmatprep.mubr.msk.f32.mxu0 %vm279_vm0, %v18482_v7 }
 0x6e1   : > { %14201 = vmatmul.mubr.msk.f32.gmra.mrb[36].mxu0 %vm279_vm0, %v18483_v56 }
 0x6e2   : > { %14203 = vmatprep.mubr.msk.f32.mxu0 %vm279_vm0, %v18484_v48 }
 0x6e5   : > { %14204 = vmatmul.mubr.msk.f32.gmra.mrb[38].mxu0 %vm279_vm0, %v18504_v6 }
 0x6e6   : > { %14206 = vmatprep.mubr.msk.f32.mxu0 %vm279_vm0, %v18505_v55 }
 0x6e9   : > { %14207 = vmatmul.mubr.msk.f32.gmra.mrb[40].mxu0 %vm279_vm0, %v18506_v40 }
 0x6ea   : > { %14209 = vmatprep.mubr.msk.f32.mxu0 %vm279_vm0, %v18507_v13 }
 0x6ed   : > { %14210 = vmatmul.mubr.msk.f32.gmra.mrb[42].mxu0 %vm279_vm0, %v18508_v0 }
 0x6ee   : > { %14212 = vmatprep.mubr.msk.f32.mxu0 %vm279_vm0, %v18509_v22 }
 0x6f1   : > { %14213 = vmatmul.mubr.msk.f32.gmra.mrb[44].mxu0 %vm279_vm0, %v18510_v36 }
 0x6f2   : > { %14215 = vmatprep.mubr.msk.f32.mxu0 %vm279_vm0, %v18511_v60 }
 0x6f5   : > { %14216 = vmatmul.mubr.msk.f32.gmra.mrb[46].mxu0 %vm279_vm0, %v18512_v24 }
 0x6f6   : > { %14218 = vmatprep.mubr.msk.f32.mxu0 %vm279_vm0, %v18513_v21 }
 0x6f9   : > { %14219 = vmatmul.mubr.msk.f32.gmra.mrb[48].mxu0 %vm279_vm0, %v18514_v4 }
 0x6fa   : > { %14221 = vmatprep.mubr.msk.f32.mxu0 %vm279_vm0, %v18496_v27 }
 0x6fd   : > { %14222 = vmatmul.mubr.msk.f32.gmra.mrb[50].mxu0 %vm279_vm0, %v18497_v53 }
 0x6fe   : > { %14224 = vmatprep.mubr.msk.f32.mxu0 %vm279_vm0, %v18515_v26 }
 0x701   : > { %14225 = vmatmul.mubr.msk.f32.gmra.mrb[52].mxu0 %vm279_vm0, %v18499_v38 }
 0x702   : > { %14227 = vmatprep.mubr.msk.f32.mxu0 %vm279_vm0, %v18516_v62 }
 0x705   : > { %14228 = vmatmul.mubr.msk.f32.gmra.mrb[54].mxu0 %vm279_vm0, %v18501_v8 }
 0x706   : > { %14230 = vmatprep.mubr.msk.f32.mxu0 %vm279_vm0, %v18517_v58 }
 0x709   : > { %14231 = vmatmul.mubr.msk.f32.gmra.mrb[56].mxu0 %vm279_vm0, %v18518_v14 }
 0x70a   : > { %14233 = vmatprep.mubr.msk.f32.mxu0 %vm279_vm0, %v17608_v59 }
 0x70d   : > { %14234 = vmatmul.mubr.msk.f32.gmra.mrb[58].mxu0 %vm279_vm0, %v18519_v23 }
 0x70e   : > { %14236 = vmatprep.mubr.msk.f32.mxu0 %vm279_vm0, %v17831_v61 }
 0x711   : > { %14237 = vmatmul.mubr.msk.f32.gmra.mrb[60].mxu0 %vm279_vm0, %v17835_v41 }
 0x712   : > { %14239 = vmatprep.mubr.msk.f32.mxu0 %vm279_vm0, %v10527_v50 }
 0x715   : > { %14240 = vmatmul.mubr.msk.f32.gmra.mrb[62].mxu0 %vm279_vm0, %v10528_v63 }
 0x7ac   : > { %v14196_v31 = vpop.f32.mrb[32].mxu0 }
 0x7ad   : > { %v10890_v59 = vadd.f32 %v14196_v31, %v18020_v17  ;;  %v10691_v12 = vpop.f32.mrb[33].mxu0 }
 0x7ae   : > { %v10889_v30 = vadd.f32 %v18020_v17, %v10691_v12 }
 0x7af   : > { %v10922_v18 = vmax.f32 %v10890_v59, 0.0 }
 0x7b0   : > { %v10921_v1 = vmax.f32 %v10889_v30, 0.0  ;;  %v14199_v16 = vpop.f32.mrb[34].mxu0 }
 0x7b1   : > { %10954 = vst.msk [vmem:[%s18028_s26 + $0x8] sm:$0xff] %vm279_vm0, %v10922_v18  ;;  %v10892_v32 = vadd.f32 %v14199_v16, %v18020_v17  ;;  %v10701_v34 = vpop.f32.mrb[35].mxu0 }
 0x7b2   : > { %10953 = vst.msk [vmem:[%s18028_s26] sm:$0xff] %vm279_vm0, %v10921_v1  ;;  %v10891_v51 = vadd.f32 %v18020_v17, %v10701_v34 }
 0x7b3   : > { %v10924_v10 = vmax.f32 %v10892_v32, 0.0 }
 0x7b4   : > { %v10923_v46 = vmax.f32 %v10891_v51, 0.0  ;;  %v14202_v19 = vpop.f32.mrb[36].mxu0 }
 0x7b5   : > { %10956 = vst.msk [vmem:[%s18028_s26 + $0x18] sm:$0xff] %vm279_vm0, %v10924_v10  ;;  %v10894_v35 = vadd.f32 %v14202_v19, %v18020_v17  ;;  %v10711_v49 = vpop.f32.mrb[37].mxu0 }
 0x7b6   : > { %10955 = vst.msk [vmem:[%s18028_s26 + $0x10] sm:$0xff] %vm279_vm0, %v10923_v46  ;;  %v10893_v57 = vadd.f32 %v18020_v17, %v10711_v49 }
 0x7b7   : > { %v10926_v7 = vmax.f32 %v10894_v35, 0.0 }
 0x7b8   : > { %v10925_v56 = vmax.f32 %v10893_v57, 0.0  ;;  %v14205_v48 = vpop.f32.mrb[38].mxu0 }
 0x7b9   : > { %10958 = vst.msk [vmem:[%s18028_s26 + $0x28] sm:$0xff] %vm279_vm0, %v10926_v7  ;;  %v10896_v8 = vadd.f32 %v14205_v48, %v18020_v17  ;;  %v10721_v44 = vpop.f32.mrb[39].mxu0 }
 0x7ba   : > { %10957 = vst.msk [vmem:[%s18028_s26 + $0x20] sm:$0xff] %vm279_vm0, %v10925_v56  ;;  %v10895_v9 = vadd.f32 %v18020_v17, %v10721_v44 }
 0x7bb   : > { %v10928_v27 = vmax.f32 %v10896_v8, 0.0 }
 0x7bc   : > { %v10927_v53 = vmax.f32 %v10895_v9, 0.0  ;;  %v14208_v61 = vpop.f32.mrb[40].mxu0 }
 0x7bd   : > { %10960 = vst.msk [vmem:[%s18028_s26 + $0x38] sm:$0xff] %vm279_vm0, %v10928_v27  ;;  %v10898_v38 = vadd.f32 %v14208_v61, %v18020_v17  ;;  %v10731_v41 = vpop.f32.mrb[41].mxu0 }
 0x7be   : > { %10959 = vst.msk [vmem:[%s18028_s26 + $0x30] sm:$0xff] %vm279_vm0, %v10927_v53  ;;  %v10897_v29 = vadd.f32 %v18020_v17, %v10731_v41 }
 0x7bf   : > { %v10930_v33 = vmax.f32 %v10898_v38, 0.0 }
 0x7c0   : > { %v10929_v39 = vmax.f32 %v10897_v29, 0.0  ;;  %v14211_v43 = vpop.f32.mrb[42].mxu0 }
 0x7c1   : > { %10962 = vst.msk [vmem:[%s18028_s26 + $0x48] sm:$0xff] %vm279_vm0, %v10930_v33  ;;  %v10900_v45 = vadd.f32 %v14211_v43, %v18020_v17  ;;  %v10741_v54 = vpop.f32.mrb[43].mxu0 }
 0x7c2   : > { %10961 = vst.msk [vmem:[%s18028_s26 + $0x40] sm:$0xff] %vm279_vm0, %v10929_v39  ;;  %v10899_v3 = vadd.f32 %v18020_v17, %v10741_v54 }
 0x7c3   : > { %v10932_v20 = vmax.f32 %v10900_v45, 0.0 }
 0x7c4   : > { %v10931_v37 = vmax.f32 %v10899_v3, 0.0  ;;  %v14214_v52 = vpop.f32.mrb[44].mxu0 }
 0x7c5   : > { %10964 = vst.msk [vmem:[%s18028_s26 + $0x58] sm:$0xff] %vm279_vm0, %v10932_v20  ;;  %v10902_v2 = vadd.f32 %v14214_v52, %v18020_v17  ;;  %v10751_v15 = vpop.f32.mrb[45].mxu0 }
 0x7c6   : > { %10963 = vst.msk [vmem:[%s18028_s26 + $0x50] sm:$0xff] %vm279_vm0, %v10931_v37  ;;  %v10901_v42 = vadd.f32 %v18020_v17, %v10751_v15 }
 0x7c7   : > { %v10934_v11 = vmax.f32 %v10902_v2, 0.0 }
 0x7c8   : > { %v10933_v47 = vmax.f32 %v10901_v42, 0.0  ;;  %v14217_v5 = vpop.f32.mrb[46].mxu0 }
 0x7c9   : > { %10966 = vst.msk [vmem:[%s18028_s26 + $0x68] sm:$0xff] %vm279_vm0, %v10934_v11  ;;  %v10904_v25 = vadd.f32 %v14217_v5, %v18020_v17  ;;  %v10761_v28 = vpop.f32.mrb[47].mxu0 }
 0x7ca   : > { %10965 = vst.msk [vmem:[%s18028_s26 + $0x60] sm:$0xff] %vm279_vm0, %v10933_v47  ;;  %v10903_v6 = vadd.f32 %v18020_v17, %v10761_v28 }
 0x7cb   : > { %v10936_v55 = vmax.f32 %v10904_v25, 0.0 }
 0x7cc   : > { %v10935_v40 = vmax.f32 %v10903_v6, 0.0  ;;  %v14220_v13 = vpop.f32.mrb[48].mxu0 }
 0x7cd   : > { %10968 = vst.msk [vmem:[%s18028_s26 + $0x78] sm:$0xff] %vm279_vm0, %v10936_v55  ;;  %v10906_v0 = vadd.f32 %v14220_v13, %v18020_v17  ;;  %v10771_v22 = vpop.f32.mrb[49].mxu0 }
 0x7ce   : > { %10967 = vst.msk [vmem:[%s18028_s26 + $0x70] sm:$0xff] %vm279_vm0, %v10935_v40  ;;  %v10905_v36 = vadd.f32 %v18020_v17, %v10771_v22 }
 0x7cf   : > { %v10938_v60 = vmax.f32 %v10906_v0, 0.0 }
 0x7d0   : > { %v10937_v24 = vmax.f32 %v10905_v36, 0.0  ;;  %v14223_v21 = vpop.f32.mrb[50].mxu0 }
 0x7d1   : > { %10970 = vst.msk [vmem:[%s18028_s26 + $0x88] sm:$0xff] %vm279_vm0, %v10938_v60  ;;  %v10908_v4 = vadd.f32 %v14223_v21, %v18020_v17  ;;  %v10781_v26 = vpop.f32.mrb[51].mxu0 }
 0x7d2   : > { %10969 = vst.msk [vmem:[%s18028_s26 + $0x80] sm:$0xff] %vm279_vm0, %v10937_v24  ;;  %v10907_v62 = vadd.f32 %v18020_v17, %v10781_v26 }
 0x7d3   : > { %v10940_v58 = vmax.f32 %v10908_v4, 0.0 }
 0x7d4   : > { %v10939_v14 = vmax.f32 %v10907_v62, 0.0  ;;  %v14226_v23 = vpop.f32.mrb[52].mxu0 }
 0x7d5   : > { %10972 = vst.msk [vmem:[%s18028_s26 + $0x98] sm:$0xff] %vm279_vm0, %v10940_v58  ;;  %v10910_v50 = vadd.f32 %v14226_v23, %v18020_v17  ;;  %v10791_v63 = vpop.f32.mrb[53].mxu0 }
 0x7d6   : > { %10971 = vst.msk [vmem:[%s18028_s26 + $0x90] sm:$0xff] %vm279_vm0, %v10939_v14  ;;  %v10909_v31 = vadd.f32 %v18020_v17, %v10791_v63 }
 0x7d7   : > { %v10942_v59 = vmax.f32 %v10910_v50, 0.0 }
 0x7d8   : > { %v10941_v12 = vmax.f32 %v10909_v31, 0.0  ;;  %v14229_v30 = vpop.f32.mrb[54].mxu0 }
 0x7d9   : > { %10974 = vst.msk [vmem:[%s18028_s26 + $0xa8] sm:$0xff] %vm279_vm0, %v10942_v59  ;;  %v10912_v18 = vadd.f32 %v14229_v30, %v18020_v17  ;;  %v10801_v1 = vpop.f32.mrb[55].mxu0 }
 0x7da   : > { %10973 = vst.msk [vmem:[%s18028_s26 + $0xa0] sm:$0xff] %vm279_vm0, %v10941_v12  ;;  %v10911_v16 = vadd.f32 %v18020_v17, %v10801_v1 }
 0x7db   : > { %v10944_v32 = vmax.f32 %v10912_v18, 0.0 }
 0x7dc   : > { %v10943_v34 = vmax.f32 %v10911_v16, 0.0  ;;  %v14232_v51 = vpop.f32.mrb[56].mxu0 }
 0x7dd   : > { %10976 = vst.msk [vmem:[%s18028_s26 + $0xb8] sm:$0xff] %vm279_vm0, %v10944_v32  ;;  %v10914_v10 = vadd.f32 %v14232_v51, %v18020_v17  ;;  %v10811_v46 = vpop.f32.mrb[57].mxu0 }
 0x7de   : > { %10975 = vst.msk [vmem:[%s18028_s26 + $0xb0] sm:$0xff] %vm279_vm0, %v10943_v34  ;;  %v10913_v19 = vadd.f32 %v18020_v17, %v10811_v46 }
 0x7df   : > { %v10946_v35 = vmax.f32 %v10914_v10, 0.0 }
 0x7e0   : > { %v10945_v49 = vmax.f32 %v10913_v19, 0.0  ;;  %v14235_v57 = vpop.f32.mrb[58].mxu0 }
 0x7e1   : > { %10978 = vst.msk [vmem:[%s18028_s26 + $0xc8] sm:$0xff] %vm279_vm0, %v10946_v35  ;;  %v10916_v7 = vadd.f32 %v14235_v57, %v18020_v17  ;;  %v10821_v56 = vpop.f32.mrb[59].mxu0 }
 0x7e2   : > { %10977 = vst.msk [vmem:[%s18028_s26 + $0xc0] sm:$0xff] %vm279_vm0, %v10945_v49  ;;  %v10915_v48 = vadd.f32 %v18020_v17, %v10821_v56 }
 0x7e3   : > { %v10948_v8 = vmax.f32 %v10916_v7, 0.0 }
 0x7e4   : > { %v10947_v44 = vmax.f32 %v10915_v48, 0.0  ;;  %v14238_v9 = vpop.f32.mrb[60].mxu0 }
 0x7e5   : > { %10980 = vst.msk [vmem:[%s18028_s26 + $0xd8] sm:$0xff] %vm279_vm0, %v10948_v8  ;;  %v10918_v27 = vadd.f32 %v14238_v9, %v18020_v17  ;;  %v10831_v53 = vpop.f32.mrb[61].mxu0 }
 0x7e6   : > { %10979 = vst.msk [vmem:[%s18028_s26 + $0xd0] sm:$0xff] %vm279_vm0, %v10947_v44  ;;  %v10917_v61 = vadd.f32 %v18020_v17, %v10831_v53 }
 0x7e7   : > { %v10950_v38 = vmax.f32 %v10918_v27, 0.0 }
 0x7e8   : > { %v10949_v41 = vmax.f32 %v10917_v61, 0.0  ;;  %v14241_v29 = vpop.f32.mrb[62].mxu0 }
 0x7e9   : > { %10982 = vst.msk [vmem:[%s18028_s26 + $0xe8] sm:$0xff] %vm279_vm0, %v10950_v38  ;;  %v10920_v33 = vadd.f32 %v14241_v29, %v18020_v17  ;;  %v10841_v39 = vpop.f32.mrb[63].mxu0 }
 0x7ea   : > { %10981 = vst.msk [vmem:[%s18028_s26 + $0xe0] sm:$0xff] %vm279_vm0, %v10949_v41  ;;  %v10919_v43 = vadd.f32 %v18020_v17, %v10841_v39 }
 0x7eb   : > { %v10952_v45 = vmax.f32 %v10920_v33, 0.0 }
 0x7ec   : > { %v10951_v54 = vmax.f32 %v10919_v43, 0.0 }
 0x7ed   : > { %10984 = vst.msk [vmem:[%s18028_s26 + $0xf8] sm:$0xff] %vm279_vm0, %v10952_v45 }
 0x7ee   : > { %10983 = vst.msk [vmem:[%s18028_s26 + $0xf0] sm:$0xff] %vm279_vm0, %v10951_v54 }
 0x7ef PF: > { %s17_s24 = sadd.s32 1, %s15135_s24  }
 0x7f0   : > { %p14_p4 = scmp.ge.s32.totalorder %s17_s24, 4  }
 0x7f2   :  { %16 = sbr.rel (!%p14_p4) target bundleno = 1 (0x1), region = 80 }

</bundles_post_ra>
